<compile_context>
chip_gen: v5e
topology: v5e:2x2
jax: 0.10.0
libtpu: 0.0.40
codegen_flags: <defaults>
</compile_context>

<pallas_src>
import functools
import math

import jax
import jax.numpy as jnp
import numpy as np
from jax import lax
from jax.experimental import pallas as pl
from jax.experimental.pallas import tpu as pltpu


# ----------------------------------------------------------------------------
# BlockSpec helper: whole array as a single block (grid=(1,)).
# ----------------------------------------------------------------------------
def _full_spec(shape):
    nd = len(shape)
    return pl.BlockSpec(shape, lambda i, _nd=nd: (0,) * _nd)


_SINGLE_BLOCK_PARAMS = pltpu.CompilerParams(
    dimension_semantics=("arbitrary",))


# ----------------------------------------------------------------------------
# Kernel A: fused seasonal de-meaning + future seasonal mean + Matern matrix.
#
#   y        = x - x @ M_ctx     (M_ctx encodes per-phase mean -> repeat map)
#   loc_fut  = x @ M_fut         (future seasonal mean, time on lanes)
#   K_full   = exp(-|t_i - t_j| / gamma)   over t_full = [t_ctx ; t_fut]
#
# Every store is a lane-dense full-tile write; the three separate Matern
# launches of v1 collapse into one EUP exp pass.
# ----------------------------------------------------------------------------
def _prep_kernel(x_ref, mctx_ref, mfut_ref, tcol_ref, trow_ref,
                 y_ref, locfut_ref, kfull_ref, *, inv_gamma):
    x = x_ref[...]                                                  # (R, L)
    loc_ctx = jnp.dot(x, mctx_ref[...], preferred_element_type=jnp.float32)
    y_ref[...] = x - loc_ctx
    locfut_ref[...] = jnp.dot(x, mfut_ref[...],
                              preferred_element_type=jnp.float32)   # (R, p)
    d = jnp.abs(tcol_ref[...] - trow_ref[...])                      # (m, m)
    kfull_ref[...] = jnp.exp(-d * inv_gamma)


def _prep(x2, m_ctx, m_fut, t_full, inv_gamma):
    R, L = x2.shape
    p = m_fut.shape[1]
    m = t_full.shape[0]
    t_col = t_full.reshape(m, 1).astype(jnp.float32)
    t_row = t_full.reshape(1, m).astype(jnp.float32)
    return pl.pallas_call(
        functools.partial(_prep_kernel, inv_gamma=float(inv_gamma)),
        grid=(1,),
        in_specs=[_full_spec((R, L)), _full_spec((L, L)), _full_spec((L, p)),
                  _full_spec((m, 1)), _full_spec((1, m))],
        out_specs=(_full_spec((R, L)), _full_spec((R, p)), _full_spec((m, m))),
        out_shape=(jax.ShapeDtypeStruct((R, L), jnp.float32),
                   jax.ShapeDtypeStruct((R, p), jnp.float32),
                   jax.ShapeDtypeStruct((m, m), jnp.float32)),
        compiler_params=_SINGLE_BLOCK_PARAMS,
    )(x2, m_ctx, m_fut, t_col, t_row)


# ----------------------------------------------------------------------------
# Kernel B: fused posterior mean + posterior covariance.
#   mean = alpha @ K_cross^T + loc_fut   (contract K_cross's last dim in-MXU,
#                                         no host-side transposed copy)
#   cov  = K_test_noisy - K_cross @ V    (noise already on K_test's diagonal)
# K_cross is DMA'd into VMEM once and reused by both matmuls.
# NOTE: K_cross is shared across the batch, so all B rows of alpha ride one
#       MXU pass; for many windows, fold them into the leading (row) dim.
# For large pC*nC this kernel should become a tiled (i, j, k) grid with an
# f32 accumulator scratch and ("parallel","parallel","arbitrary") semantics.
# ----------------------------------------------------------------------------
def _posterior_kernel(alpha_ref, kcross_ref, v_ref, ktest_ref, locfut_ref,
                      mean_ref, cov_ref):
    kc = kcross_ref[...]                                            # (pC, nC)
    mean_ref[...] = lax.dot_general(
        alpha_ref[...], kc,
        dimension_numbers=(((1,), (1,)), ((), ())),
        preferred_element_type=jnp.float32) + locfut_ref[...]
    cov_ref[...] = ktest_ref[...] - jnp.dot(
        kc, v_ref[...], preferred_element_type=jnp.float32)


def _posterior(alpha, k_cross, v, k_test_noisy, loc_fut_flat):
    B, nC = alpha.shape
    pC = k_cross.shape[0]
    return pl.pallas_call(
        _posterior_kernel,
        grid=(1,),
        in_specs=[_full_spec((B, nC)), _full_spec((pC, nC)),
                  _full_spec((nC, pC)), _full_spec((pC, pC)),
                  _full_spec((B, pC))],
        out_specs=(_full_spec((B, pC)), _full_spec((pC, pC))),
        out_shape=(jax.ShapeDtypeStruct((B, pC), jnp.float32),
                   jax.ShapeDtypeStruct((pC, pC), jnp.float32)),
        compiler_params=_SINGLE_BLOCK_PARAMS,
    )(alpha, k_cross, v, k_test_noisy, loc_fut_flat)


# ----------------------------------------------------------------------------
# Static phase-mixing matrices (compile-time constants, built with numpy).
#   x @ M_ctx == repeat_interleave(per-phase mean, G)  (+ remainder), len L
#   x @ M_fut == future seasonal mean, len p
# Faithful to the PyTorch reference: the mean is over phase = l % F, the
# expansion uses repeat_interleave semantics (phase = l // G).
# ----------------------------------------------------------------------------
def _phase_mixing_matrices(L, F, p):
    G = L // F
    fc, rem_f = divmod(p, F)

    def ctx_phase(l):
        return l // G if l < F * G else l - F * G

    def fut_phase(t):
        return t // fc if (fc > 0 and t < F * fc) else t - F * fc

    s = np.zeros((L, F), np.float32)            # per-phase mean (phase = l % F)
    for l in range(G * F):
        s[l, l % F] = 1.0 / G
    e_ctx = np.zeros((F, L), np.float32)
    for l in range(L):
        e_ctx[ctx_phase(l), l] = 1.0
    e_fut = np.zeros((F, p), np.float32)
    for t in range(p):
        e_fut[fut_phase(t), t] = 1.0
    return s @ e_ctx, s @ e_fut                  # (L, L), (L, p)


# ----------------------------------------------------------------------------
# Whole forward pass under one jit.
# ----------------------------------------------------------------------------
@functools.partial(
    jax.jit,
    static_argnames=("prediction_length", "context_points", "freq",
                     "gamma", "noise_diag", "num_tasks"))
def _gp_regression_impl(x, t, B_task, *, prediction_length, context_points,
                        freq, gamma, noise_diag, num_tasks):
    B, C, L = x.shape
    assert C == num_tasks
    F = freq
    n = context_points
    p = prediction_length
    nC, pC = n * C, p * C

    m_ctx, m_fut = _phase_mixing_matrices(L, F, p)

    # --- Pallas kernel A: de-mean + future seasonal mean + Matern matrix ----
    t_full = t[:n + p]
    y2, loc_fut_rc, k_full = _prep(
        x.reshape(B * C, L), jnp.asarray(m_ctx), jnp.asarray(m_fut),
        t_full, 1.0 / gamma)

    # tiny layout plumbing: interleave (time, task) for the flat GP system
    y_train = jnp.transpose(y2.reshape(B, C, L), (0, 2, 1))[:, L - n:, :]
    y_flat = y_train.reshape(B, nC)
    loc_fut_flat = jnp.transpose(
        loc_fut_rc.reshape(B, C, p), (0, 2, 1)).reshape(B, pC)

    K_cc = k_full[:n, :n]
    K_fc = k_full[n:n + p, :n]
    K_ff = k_full[n:n + p, n:n + p]

    # --- multitask (Kronecker) assembly + ONE Cholesky, reused --------------
    K_train_noisy = jnp.kron(K_cc, B_task).at[jnp.diag_indices(nC)].add(
        noise_diag)
    K_cross = jnp.kron(K_fc, B_task)                                # (pC, nC)
    K_test_noisy = jnp.kron(K_ff, B_task).at[jnp.diag_indices(pC)].add(
        noise_diag)

    cf = jax.scipy.linalg.cho_factor(K_train_noisy)
    alpha = jax.scipy.linalg.cho_solve(cf, y_flat.T).T              # (B, nC)
    V = jax.scipy.linalg.cho_solve(cf, K_cross.T)                   # (nC, pC)

    # --- Pallas kernel B: fused posterior mean + covariance -----------------
    mean_flat, cov = _posterior(alpha, K_cross, V, K_test_noisy, loc_fut_flat)

    mean_final = mean_flat.reshape(B, p, C)
    # cov is identical across the batch; batch broadcast is left to the
    # consumer (avoids writing B copies of a pC x pC matrix to HBM).
    return mean_final, cov


# ----------------------------------------------------------------------------
# The module (forward pass == gp_regression)
# ----------------------------------------------------------------------------
class Q0DistMultiTaskPallas:
    def __init__(self, prediction_length, num_tasks=4, num_latents=2, freq=4,
                 gamma=1.0, iso=1e-4, context_freqs=1, key=None):
        self.freq = freq
        self.num_tasks = num_tasks
        self.num_latents = num_latents
        self.gamma = float(gamma)
        self.iso = float(iso)
        self.prediction_length = prediction_length
        self.prior_context_length = context_freqs * prediction_length
        self.condition_length = prediction_length
        self.window_length = self.condition_length + self.prediction_length

        # buffer t (same as torch.arange(window) * pi / freq)
        self.t = jnp.arange(self.window_length, dtype=jnp.float32) * (
            math.pi / freq)

        # Deterministic synthetic multitask (ICM) kernel parameters:
        #   B_task = W W^T + diag(v)   (gpytorch IndexKernel, rank=num_latents)
        if key is None:
            key = jax.random.PRNGKey(0)
        k1, k2 = jax.random.split(key)
        self.W = 0.5 * jax.random.normal(k1, (num_tasks, num_latents),
                                         jnp.float32)
        self.task_var = jax.nn.softplus(
            jax.random.normal(k2, (num_tasks,), jnp.float32))
        self.B_task = self.W @ self.W.T + jnp.diag(self.task_var)

        # Likelihood: global noise = iso, per-task noises = 1 -> (1 + iso) * I
        self.noise_diag = 1.0 + self.iso

    def gp_regression(self, x, prediction_length, context_points=0):
        assert context_points > 0, "need at least one conditioning point"
        if x.ndim == 2:
            B = x.shape[0] // self.num_tasks
            x = x.reshape(B, self.num_tasks, -1)
        return _gp_regression_impl(
            x.astype(jnp.float32), self.t, self.B_task,
            prediction_length=int(prediction_length),
            context_points=int(context_points),
            freq=int(self.freq),
            gamma=float(self.gamma),
            noise_diag=float(self.noise_diag),
            num_tasks=int(self.num_tasks))


# ----------------------------------------------------------------------------
if __name__ == "__main__":
    key = jax.random.PRNGKey(0)
    k_param, k_x = jax.random.split(key)

    prediction_length = 8
    num_tasks = 4
    num_latents = 2
    freq = 4
    batch = 2
    L = prediction_length  # == prior_context_length with context_freqs=1

    module = Q0DistMultiTaskPallas(
        prediction_length=prediction_length,
        num_tasks=num_tasks,
        num_latents=num_latents,
        freq=freq,
        gamma=1.0,
        iso=1e-4,
        context_freqs=1,
        key=k_param,
    )

    x = jax.random.normal(k_x, (batch, num_tasks, L), jnp.float32)

    mean_final, cov = module.gp_regression(
        x, prediction_length=prediction_length, context_points=L)
    jax.block_until_ready((mean_final, cov))

    pC = prediction_length * num_tasks
    assert mean_final.shape == (batch, prediction_length, num_tasks)
    assert cov.shape == (pC, pC)
    assert bool(jnp.all(jnp.isfinite(mean_final)))
    assert bool(jnp.all(jnp.isfinite(cov)))

    # ---- pure-JAX/XLA reference (same math, independent code path) --------
    with jax.default_matmul_precision("highest"):
        G = L // freq
        loc_phase = x[:, :, :G * freq].reshape(
            batch, num_tasks, G, freq).mean(axis=2)
        loc_ctx = jnp.repeat(loc_phase, G, axis=2)
        rem = L - G * freq
        if rem > 0:
            loc_ctx = jnp.concatenate([loc_ctx, loc_phase[:, :, :rem]], axis=2)
        y_ctx = jnp.transpose(x - loc_ctx, (0, 2, 1))
        n, p, C = L, prediction_length, num_tasks
        y_flat = y_ctx[:, L - n:, :].reshape(batch, n * C)
        t = module.t

        def matern(a, b):
            return jnp.exp(-jnp.abs(a[:, None] - b[None, :]) / module.gamma)

        Kcc = matern(t[:n], t[:n])
        Kfc = matern(t[n:n + p], t[:n])
        Kff = matern(t[n:n + p], t[n:n + p])
        Bt = module.B_task
        Ktr = jnp.kron(Kcc, Bt) + module.noise_diag * jnp.eye(
            n * C, dtype=jnp.float32)
        Kcr = jnp.kron(Kfc, Bt)
        Kte = jnp.kron(Kff, Bt) + module.noise_diag * jnp.eye(
            p * C, dtype=jnp.float32)
        alpha_r = jnp.linalg.solve(Ktr, y_flat.T).T
        V_r = jnp.linalg.solve(Ktr, Kcr.T)
        fc, rem_f = divmod(p, freq)
        if fc > 0:
            fut = jnp.repeat(loc_phase, fc, axis=2)
        else:
            fut = jnp.zeros((batch, C, 0), jnp.float32)
        if rem_f > 0:
            fut = jnp.concatenate([fut, loc_phase[:, :, :rem_f]], axis=2)
        loc_fut_r = jnp.transpose(fut, (0, 2, 1)).reshape(batch, p * C)
        mean_ref = (alpha_r @ Kcr.T + loc_fut_r).reshape(batch, p, C)
        cov_ref = Kte - Kcr @ V_r

    # loose tolerance: MXU multi-pass f32 vs XLA accumulation order differ
    assert bool(jnp.allclose(mean_final, mean_ref, atol=0.1, rtol=0.1)), \
        float(jnp.max(jnp.abs(mean_final - mean_ref)))
    assert bool(jnp.allclose(cov, cov_ref, atol=0.1, rtol=0.1)), \
        float(jnp.max(jnp.abs(cov - cov_ref)))

    print("KERNEL_OK")
</pallas_src>

<mosaic_0001>
module attributes {stable_mosaic.version = 11 : i64} {
  func.func @_prep_kernel(%arg0: i32, %arg1: memref<8x8xf32, #tpu.memory_space<vmem>>, %arg2: memref<8x8xf32, #tpu.memory_space<vmem>>, %arg3: memref<8x8xf32, #tpu.memory_space<vmem>>, %arg4: memref<16x1xf32, #tpu.memory_space<vmem>>, %arg5: memref<1x16xf32, #tpu.memory_space<vmem>>, %arg6: memref<8x8xf32, #tpu.memory_space<vmem>>, %arg7: memref<8x8xf32, #tpu.memory_space<vmem>>, %arg8: memref<16x16xf32, #tpu.memory_space<vmem>>) attributes {dimension_semantics = [#tpu.dimension_semantics<arbitrary>], iteration_bounds = array<i64: 1>, scalar_prefetch = 0 : i64, scratch_operands = 0 : i64, tpu.core_type = #tpu.core_type<tc>, window_params = [{pipeline_mode = #tpu.pipeline_mode<synchronous>, transform_indices = @transform_0, window_bounds = array<i64: 8, 8>}, {pipeline_mode = #tpu.pipeline_mode<synchronous>, transform_indices = @transform_1, window_bounds = array<i64: 8, 8>}, {pipeline_mode = #tpu.pipeline_mode<synchronous>, transform_indices = @transform_2, window_bounds = array<i64: 8, 8>}, {pipeline_mode = #tpu.pipeline_mode<synchronous>, transform_indices = @transform_3, window_bounds = array<i64: 16, 1>}, {pipeline_mode = #tpu.pipeline_mode<synchronous>, transform_indices = @transform_4, window_bounds = array<i64: 1, 16>}, {pipeline_mode = #tpu.pipeline_mode<synchronous>, transform_indices = @transform_5, window_bounds = array<i64: 8, 8>}, {pipeline_mode = #tpu.pipeline_mode<synchronous>, transform_indices = @transform_6, window_bounds = array<i64: 8, 8>}, {pipeline_mode = #tpu.pipeline_mode<synchronous>, transform_indices = @transform_7, window_bounds = array<i64: 16, 16>}]} {
    %c0 = arith.constant 0 : index
    %c0_0 = arith.constant 0 : index
    %0 = vector.load %arg1[%c0, %c0_0] : memref<8x8xf32, #tpu.memory_space<vmem>>, vector<8x8xf32>
    %c0_1 = arith.constant 0 : index
    %c0_2 = arith.constant 0 : index
    %1 = vector.load %arg2[%c0_1, %c0_2] : memref<8x8xf32, #tpu.memory_space<vmem>>, vector<8x8xf32>
    %cst = arith.constant dense<0.000000e+00> : vector<8x8xf32>
    %2 = tpu.matmul %0, %1, %cst {dimension_numbers = #tpu.dot_dimension_numbers<[1], [0], [0], [1], [0, 0, 1, 1], [], []>} : vector<8x8xf32>, vector<8x8xf32>, vector<8x8xf32> -> vector<8x8xf32>
    %3 = arith.subf %0, %2 : vector<8x8xf32>
    %c0_3 = arith.constant 0 : index
    %c0_4 = arith.constant 0 : index
    %4 = vector.load %arg6[%c0_3, %c0_4] : memref<8x8xf32, #tpu.memory_space<vmem>>, vector<8x8xf32>
    tpu.vector_store %arg6[%c0_3, %c0_4], %3 {strides = array<i32>} : memref<8x8xf32, #tpu.memory_space<vmem>>, vector<8x8xf32>,
    %c0_5 = arith.constant 0 : index
    %c0_6 = arith.constant 0 : index
    %5 = vector.load %arg3[%c0_5, %c0_6] : memref<8x8xf32, #tpu.memory_space<vmem>>, vector<8x8xf32>
    %cst_7 = arith.constant dense<0.000000e+00> : vector<8x8xf32>
    %6 = tpu.matmul %0, %5, %cst_7 {dimension_numbers = #tpu.dot_dimension_numbers<[1], [0], [0], [1], [0, 0, 1, 1], [], []>} : vector<8x8xf32>, vector<8x8xf32>, vector<8x8xf32> -> vector<8x8xf32>
    %c0_8 = arith.constant 0 : index
    %c0_9 = arith.constant 0 : index
    %7 = vector.load %arg7[%c0_8, %c0_9] : memref<8x8xf32, #tpu.memory_space<vmem>>, vector<8x8xf32>
    tpu.vector_store %arg7[%c0_8, %c0_9], %6 {strides = array<i32>} : memref<8x8xf32, #tpu.memory_space<vmem>>, vector<8x8xf32>,
    %c0_10 = arith.constant 0 : index
    %c0_11 = arith.constant 0 : index
    %8 = vector.load %arg4[%c0_10, %c0_11] : memref<16x1xf32, #tpu.memory_space<vmem>>, vector<16x1xf32>
    %c0_12 = arith.constant 0 : index
    %c0_13 = arith.constant 0 : index
    %9 = vector.load %arg5[%c0_12, %c0_13] : memref<1x16xf32, #tpu.memory_space<vmem>>, vector<1x16xf32>
    %10 = vector.broadcast %8 : vector<16x1xf32> to vector<16x16xf32>
    %11 = vector.broadcast %9 : vector<1x16xf32> to vector<16x16xf32>
    %12 = arith.subf %10, %11 : vector<16x16xf32>
    %13 = math.absf %12 : vector<16x16xf32>
    %cst_14 = arith.constant 0.000000e+00 : f32
    %14 = vector.broadcast %cst_14 : f32 to vector<16x16xf32>
    %15 = arith.subf %14, %13 : vector<16x16xf32>
    %cst_15 = arith.constant 1.000000e+00 : f32
    %16 = vector.broadcast %cst_15 : f32 to vector<16x16xf32>
    %17 = arith.mulf %15, %16 : vector<16x16xf32>
    %18 = math.exp %17 : vector<16x16xf32>
    %c0_16 = arith.constant 0 : index
    %c0_17 = arith.constant 0 : index
    %19 = vector.load %arg8[%c0_16, %c0_17] : memref<16x16xf32, #tpu.memory_space<vmem>>, vector<16x16xf32>
    tpu.vector_store %arg8[%c0_16, %c0_17], %18 {strides = array<i32>} : memref<16x16xf32, #tpu.memory_space<vmem>>, vector<16x16xf32>,
    return
  }
  func.func @transform_0(%arg0: i32) -> (i32, i32) {
    %c0_i32 = arith.constant 0 : i32
    %c0_i32_0 = arith.constant 0 : i32
    %c0_i32_1 = arith.constant 0 : i32
    return %c0_i32, %c0_i32_0 : i32, i32
  }
  func.func @transform_1(%arg0: i32) -> (i32, i32) {
    %c0_i32 = arith.constant 0 : i32
    %c0_i32_0 = arith.constant 0 : i32
    %c0_i32_1 = arith.constant 0 : i32
    return %c0_i32, %c0_i32_0 : i32, i32
  }
  func.func @transform_2(%arg0: i32) -> (i32, i32) {
    %c0_i32 = arith.constant 0 : i32
    %c0_i32_0 = arith.constant 0 : i32
    %c0_i32_1 = arith.constant 0 : i32
    return %c0_i32, %c0_i32_0 : i32, i32
  }
  func.func @transform_3(%arg0: i32) -> (i32, i32) {
    %c0_i32 = arith.constant 0 : i32
    %c0_i32_0 = arith.constant 0 : i32
    %c0_i32_1 = arith.constant 0 : i32
    return %c0_i32, %c0_i32_0 : i32, i32
  }
  func.func @transform_4(%arg0: i32) -> (i32, i32) {
    %c0_i32 = arith.constant 0 : i32
    %c0_i32_0 = arith.constant 0 : i32
    %c0_i32_1 = arith.constant 0 : i32
    return %c0_i32, %c0_i32_0 : i32, i32
  }
  func.func @transform_5(%arg0: i32) -> (i32, i32) {
    %c0_i32 = arith.constant 0 : i32
    %c0_i32_0 = arith.constant 0 : i32
    %c0_i32_1 = arith.constant 0 : i32
    return %c0_i32, %c0_i32_0 : i32, i32
  }
  func.func @transform_6(%arg0: i32) -> (i32, i32) {
    %c0_i32 = arith.constant 0 : i32
    %c0_i32_0 = arith.constant 0 : i32
    %c0_i32_1 = arith.constant 0 : i32
    return %c0_i32, %c0_i32_0 : i32, i32
  }
  func.func @transform_7(%arg0: i32) -> (i32, i32) {
    %c0_i32 = arith.constant 0 : i32
    %c0_i32_0 = arith.constant 0 : i32
    %c0_i32_1 = arith.constant 0 : i32
    return %c0_i32, %c0_i32_0 : i32, i32
  }
}

module attributes {stable_mosaic.version = 11 : i64} {
  func.func @_posterior_kernel(%arg0: i32, %arg1: memref<2x32xf32, #tpu.memory_space<vmem>>, %arg2: memref<32x32xf32, #tpu.memory_space<vmem>>, %arg3: memref<32x32xf32, #tpu.memory_space<vmem>>, %arg4: memref<32x32xf32, #tpu.memory_space<vmem>>, %arg5: memref<2x32xf32, #tpu.memory_space<vmem>>, %arg6: memref<2x32xf32, #tpu.memory_space<vmem>>, %arg7: memref<32x32xf32, #tpu.memory_space<vmem>>) attributes {dimension_semantics = [#tpu.dimension_semantics<arbitrary>], iteration_bounds = array<i64: 1>, scalar_prefetch = 0 : i64, scratch_operands = 0 : i64, tpu.core_type = #tpu.core_type<tc>, window_params = [{pipeline_mode = #tpu.pipeline_mode<synchronous>, transform_indices = @transform_0, window_bounds = array<i64: 2, 32>}, {pipeline_mode = #tpu.pipeline_mode<synchronous>, transform_indices = @transform_1, window_bounds = array<i64: 32, 32>}, {pipeline_mode = #tpu.pipeline_mode<synchronous>, transform_indices = @transform_2, window_bounds = array<i64: 32, 32>}, {pipeline_mode = #tpu.pipeline_mode<synchronous>, transform_indices = @transform_3, window_bounds = array<i64: 32, 32>}, {pipeline_mode = #tpu.pipeline_mode<synchronous>, transform_indices = @transform_4, window_bounds = array<i64: 2, 32>}, {pipeline_mode = #tpu.pipeline_mode<synchronous>, transform_indices = @transform_5, window_bounds = array<i64: 2, 32>}, {pipeline_mode = #tpu.pipeline_mode<synchronous>, transform_indices = @transform_6, window_bounds = array<i64: 32, 32>}]} {
    %c0 = arith.constant 0 : index
    %c0_0 = arith.constant 0 : index
    %0 = vector.load %arg2[%c0, %c0_0] : memref<32x32xf32, #tpu.memory_space<vmem>>, vector<32x32xf32>
    %c0_1 = arith.constant 0 : index
    %c0_2 = arith.constant 0 : index
    %1 = vector.load %arg1[%c0_1, %c0_2] : memref<2x32xf32, #tpu.memory_space<vmem>>, vector<2x32xf32>
    %cst = arith.constant dense<0.000000e+00> : vector<2x32xf32>
    %2 = tpu.matmul %1, %0, %cst {dimension_numbers = #tpu.dot_dimension_numbers<[1], [1], [0], [0], [0, 0, 1, 0], [], []>} : vector<2x32xf32>, vector<32x32xf32>, vector<2x32xf32> -> vector<2x32xf32>
    %c0_3 = arith.constant 0 : index
    %c0_4 = arith.constant 0 : index
    %3 = vector.load %arg5[%c0_3, %c0_4] : memref<2x32xf32, #tpu.memory_space<vmem>>, vector<2x32xf32>
    %4 = arith.addf %2, %3 : vector<2x32xf32>
    %c0_5 = arith.constant 0 : index
    %c0_6 = arith.constant 0 : index
    %5 = vector.load %arg6[%c0_5, %c0_6] : memref<2x32xf32, #tpu.memory_space<vmem>>, vector<2x32xf32>
    tpu.vector_store %arg6[%c0_5, %c0_6], %4 {strides = array<i32>} : memref<2x32xf32, #tpu.memory_space<vmem>>, vector<2x32xf32>,
    %c0_7 = arith.constant 0 : index
    %c0_8 = arith.constant 0 : index
    %6 = vector.load %arg4[%c0_7, %c0_8] : memref<32x32xf32, #tpu.memory_space<vmem>>, vector<32x32xf32>
    %c0_9 = arith.constant 0 : index
    %c0_10 = arith.constant 0 : index
    %7 = vector.load %arg3[%c0_9, %c0_10] : memref<32x32xf32, #tpu.memory_space<vmem>>, vector<32x32xf32>
    %cst_11 = arith.constant dense<0.000000e+00> : vector<32x32xf32>
    %8 = tpu.matmul %0, %7, %cst_11 {dimension_numbers = #tpu.dot_dimension_numbers<[1], [0], [0], [1], [0, 0, 1, 1], [], []>} : vector<32x32xf32>, vector<32x32xf32>, vector<32x32xf32> -> vector<32x32xf32>
    %9 = arith.subf %6, %8 : vector<32x32xf32>
    %c0_12 = arith.constant 0 : index
    %c0_13 = arith.constant 0 : index
    %10 = vector.load %arg7[%c0_12, %c0_13] : memref<32x32xf32, #tpu.memory_space<vmem>>, vector<32x32xf32>
    tpu.vector_store %arg7[%c0_12, %c0_13], %9 {strides = array<i32>} : memref<32x32xf32, #tpu.memory_space<vmem>>, vector<32x32xf32>,
    return
  }
  func.func @transform_0(%arg0: i32) -> (i32, i32) {
    %c0_i32 = arith.constant 0 : i32
    %c0_i32_0 = arith.constant 0 : i32
    %c0_i32_1 = arith.constant 0 : i32
    return %c0_i32, %c0_i32_0 : i32, i32
  }
  func.func @transform_1(%arg0: i32) -> (i32, i32) {
    %c0_i32 = arith.constant 0 : i32
    %c0_i32_0 = arith.constant 0 : i32
    %c0_i32_1 = arith.constant 0 : i32
    return %c0_i32, %c0_i32_0 : i32, i32
  }
  func.func @transform_2(%arg0: i32) -> (i32, i32) {
    %c0_i32 = arith.constant 0 : i32
    %c0_i32_0 = arith.constant 0 : i32
    %c0_i32_1 = arith.constant 0 : i32
    return %c0_i32, %c0_i32_0 : i32, i32
  }
  func.func @transform_3(%arg0: i32) -> (i32, i32) {
    %c0_i32 = arith.constant 0 : i32
    %c0_i32_0 = arith.constant 0 : i32
    %c0_i32_1 = arith.constant 0 : i32
    return %c0_i32, %c0_i32_0 : i32, i32
  }
  func.func @transform_4(%arg0: i32) -> (i32, i32) {
    %c0_i32 = arith.constant 0 : i32
    %c0_i32_0 = arith.constant 0 : i32
    %c0_i32_1 = arith.constant 0 : i32
    return %c0_i32, %c0_i32_0 : i32, i32
  }
  func.func @transform_5(%arg0: i32) -> (i32, i32) {
    %c0_i32 = arith.constant 0 : i32
    %c0_i32_0 = arith.constant 0 : i32
    %c0_i32_1 = arith.constant 0 : i32
    return %c0_i32, %c0_i32_0 : i32, i32
  }
  func.func @transform_6(%arg0: i32) -> (i32, i32) {
    %c0_i32 = arith.constant 0 : i32
    %c0_i32_0 = arith.constant 0 : i32
    %c0_i32_1 = arith.constant 0 : i32
    return %c0_i32, %c0_i32_0 : i32, i32
  }
}

</mosaic_0001>

<bundles_post_ra>
// kernel: custom-call.10
= control target key start
LH: loop header
LB: loop body
LE: loop exit
PB: predicated region body
PF: predicated region fallthrough
CT: control target
= control target key end

     0   :  { %v1851_v0 = vmov 0.0   ;;  %vm54_vm3 = vcmask 7168   ;;  %vm120_vm5 = vcmask 15368   ;;  %vm146_vm6 = vcmask 1047553   ;;  %s2299_s0 = inlined_call_operand.vmem [shape: f32[32,32], index: 0, kind: input, shape index: {}]   ;;  %s2300_s1 = inlined_call_operand.vmem [shape: f32[32,32], index: 1, kind: output, shape index: {}]  }
   0x1   :  { %47 = vst [vmem:[#allocation1] sm:$0xff] %v1851_v0  ;;  %v1869_v4 = vld [vmem:[%s2299_s0] sm:$0xff]  ;;  %v1875_v5 = vld [vmem:[%s2299_s0 + $0x8] sm:$0xff]  ;;  %vm147_vm9 = vmand %vm120_vm5, %vm146_vm6  ;;  %vm190_vm11 = vcmask 23568   ;;  %vm216_vm12 = vcmask 1047554  }
   0x2   :  { %37 = vst [vmem:[#allocation0] sm:$0xff] %v1869_v4  ;;  %vm217_vm15 = vmand %vm190_vm11, %vm216_vm12 }
   0x3   :  { %39 = vst [vmem:[#allocation0 + $0x8] sm:$0xff] %v1875_v5 }
   0x8   :  { %v55_v1 = vld [vmem:[#allocation1] ss:$0 sm:$0xff] }
   0x9   :  { %v57_v2 = vmul.f32 %v55_v1, %v55_v1  ;;  %v1862_v3 = vmul.f32 0.0, %v55_v1  ;;  %v56_v6 = vld [vmem:[#allocation0] ss:$0 sm:$0xff]  ;;  %v124_v28 = vld [vmem:[#allocation0 + $0x1] ss:$0 sm:$0xff] }
   0xa   :  { %v194_v52 = vld [vmem:[#allocation0 + $0x2] ss:$0 sm:$0xff] }
   0xb   :  { %58 = vadd.xlane.f32.xlu0 %v57_v2  ;;  %86 = vadd.xlane.f32.xlu2 %v1862_v3 }
  0x13   :  { %74 = vadd.xlane.f32.xlu0 %v1862_v3 }
  0x7e   :  { %v59_v7 = vpop.xlane.xlu0 %58  ;;  %v87_v21 = vpop.xlane.xlu2 %86 }
  0x7f   :  { %v60_v8 = vsub.f32 %v56_v6, %v59_v7  ;;  %v88_v23 = vsub.f32 %v1875_v5, %v87_v21 }
  0x81   :  { %1786 = vrsqrt.f32 %v60_v8  ;;  %vm67_vm1 = vweird.f32 %v60_v8 }
  0x86   :  { %v75_v13 = vpop.xlane.xlu0 %74 }
  0x87   :  { %v1787_v9 = vpop.eup %1786  ;;  %v76_v15 = vsub.f32 %v1869_v4, %v75_v13 }
  0x88   :  { %v62_v10 = vmul.f32 %v1787_v9, %v60_v8  ;;  %vm68_vm0 = vweird.f32 %v1787_v9 }
  0x89   :  { %vm69_vm2 = vmor %vm67_vm1, %vm68_vm0  ;;  %vm260_vm1 = vcmask 31768  }
  0x8a   :  { %v63_v11 = vmul.f32 %v1787_v9, %v62_v10 }
  0x8c   :  { %v64_v12 = vmul.f32 0.5, %v63_v11 }
  0x8e   :  { %v65_v14 = vsub.f32 1.5, %v64_v12 }
  0x90   :  { %v66_v16 = vmul.f32 %v1787_v9, %v65_v14 }
  0x92   :  { %v1879_v17 = vsel %vm69_vm2, %v1787_v9, %v66_v16  ;;  %v264_v16 = vld [vmem:[#allocation0 + $0x3] ss:$0 sm:$0xff]  ;;  %vm286_vm2 = vcmask 1047555  }
  0x93   :  { %v77_v18 = vmul.f32 %v76_v15, %v1879_v17  ;;  %v89_v24 = vmul.f32 %v88_v23, %v1879_v17  ;;  %v1926_v15 = vld [vmem:[%s2299_s0 + $0x10] sm:$0xff] }
  0x94   :  { %41 = vst [vmem:[#allocation0 + $0x10] sm:$0xff] %v1926_v15 }
  0x95   :  { %v78_v19 = vsel %vm54_vm3, %v77_v18, 0.0  ;;  %v90_v26 = vsel %vm54_vm3, %v89_v24, 0.0 }
  0x96   :  { %80 = vst [vmem:[#allocation1] sm:$0xff] %v78_v19 }
  0x9d   :  { %v1883_v20 = vld [vmem:[#allocation1 + $0x1] ss:$0 sm:$0xff] }
  0x9e   :  { %v125_v22 = vmul.f32 %v1883_v20, %v1883_v20  ;;  %v141_v25 = vmul.f32 %v1883_v20, %v78_v19  ;;  %v155_v27 = vmul.f32 %v1883_v20, %v90_v26 }
  0xa0   :  { %126 = vadd.xlane.f32.xlu1 %v125_v22 }
  0xa8   :  { %142 = vadd.xlane.f32.xlu1 %v141_v25 }
  0xb0   :  { %156 = vadd.xlane.f32.xlu1 %v155_v27 }
 0x113   :  { %v127_v29 = vpop.xlane.xlu1 %126 }
 0x114   :  { %v128_v30 = vsub.f32 %v124_v28, %v127_v29 }
 0x116   :  { %1788 = vrsqrt.f32 %v128_v30  ;;  %vm135_vm7 = vweird.f32 %v128_v30 }
 0x11b   :  { %v143_v33 = vpop.xlane.xlu1 %142 }
 0x11c   :  { %v1789_v31 = vpop.eup %1788  ;;  %v144_v38 = vsub.f32 %v1869_v4, %v143_v33 }
 0x11d   :  { %v130_v32 = vmul.f32 %v1789_v31, %v128_v30  ;;  %vm136_vm4 = vweird.f32 %v1789_v31 }
 0x11e   :  { %vm137_vm8 = vmor %vm135_vm7, %vm136_vm4 }
 0x11f   :  { %v131_v34 = vmul.f32 %v1789_v31, %v130_v32 }
 0x121   :  { %v132_v35 = vmul.f32 0.5, %v131_v34 }
 0x123   :  { %v133_v36 = vsub.f32 1.5, %v132_v35  ;;  %v157_v40 = vpop.xlane.xlu1 %156 }
 0x124   :  { %v158_v43 = vsub.f32 %v1875_v5, %v157_v40 }
 0x125   :  { %v134_v37 = vmul.f32 %v1789_v31, %v133_v36 }
 0x127   :  { %v1893_v39 = vsel %vm137_vm8, %v1789_v31, %v134_v37  ;;  %vm287_vm8 = vmand %vm260_vm1, %vm286_vm2 }
 0x128   :  { %v145_v41 = vmul.f32 %v144_v38, %v1893_v39  ;;  %v159_v45 = vmul.f32 %v158_v43, %v1893_v39 }
 0x12a   :  { %v148_v42 = vsel %vm147_vm9, %v145_v41, 0.0  ;;  %v160_v46 = vsel %vm120_vm5, %v159_v45, 0.0 }
 0x12b   :  { %v149_v44 = vadd.f32 %v148_v42, %v78_v19  ;;  %v161_v47 = vadd.f32 %v160_v46, %v90_v26 }
 0x12d   :  { %150 = vst [vmem:[#allocation1] sm:$0xff] %v149_v44 }
 0x134   :  { %v1901_v48 = vld [vmem:[#allocation1 + $0x2] ss:$0 sm:$0xff] }
 0x135   :  { %v211_v49 = vmul.f32 %v1901_v48, %v149_v44  ;;  %v195_v50 = vmul.f32 %v1901_v48, %v1901_v48  ;;  %v225_v51 = vmul.f32 %v1901_v48, %v161_v47 }
 0x137   :  { %212 = vadd.xlane.f32.xlu0 %v211_v49  ;;  %196 = vadd.xlane.f32.xlu2 %v195_v50  ;;  %v334_v49 = vld [vmem:[#allocation0 + $0x4] ss:$0 sm:$0xff] }
 0x138   :  { %226 = vadd.xlane.f32.xlu1 %v225_v51 }
 0x1aa   :  { %v197_v53 = vpop.xlane.xlu2 %196  ;;  %v213_v59 = vpop.xlane.xlu0 %212 }
 0x1ab   :  { %v198_v54 = vsub.f32 %v194_v52, %v197_v53  ;;  %v214_v62 = vsub.f32 %v1869_v4, %v213_v59  ;;  %v227_v0 = vpop.xlane.xlu1 %226 }
 0x1ac   :  { %v228_v6 = vsub.f32 %v1875_v5, %v227_v0 }
 0x1ad   :  { %1790 = vrsqrt.f32 %v198_v54  ;;  %vm205_vm13 = vweird.f32 %v198_v54 }
 0x1b3   :  { %v1791_v55 = vpop.eup %1790 }
 0x1b4   :  { %v200_v56 = vmul.f32 %v1791_v55, %v198_v54  ;;  %vm206_vm10 = vweird.f32 %v1791_v55 }
 0x1b5   :  { %vm207_vm14 = vmor %vm205_vm13, %vm206_vm10  ;;  %vm330_vm10 = vcmask 39968   ;;  %vm356_vm13 = vcmask 1047556  }
 0x1b6   :  { %v201_v57 = vmul.f32 %v1791_v55, %v200_v56 }
 0x1b8   :  { %v202_v58 = vmul.f32 0.5, %v201_v57 }
 0x1ba   :  { %v203_v60 = vsub.f32 1.5, %v202_v58 }
 0x1bc   :  { %v204_v61 = vmul.f32 %v1791_v55, %v203_v60 }
 0x1be   :  { %v1908_v63 = vsel %vm207_vm14, %v1791_v55, %v204_v61 }
 0x1bf   :  { %v215_v1 = vmul.f32 %v214_v62, %v1908_v63  ;;  %v229_v8 = vmul.f32 %v228_v6, %v1908_v63 }
 0x1c1   :  { %v218_v2 = vsel %vm217_vm15, %v215_v1, 0.0  ;;  %v230_v9 = vsel %vm190_vm11, %v229_v8, 0.0 }
 0x1c2   :  { %v219_v7 = vadd.f32 %v218_v2, %v149_v44  ;;  %v231_v10 = vadd.f32 %v230_v9, %v161_v47 }
 0x1c4   :  { %220 = vst [vmem:[#allocation1] sm:$0xff] %v219_v7 }
 0x1cb   :  { %v1916_v11 = vld [vmem:[#allocation1 + $0x3] ss:$0 sm:$0xff] }
 0x1cc   :  { %v281_v12 = vmul.f32 %v1916_v11, %v219_v7  ;;  %v265_v13 = vmul.f32 %v1916_v11, %v1916_v11  ;;  %v295_v14 = vmul.f32 %v1916_v11, %v231_v10 }
 0x1ce   :  { %282 = vadd.xlane.f32.xlu0 %v281_v12  ;;  %266 = vadd.xlane.f32.xlu2 %v265_v13 }
 0x1cf   :  { %296 = vadd.xlane.f32.xlu1 %v295_v14 }
 0x1d6   :  { %99 = vadd.xlane.f32.xlu2 %v1862_v3 }
 0x241   :  { %v267_v18 = vpop.xlane.xlu2 %266  ;;  %v283_v25 = vpop.xlane.xlu0 %282 }
 0x242   :  { %v268_v19 = vsub.f32 %v264_v16, %v267_v18  ;;  %v284_v28 = vsub.f32 %v1869_v4, %v283_v25  ;;  %v297_v30 = vpop.xlane.xlu1 %296 }
 0x243   :  { %v298_v33 = vsub.f32 %v1875_v5, %v297_v30 }
 0x244   :  { %1792 = vrsqrt.f32 %v268_v19  ;;  %vm275_vm4 = vweird.f32 %v268_v19 }
 0x249   :  { %v100_v35 = vpop.xlane.xlu2 %99 }
 0x24a   :  { %v1793_v21 = vpop.eup %1792  ;;  %v101_v37 = vsub.f32 %v1926_v15, %v100_v35 }
 0x24b   :  { %v270_v22 = vmul.f32 %v1793_v21, %v268_v19  ;;  %vm276_vm0 = vweird.f32 %v1793_v21 }
 0x24c   :  { %vm277_vm7 = vmor %vm275_vm4, %vm276_vm0  ;;  %v102_v40 = vmul.f32 %v101_v37, %v1879_v17 }
 0x24d   :  { %v271_v23 = vmul.f32 %v1793_v21, %v270_v22  ;;  %vm357_vm0 = vmand %vm330_vm10, %vm356_vm13 }
 0x24e   :  { %v103_v46 = vsel %vm54_vm3, %v102_v40, 0.0 }
 0x24f   :  { %v272_v24 = vmul.f32 0.5, %v271_v23  ;;  %v168_v47 = vmul.f32 %v1883_v20, %v103_v46  ;;  %v1971_v23 = vld [vmem:[%s2299_s0 + $0x18] sm:$0xff] }
 0x250   :  { %43 = vst [vmem:[#allocation0 + $0x18] sm:$0xff] %v1971_v23 }
 0x251   :  { %v273_v26 = vsub.f32 1.5, %v272_v24 }
 0x253   :  { %v274_v27 = vmul.f32 %v1793_v21, %v273_v26 }
 0x255   :  { %v1930_v29 = vsel %vm277_vm7, %v1793_v21, %v274_v27  ;;  %vm400_vm7 = vcmask 48168  }
 0x256   :  { %v285_v31 = vmul.f32 %v284_v28, %v1930_v29  ;;  %v299_v36 = vmul.f32 %v298_v33, %v1930_v29 }
 0x258   :  { %v288_v32 = vsel %vm287_vm8, %v285_v31, 0.0  ;;  %v300_v38 = vsel %vm260_vm1, %v299_v36, 0.0  ;;  %vm426_vm8 = vcmask 1047557  }
 0x259   :  { %v289_v34 = vadd.f32 %v288_v32, %v219_v7  ;;  %v301_v41 = vadd.f32 %v300_v38, %v231_v10 }
 0x25b   :  { %290 = vst [vmem:[#allocation1] sm:$0xff] %v289_v34 }
 0x262   :  { %v1940_v42 = vld [vmem:[#allocation1 + $0x4] ss:$0 sm:$0xff] }
 0x263   :  { %v351_v43 = vmul.f32 %v1940_v42, %v289_v34  ;;  %v335_v44 = vmul.f32 %v1940_v42, %v1940_v42  ;;  %v365_v45 = vmul.f32 %v1940_v42, %v301_v41 }
 0x265   :  { %352 = vadd.xlane.f32.xlu2 %v351_v43  ;;  %336 = vadd.xlane.f32.xlu0 %v335_v44 }
 0x266   :  { %366 = vadd.xlane.f32.xlu1 %v365_v45 }
 0x26d   :  { %169 = vadd.xlane.f32.xlu0 %v168_v47 }
 0x2d8   :  { %v337_v50 = vpop.xlane.xlu0 %336  ;;  %v353_v62 = vpop.xlane.xlu2 %352 }
 0x2d9   :  { %v338_v51 = vsub.f32 %v334_v49, %v337_v50  ;;  %v354_v2 = vsub.f32 %v1869_v4, %v353_v62  ;;  %v367_v10 = vpop.xlane.xlu1 %366 }
 0x2da   :  { %v368_v12 = vsub.f32 %v1875_v5, %v367_v10 }
 0x2db   :  { %1794 = vrsqrt.f32 %v338_v51  ;;  %vm345_vm14 = vweird.f32 %v338_v51 }
 0x2e0   :  { %v170_v52 = vpop.xlane.xlu0 %169 }
 0x2e1   :  { %v1795_v53 = vpop.eup %1794  ;;  %v171_v54 = vsub.f32 %v1926_v15, %v170_v52 }
 0x2e2   :  { %v340_v55 = vmul.f32 %v1795_v53, %v338_v51  ;;  %vm346_vm9 = vweird.f32 %v1795_v53 }
 0x2e3   :  { %v172_v56 = vmul.f32 %v171_v54, %v1893_v39  ;;  %vm347_vm15 = vmor %vm345_vm14, %vm346_vm9 }
 0x2e4   :  { %v341_v57 = vmul.f32 %v1795_v53, %v340_v55 }
 0x2e5   :  { %v173_v58 = vsel %vm120_vm5, %v172_v56, 0.0 }
 0x2e6   :  { %v342_v59 = vmul.f32 0.5, %v341_v57  ;;  %v174_v60 = vadd.f32 %v173_v58, %v103_v46 }
 0x2e8   :  { %v343_v61 = vsub.f32 1.5, %v342_v59  ;;  %v238_v0 = vmul.f32 %v1901_v48, %v174_v60 }
 0x2ea   :  { %v344_v1 = vmul.f32 %v1795_v53, %v343_v61  ;;  %239 = vadd.xlane.f32.xlu1 %v238_v0 }
 0x2ec   :  { %v1953_v6 = vsel %vm347_vm15, %v1795_v53, %v344_v1  ;;  %vm427_vm15 = vmand %vm400_vm7, %vm426_vm8 }
 0x2ed   :  { %v355_v7 = vmul.f32 %v354_v2, %v1953_v6  ;;  %v369_v13 = vmul.f32 %v368_v12, %v1953_v6 }
 0x2ef   :  { %v358_v8 = vsel %vm357_vm0, %v355_v7, 0.0  ;;  %v370_v19 = vsel %vm330_vm10, %v369_v13, 0.0  ;;  %vm470_vm0 = vcmask 56368  }
 0x2f0   :  { %v359_v9 = vadd.f32 %v358_v8, %v289_v34  ;;  %v371_v21 = vadd.f32 %v370_v19, %v301_v41 }
 0x2f2   :  { %360 = vst [vmem:[#allocation1] sm:$0xff] %v359_v9 }
 0x2f9   :  { %v1960_v14 = vld [vmem:[#allocation1 + $0x5] ss:$0 sm:$0xff] }
 0x2fa   :  { %v421_v16 = vmul.f32 %v1960_v14, %v359_v9  ;;  %v405_v18 = vmul.f32 %v1960_v14, %v1960_v14  ;;  %v435_v22 = vmul.f32 %v1960_v14, %v371_v21 }
 0x2fc   :  { %422 = vadd.xlane.f32.xlu0 %v421_v16  ;;  %406 = vadd.xlane.f32.xlu2 %v405_v18  ;;  %v474_v16 = vld [vmem:[#allocation0 + $0x6] ss:$0 sm:$0xff] }
 0x304   :  { %112 = vadd.xlane.f32.xlu0 %v1862_v3  ;;  %436 = vadd.xlane.f32.xlu2 %v435_v22  ;;  %v404_v3 = vld [vmem:[#allocation0 + $0x5] ss:$0 sm:$0xff] }
 0x35d   :  { %v240_v24 = vpop.xlane.xlu1 %239 }
 0x35e   :  { %v241_v25 = vsub.f32 %v1926_v15, %v240_v24 }
 0x360   :  { %v242_v26 = vmul.f32 %v241_v25, %v1908_v63 }
 0x362   :  { %v243_v27 = vsel %vm190_vm11, %v242_v26, 0.0 }
 0x363   :  { %v244_v28 = vadd.f32 %v243_v27, %v174_v60 }
 0x365   :  { %v308_v30 = vmul.f32 %v1916_v11, %v244_v28 }
 0x367   :  { %309 = vadd.xlane.f32.xlu2 %v308_v30 }
 0x36f   :  { %v423_v31 = vpop.xlane.xlu0 %422  ;;  %v407_v32 = vpop.xlane.xlu2 %406 }
 0x370   :  { %v408_v33 = vsub.f32 %v404_v3, %v407_v32  ;;  %v424_v47 = vsub.f32 %v1869_v4, %v423_v31 }
 0x372   :  { %1796 = vrsqrt.f32 %v408_v33  ;;  %vm415_vm9 = vweird.f32 %v408_v33 }
 0x377   :  { %v113_v34 = vpop.xlane.xlu0 %112  ;;  %v437_v52 = vpop.xlane.xlu2 %436 }
 0x378   :  { %v1797_v35 = vpop.eup %1796  ;;  %v114_v36 = vsub.f32 %v1971_v23, %v113_v34 }
 0x379   :  { %v410_v37 = vmul.f32 %v1797_v35, %v408_v33  ;;  %vm416_vm4 = vweird.f32 %v1797_v35 }
 0x37a   :  { %v115_v38 = vmul.f32 %v114_v36, %v1879_v17  ;;  %vm417_vm14 = vmor %vm415_vm9, %vm416_vm4  ;;  %vm496_vm4 = vcmask 1047558  }
 0x37b   :  { %v411_v40 = vmul.f32 %v1797_v35, %v410_v37 }
 0x37c   :  { %v116_v41 = vsel %vm54_vm3, %v115_v38, 0.0 }
 0x37d   :  { %v412_v43 = vmul.f32 0.5, %v411_v40  ;;  %v181_v45 = vmul.f32 %v1883_v20, %v116_v41  ;;  %v438_v20 = vsub.f32 %v1875_v5, %v437_v52 }
 0x37f   :  { %v413_v44 = vsub.f32 1.5, %v412_v43  ;;  %182 = vadd.xlane.f32.xlu2 %v181_v45 }
 0x381   :  { %v414_v46 = vmul.f32 %v1797_v35, %v413_v44 }
 0x383   :  { %v1983_v49 = vsel %vm417_vm14, %v1797_v35, %v414_v46  ;;  %vm497_vm14 = vmand %vm470_vm0, %vm496_vm4 }
 0x384   :  { %v425_v17 = vmul.f32 %v424_v47, %v1983_v49  ;;  %v439_v53 = vmul.f32 %v438_v20, %v1983_v49 }
 0x386   :  { %v428_v50 = vsel %vm427_vm15, %v425_v17, 0.0  ;;  %v440_v57 = vsel %vm400_vm7, %v439_v53, 0.0  ;;  %v544_v53 = vld [vmem:[#allocation0 + $0x7] ss:$0 sm:$0xff] }
 0x387   :  { %v429_v51 = vadd.f32 %v428_v50, %v359_v9  ;;  %v441_v58 = vadd.f32 %v440_v57, %v371_v21 }
 0x389   :  { %430 = vst [vmem:[#allocation1] sm:$0xff] %v429_v51 }
 0x390   :  { %v1990_v54 = vld [vmem:[#allocation1 + $0x6] ss:$0 sm:$0xff] }
 0x391   :  { %v491_v55 = vmul.f32 %v1990_v54, %v429_v51  ;;  %v475_v56 = vmul.f32 %v1990_v54, %v1990_v54  ;;  %v505_v59 = vmul.f32 %v1990_v54, %v441_v58 }
 0x393   :  { %492 = vadd.xlane.f32.xlu0 %v491_v55  ;;  %476 = vadd.xlane.f32.xlu1 %v475_v56 }
 0x39b   :  { %506 = vadd.xlane.f32.xlu1 %v505_v59 }
 0x3da   :  { %v310_v60 = vpop.xlane.xlu2 %309 }
 0x3db   :  { %v311_v61 = vsub.f32 %v1926_v15, %v310_v60 }
 0x3dd   :  { %v312_v62 = vmul.f32 %v311_v61, %v1930_v29 }
 0x3df   :  { %v313_v0 = vsel %vm260_vm1, %v312_v62, 0.0 }
 0x3e0   :  { %v314_v1 = vadd.f32 %v313_v0, %v244_v28 }
 0x3e2   :  { %v378_v2 = vmul.f32 %v1940_v42, %v314_v1 }
 0x3e4   :  { %379 = vadd.xlane.f32.xlu0 %v378_v2 }
 0x3f2   :  { %v183_v7 = vpop.xlane.xlu2 %182 }
 0x3f3   :  { %v184_v8 = vsub.f32 %v1971_v23, %v183_v7 }
 0x3f5   :  { %v185_v9 = vmul.f32 %v184_v8, %v1893_v39 }
 0x3f7   :  { %v186_v10 = vsel %vm120_vm5, %v185_v9, 0.0 }
 0x3f8   :  { %v187_v12 = vadd.f32 %v186_v10, %v116_v41 }
 0x3fa   :  { %v251_v13 = vmul.f32 %v1901_v48, %v187_v12 }
 0x3fc   :  { %252 = vadd.xlane.f32.xlu0 %v251_v13 }
 0x406   :  { %v477_v18 = vpop.xlane.xlu1 %476  ;;  %v493_v26 = vpop.xlane.xlu0 %492 }
 0x407   :  { %v478_v19 = vsub.f32 %v474_v16, %v477_v18  ;;  %v494_v28 = vsub.f32 %v1869_v4, %v493_v26 }
 0x409   :  { %1798 = vrsqrt.f32 %v478_v19  ;;  %vm485_vm9 = vweird.f32 %v478_v19 }
 0x40e   :  { %v507_v30 = vpop.xlane.xlu1 %506 }
 0x40f   :  { %v1799_v21 = vpop.eup %1798  ;;  %v508_v32 = vsub.f32 %v1875_v5, %v507_v30 }
 0x410   :  { %v480_v22 = vmul.f32 %v1799_v21, %v478_v19  ;;  %vm486_vm3 = vweird.f32 %v1799_v21 }
 0x411   :  { %vm487_vm5 = vmor %vm485_vm9, %vm486_vm3  ;;  %vm540_vm9 = vcmask 64568  }
 0x412   :  { %v481_v24 = vmul.f32 %v1799_v21, %v480_v22 }
 0x414   :  { %v482_v25 = vmul.f32 0.5, %v481_v24 }
 0x416   :  { %v483_v27 = vsub.f32 1.5, %v482_v25 }
 0x418   :  { %v484_v39 = vmul.f32 %v1799_v21, %v483_v27 }
 0x41a   :  { %v2006_v48 = vsel %vm487_vm5, %v1799_v21, %v484_v39 }
 0x41b   :  { %v495_v3 = vmul.f32 %v494_v28, %v2006_v48  ;;  %v509_v34 = vmul.f32 %v508_v32, %v2006_v48  ;;  %v614_v28 = vld [vmem:[#allocation0 + $0x8] ss:$0 sm:$0xff] }
 0x41d   :  { %v498_v31 = vsel %vm497_vm14, %v495_v3, 0.0  ;;  %v510_v35 = vsel %vm470_vm0, %v509_v34, 0.0 }
 0x41e   :  { %v499_v33 = vadd.f32 %v498_v31, %v429_v51  ;;  %v511_v36 = vadd.f32 %v510_v35, %v441_v58 }
 0x420   :  { %500 = vst [vmem:[#allocation1] sm:$0xff] %v499_v33 }
 0x427   :  { %v2014_v4 = vld [vmem:[#allocation1 + $0x7] ss:$0 sm:$0xff] }
 0x428   :  { %v545_v37 = vmul.f32 %v2014_v4, %v2014_v4  ;;  %v575_v38 = vmul.f32 %v2014_v4, %v511_v36 }
 0x42a   :  { %546 = vadd.xlane.f32.xlu1 %v545_v37  ;;  %576 = vadd.xlane.f32.xlu2 %v575_v38 }
 0x457   :  { %v380_v40 = vpop.xlane.xlu0 %379 }
 0x458   :  { %v381_v41 = vsub.f32 %v1926_v15, %v380_v40 }
 0x45a   :  { %v382_v43 = vmul.f32 %v381_v41, %v1953_v6 }
 0x45c   :  { %v383_v44 = vsel %vm330_vm10, %v382_v43, 0.0 }
 0x45d   :  { %v384_v45 = vadd.f32 %v383_v44, %v314_v1 }
 0x45f   :  { %v448_v46 = vmul.f32 %v1960_v14, %v384_v45 }
 0x461   :  { %449 = vadd.xlane.f32.xlu1 %v448_v46 }
 0x46f   :  { %v253_v47 = vpop.xlane.xlu0 %252 }
 0x470   :  { %v254_v17 = vsub.f32 %v1971_v23, %v253_v47 }
 0x472   :  { %v255_v50 = vmul.f32 %v254_v17, %v1908_v63 }
 0x474   :  { %v256_v51 = vsel %vm190_vm11, %v255_v50, 0.0 }
 0x475   :  { %v257_v52 = vadd.f32 %v256_v51, %v187_v12 }
 0x477   :  { %v321_v20 = vmul.f32 %v1916_v11, %v257_v52 }
 0x479   :  { %322 = vadd.xlane.f32.xlu0 %v321_v20 }
 0x49d   :  { %v547_v55 = vpop.xlane.xlu1 %546  ;;  %v577_v61 = vpop.xlane.xlu2 %576 }
 0x49e   :  { %v548_v56 = vsub.f32 %v544_v53, %v547_v55  ;;  %v578_v63 = vsub.f32 %v1875_v5, %v577_v61 }
 0x4a0   :  { %1800 = vrsqrt.f32 %v548_v56  ;;  %vm555_vm3 = vweird.f32 %v548_v56 }
 0x4a6   :  { %v1801_v57 = vpop.eup %1800 }
 0x4a7   :  { %v550_v58 = vmul.f32 %v1801_v57, %v548_v56  ;;  %vm556_vm15 = vweird.f32 %v1801_v57 }
 0x4a8   :  { %vm557_vm11 = vmor %vm555_vm3, %vm556_vm15  ;;  %vm668_vm3 = vcmask 80968  }
 0x4a9   :  { %v551_v59 = vmul.f32 %v1801_v57, %v550_v58 }
 0x4ab   :  { %v552_v60 = vmul.f32 0.5, %v551_v59  ;;  %v672_v59 = vld [vmem:[#allocation0 + $0x9] ss:$0 sm:$0xff] }
 0x4ad   :  { %v553_v62 = vsub.f32 1.5, %v552_v60 }
 0x4af   :  { %v554_v0 = vmul.f32 %v1801_v57, %v553_v62 }
 0x4b1   :  { %v2028_v1 = vsel %vm557_vm11, %v1801_v57, %v554_v0 }
 0x4b2   :  { %v579_v11 = vmul.f32 %v578_v63, %v2028_v1 }
 0x4b4   :  { %v580_v2 = vsel %vm540_vm9, %v579_v11, 0.0 }
 0x4b5   :  { %v581_v7 = vadd.f32 %v580_v2, %v511_v36 }
 0x4b7   :  { %583 = vst [vmem:[#allocation1 + $0x8] sm:$0xff] %v581_v7 }
 0x4be   :  { %v2032_v8 = vld [vmem:[#allocation1 + $0x8] ss:$0 sm:$0xff] }
 0x4bf   :  { %v633_v9 = vmul.f32 %v2032_v8, %v581_v7  ;;  %v615_v10 = vmul.f32 %v2032_v8, %v2032_v8 }
 0x4c1   :  { %634 = vadd.xlane.f32.xlu1 %v633_v9  ;;  %616 = vadd.xlane.f32.xlu2 %v615_v10 }
 0x4d4   :  { %v450_v12 = vpop.xlane.xlu1 %449 }
 0x4d5   :  { %v451_v13 = vsub.f32 %v1926_v15, %v450_v12 }
 0x4d7   :  { %v452_v16 = vmul.f32 %v451_v13, %v1983_v49 }
 0x4d9   :  { %v453_v18 = vsel %vm400_vm7, %v452_v16, 0.0 }
 0x4da   :  { %v454_v19 = vadd.f32 %v453_v18, %v384_v45 }
 0x4dc   :  { %v518_v21 = vmul.f32 %v1990_v54, %v454_v19 }
 0x4de   :  { %519 = vadd.xlane.f32.xlu2 %v518_v21 }
 0x4ec   :  { %v323_v22 = vpop.xlane.xlu0 %322 }
 0x4ed   :  { %v324_v24 = vsub.f32 %v1971_v23, %v323_v22 }
 0x4ef   :  { %v325_v25 = vmul.f32 %v324_v24, %v1930_v29 }
 0x4f1   :  { %v326_v26 = vsel %vm260_vm1, %v325_v25, 0.0  ;;  %vm610_vm1 = vcmask 72768  }
 0x4f2   :  { %v327_v27 = vadd.f32 %v326_v26, %v257_v52 }
 0x4f4   :  { %v391_v39 = vmul.f32 %v1940_v42, %v327_v27 }
 0x4f6   :  { %392 = vadd.xlane.f32.xlu0 %v391_v39 }
 0x534   :  { %v617_v30 = vpop.xlane.xlu2 %616  ;;  %v635_v36 = vpop.xlane.xlu1 %634 }
 0x535   :  { %v618_v3 = vsub.f32 %v614_v28, %v617_v30  ;;  %v636_v29 = vsub.f32 %v1875_v5, %v635_v36 }
 0x537   :  { %1802 = vrsqrt.f32 %v618_v3  ;;  %vm625_vm14 = vweird.f32 %v618_v3 }
 0x53d   :  { %v1803_v31 = vpop.eup %1802 }
 0x53e   :  { %v620_v32 = vmul.f32 %v1803_v31, %v618_v3  ;;  %vm626_vm5 = vweird.f32 %v1803_v31 }
 0x53f   :  { %vm627_vm15 = vmor %vm625_vm14, %vm626_vm5 }
 0x540   :  { %v621_v33 = vmul.f32 %v1803_v31, %v620_v32  ;;  %vm697_vm14 = vmand %vm668_vm3, %vm146_vm6 }
 0x542   :  { %v622_v34 = vmul.f32 0.5, %v621_v33 }
 0x544   :  { %v623_v35 = vsub.f32 1.5, %v622_v34 }
 0x546   :  { %v624_v37 = vmul.f32 %v1803_v31, %v623_v35 }
 0x548   :  { %v2046_v38 = vsel %vm627_vm15, %v1803_v31, %v624_v37  ;;  %vm728_vm15 = vcmask 89168  }
 0x549   :  { %v637_v42 = vmul.f32 %v636_v29, %v2046_v38  ;;  %v732_v29 = vld [vmem:[#allocation0 + $0xa] ss:$0 sm:$0xff] }
 0x54b   :  { %v638_v40 = vsel %vm610_vm1, %v637_v42, 0.0 }
 0x54c   :  { %v639_v41 = vadd.f32 %v638_v40, %v581_v7 }
 0x54e   :  { %641 = vst [vmem:[#allocation1 + $0x8] sm:$0xff] %v639_v41 }
 0x551   :  { %v520_v43 = vpop.xlane.xlu2 %519 }
 0x552   :  { %v521_v44 = vsub.f32 %v1926_v15, %v520_v43 }
 0x554   :  { %v522_v45 = vmul.f32 %v521_v44, %v2006_v48 }
 0x555   :  { %v2052_v46 = vld [vmem:[#allocation1 + $0x9] ss:$0 sm:$0xff] }
 0x556   :  { %v691_v47 = vmul.f32 %v2052_v46, %v639_v41  ;;  %v673_v17 = vmul.f32 %v2052_v46, %v2052_v46  ;;  %v523_v50 = vsel %vm470_vm0, %v522_v45, 0.0 }
 0x557   :  { %v524_v51 = vadd.f32 %v523_v50, %v454_v19 }
 0x558   :  { %692 = vadd.xlane.f32.xlu0 %v691_v47  ;;  %674 = vadd.xlane.f32.xlu1 %v673_v17 }
 0x559   :  { %v588_v52 = vmul.f32 %v2014_v4, %v524_v51 }
 0x55b   :  { %589 = vadd.xlane.f32.xlu2 %v588_v52 }
 0x569   :  { %v393_v20 = vpop.xlane.xlu0 %392 }
 0x56a   :  { %v394_v53 = vsub.f32 %v1971_v23, %v393_v20 }
 0x56c   :  { %v395_v55 = vmul.f32 %v394_v53, %v1953_v6 }
 0x56e   :  { %v396_v56 = vsel %vm330_vm10, %v395_v55, 0.0 }
 0x56f   :  { %v397_v57 = vadd.f32 %v396_v56, %v327_v27 }
 0x571   :  { %v461_v58 = vmul.f32 %v1960_v14, %v397_v57 }
 0x573   :  { %462 = vadd.xlane.f32.xlu1 %v461_v58 }
 0x5cb   :  { %v675_v60 = vpop.xlane.xlu1 %674  ;;  %v693_v12 = vpop.xlane.xlu0 %692 }
 0x5cc   :  { %v676_v61 = vsub.f32 %v672_v59, %v675_v60  ;;  %v694_v18 = vsub.f32 %v1875_v5, %v693_v12 }
 0x5ce   :  { %1804 = vrsqrt.f32 %v676_v61  ;;  %v590_v62 = vpop.xlane.xlu2 %589  ;;  %vm683_vm11 = vweird.f32 %v676_v61 }
 0x5cf   :  { %v591_v0 = vsub.f32 %v1926_v15, %v590_v62 }
 0x5d1   :  { %v592_v63 = vmul.f32 %v591_v0, %v2028_v1 }
 0x5d3   :  { %v593_v11 = vsel %vm540_vm9, %v592_v63, 0.0 }
 0x5d4   :  { %v1805_v2 = vpop.eup %1804  ;;  %v594_v7 = vadd.f32 %v593_v11, %v524_v51 }
 0x5d5   :  { %v678_v6 = vmul.f32 %v1805_v2, %v676_v61  ;;  %vm684_vm10 = vweird.f32 %v1805_v2 }
 0x5d6   :  { %v646_v9 = vmul.f32 %v2032_v8, %v594_v7  ;;  %vm685_vm5 = vmor %vm683_vm11, %vm684_vm10 }
 0x5d7   :  { %v679_v10 = vmul.f32 %v1805_v2, %v678_v6 }
 0x5d8   :  { %647 = vadd.xlane.f32.xlu2 %v646_v9 }
 0x5d9   :  { %v680_v14 = vmul.f32 0.5, %v679_v10 }
 0x5db   :  { %v681_v13 = vsub.f32 1.5, %v680_v14 }
 0x5dd   :  { %v682_v16 = vmul.f32 %v1805_v2, %v681_v13  ;;  %v792_v13 = vld [vmem:[#allocation0 + $0xb] ss:$0 sm:$0xff] }
 0x5df   :  { %v2070_v19 = vsel %vm685_vm5, %v1805_v2, %v682_v16 }
 0x5e0   :  { %v695_v21 = vmul.f32 %v694_v18, %v2070_v19 }
 0x5e2   :  { %v698_v22 = vsel %vm697_vm14, %v695_v21, 0.0  ;;  %vm788_vm14 = vcmask 97368  }
 0x5e3   :  { %v699_v24 = vadd.f32 %v698_v22, %v639_v41 }
 0x5e5   :  { %701 = vst [vmem:[#allocation1 + $0x8] sm:$0xff] %v699_v24 }
 0x5e6   :  { %v463_v25 = vpop.xlane.xlu1 %462 }
 0x5e7   :  { %v464_v26 = vsub.f32 %v1971_v23, %v463_v25 }
 0x5e9   :  { %v465_v27 = vmul.f32 %v464_v26, %v1983_v49 }
 0x5eb   :  { %v466_v3 = vsel %vm400_vm7, %v465_v27, 0.0  ;;  %v2109_v27 = vld [vmem:[#allocation0 + $0x8] sm:$0xff] }
 0x5ec   :  { %v2075_v39 = vld [vmem:[#allocation1 + $0xa] ss:$0 sm:$0xff]  ;;  %v467_v31 = vadd.f32 %v466_v3, %v397_v57 }
 0x5ed   :  { %v751_v28 = vmul.f32 %v2075_v39, %v699_v24  ;;  %v733_v30 = vmul.f32 %v2075_v39, %v2075_v39 }
 0x5ee   :  { %v531_v32 = vmul.f32 %v1990_v54, %v467_v31 }
 0x5ef   :  { %752 = vadd.xlane.f32.xlu1 %v751_v28  ;;  %734 = vadd.xlane.f32.xlu0 %v733_v30 }
 0x5f0   :  { %532 = vadd.xlane.f32.xlu2 %v531_v32 }
 0x64b   :  { %v648_v33 = vpop.xlane.xlu2 %647 }
 0x64c   :  { %v649_v34 = vsub.f32 %v1926_v15, %v648_v33 }
 0x64e   :  { %v650_v49 = vmul.f32 %v649_v34, %v2046_v38 }
 0x650   :  { %v651_v35 = vsel %vm610_vm1, %v650_v49, 0.0 }
 0x651   :  { %v652_v36 = vadd.f32 %v651_v35, %v594_v7 }
 0x653   :  { %v706_v37 = vmul.f32 %v2052_v46, %v652_v36 }
 0x655   :  { %707 = vadd.xlane.f32.xlu0 %v706_v37 }
 0x662   :  { %v735_v42 = vpop.xlane.xlu0 %734  ;;  %v753_v53 = vpop.xlane.xlu1 %752 }
 0x663   :  { %v736_v40 = vsub.f32 %v732_v29, %v735_v42  ;;  %v533_v41 = vpop.xlane.xlu2 %532  ;;  %v754_v56 = vsub.f32 %v1875_v5, %v753_v53 }
 0x664   :  { %v534_v43 = vsub.f32 %v1971_v23, %v533_v41 }
 0x665   :  { %1806 = vrsqrt.f32 %v736_v40  ;;  %vm743_vm10 = vweird.f32 %v736_v40 }
 0x666   :  { %v535_v54 = vmul.f32 %v534_v43, %v2006_v48 }
 0x668   :  { %v536_v44 = vsel %vm470_vm0, %v535_v54, 0.0  ;;  %vm757_vm0 = vmand %vm728_vm15, %vm216_vm12 }
 0x669   :  { %v537_v47 = vadd.f32 %v536_v44, %v467_v31 }
 0x66b   :  { %v1807_v45 = vpop.eup %1806  ;;  %v601_v50 = vmul.f32 %v2014_v4, %v537_v47 }
 0x66c   :  { %v738_v17 = vmul.f32 %v1807_v45, %v736_v40  ;;  %vm744_vm7 = vweird.f32 %v1807_v45 }
 0x66d   :  { %602 = vadd.xlane.f32.xlu2 %v601_v50  ;;  %vm745_vm11 = vmor %vm743_vm10, %vm744_vm7  ;;  %v852_v50 = vld [vmem:[#allocation0 + $0xc] ss:$0 sm:$0xff] }
 0x66e   :  { %v739_v51 = vmul.f32 %v1807_v45, %v738_v17 }
 0x670   :  { %v740_v52 = vmul.f32 0.5, %v739_v51 }
 0x672   :  { %v741_v20 = vsub.f32 1.5, %v740_v52 }
 0x674   :  { %v742_v55 = vmul.f32 %v1807_v45, %v741_v20 }
 0x676   :  { %v2091_v48 = vsel %vm745_vm11, %v1807_v45, %v742_v55  ;;  %vm817_vm11 = vmand %vm788_vm14, %vm286_vm2 }
 0x677   :  { %v755_v57 = vmul.f32 %v754_v56, %v2091_v48 }
 0x679   :  { %v758_v4 = vsel %vm757_vm0, %v755_v57, 0.0 }
 0x67a   :  { %v759_v58 = vadd.f32 %v758_v4, %v699_v24 }
 0x67c   :  { %761 = vst [vmem:[#allocation1 + $0x8] sm:$0xff] %v759_v58 }
 0x683   :  { %v2096_v59 = vld [vmem:[#allocation1 + $0xb] ss:$0 sm:$0xff] }
 0x684   :  { %v793_v60 = vmul.f32 %v2096_v59, %v2096_v59  ;;  %v811_v61 = vmul.f32 %v2096_v59, %v759_v58 }
 0x686   :  { %794 = vadd.xlane.f32.xlu1 %v793_v60  ;;  %812 = vadd.xlane.f32.xlu0 %v811_v61 }
 0x6c8   :  { %v708_v5 = vpop.xlane.xlu0 %707 }
 0x6c9   :  { %v709_v62 = vsub.f32 %v1926_v15, %v708_v5 }
 0x6cb   :  { %v710_v0 = vmul.f32 %v709_v62, %v2070_v19 }
 0x6cd   :  { %v711_v63 = vsel %vm668_vm3, %v710_v0, 0.0 }
 0x6ce   :  { %v712_v11 = vadd.f32 %v711_v63, %v652_v36 }
 0x6d0   :  { %v766_v2 = vmul.f32 %v2075_v39, %v712_v11 }
 0x6d2   :  { %767 = vadd.xlane.f32.xlu1 %v766_v2 }
 0x6e0   :  { %v603_v7 = vpop.xlane.xlu2 %602 }
 0x6e1   :  { %v604_v6 = vsub.f32 %v1971_v23, %v603_v7 }
 0x6e3   :  { %v605_v9 = vmul.f32 %v604_v6, %v2028_v1 }
 0x6e5   :  { %v606_v10 = vsel %vm540_vm9, %v605_v9, 0.0 }
 0x6e6   :  { %v607_v14 = vadd.f32 %v606_v10, %v537_v47 }
 0x6e8   :  { %v659_v12 = vmul.f32 %v2032_v8, %v607_v14 }
 0x6ea   :  { %660 = vadd.xlane.f32.xlu2 %v659_v12 }
 0x6f9   :  { %v795_v16 = vpop.xlane.xlu1 %794  ;;  %v813_v28 = vpop.xlane.xlu0 %812 }
 0x6fa   :  { %v796_v18 = vsub.f32 %v792_v13, %v795_v16  ;;  %v814_v8 = vsub.f32 %v2109_v27, %v813_v28 }
 0x6fc   :  { %1808 = vrsqrt.f32 %v796_v18  ;;  %vm803_vm7 = vweird.f32 %v796_v18 }
 0x702   :  { %v1809_v21 = vpop.eup %1808 }
 0x703   :  { %v798_v22 = vmul.f32 %v1809_v21, %v796_v18  ;;  %vm804_vm5 = vweird.f32 %v1809_v21 }
 0x704   :  { %vm805_vm10 = vmor %vm803_vm7, %vm804_vm5  ;;  %vm848_vm5 = vcmask 105568  }
 0x705   :  { %v799_v24 = vmul.f32 %v1809_v21, %v798_v22 }
 0x707   :  { %v800_v25 = vmul.f32 0.5, %v799_v24 }
 0x709   :  { %v801_v26 = vsub.f32 1.5, %v800_v25 }
 0x70b   :  { %v802_v30 = vmul.f32 %v1809_v21, %v801_v26 }
 0x70d   :  { %v2114_v3 = vsel %vm805_vm10, %v1809_v21, %v802_v30 }
 0x70e   :  { %v815_v31 = vmul.f32 %v814_v8, %v2114_v3 }
 0x710   :  { %v818_v32 = vsel %vm817_vm11, %v815_v31, 0.0 }
 0x711   :  { %v819_v33 = vadd.f32 %v818_v32, %v759_v58 }
 0x713   :  { %821 = vst [vmem:[#allocation1 + $0x8] sm:$0xff] %v819_v33 }
 0x71a   :  { %v2117_v34 = vld [vmem:[#allocation1 + $0xc] ss:$0 sm:$0xff] }
 0x71b   :  { %v853_v49 = vmul.f32 %v2117_v34, %v2117_v34  ;;  %v871_v35 = vmul.f32 %v2117_v34, %v819_v33 }
 0x71d   :  { %854 = vadd.xlane.f32.xlu0 %v853_v49  ;;  %872 = vadd.xlane.f32.xlu2 %v871_v35  ;;  %v2155_v49 = vld [vmem:[#allocation0 + $0x10] sm:$0xff] }
 0x745   :  { %v768_v36 = vpop.xlane.xlu1 %767 }
 0x746   :  { %v769_v37 = vsub.f32 %v1926_v15, %v768_v36 }
 0x748   :  { %v770_v29 = vmul.f32 %v769_v37, %v2091_v48 }
 0x74a   :  { %v771_v42 = vsel %vm728_vm15, %v770_v29, 0.0 }
 0x74b   :  { %v772_v40 = vadd.f32 %v771_v42, %v712_v11 }
 0x74d   :  { %v826_v41 = vmul.f32 %v2096_v59, %v772_v40 }
 0x74f   :  { %827 = vadd.xlane.f32.xlu1 %v826_v41 }
 0x75d   :  { %v661_v43 = vpop.xlane.xlu2 %660 }
 0x75e   :  { %v662_v54 = vsub.f32 %v1971_v23, %v661_v43 }
 0x760   :  { %v663_v44 = vmul.f32 %v662_v54, %v2046_v38 }
 0x762   :  { %v664_v45 = vsel %vm610_vm1, %v663_v44, 0.0  ;;  %vm877_vm1 = vmand %vm848_vm5, %vm356_vm13 }
 0x763   :  { %v665_v47 = vadd.f32 %v664_v45, %v607_v14 }
 0x765   :  { %v719_v17 = vmul.f32 %v2052_v46, %v665_v47 }
 0x767   :  { %720 = vadd.xlane.f32.xlu0 %v719_v17 }
 0x790   :  { %v855_v51 = vpop.xlane.xlu0 %854  ;;  %v873_v4 = vpop.xlane.xlu2 %872 }
 0x791   :  { %v856_v52 = vsub.f32 %v852_v50, %v855_v51  ;;  %v874_v58 = vsub.f32 %v2109_v27, %v873_v4 }
 0x793   :  { %1810 = vrsqrt.f32 %v856_v52  ;;  %vm863_vm7 = vweird.f32 %v856_v52 }
 0x799   :  { %v1811_v20 = vpop.eup %1810 }
 0x79a   :  { %v858_v53 = vmul.f32 %v1811_v20, %v856_v52  ;;  %vm864_vm0 = vweird.f32 %v1811_v20 }
 0x79b   :  { %vm865_vm10 = vmor %vm863_vm7, %vm864_vm0  ;;  %vm908_vm0 = vcmask 113768  }
 0x79c   :  { %v859_v55 = vmul.f32 %v1811_v20, %v858_v53  ;;  %v972_v53 = vld [vmem:[#allocation0 + $0xe] ss:$0 sm:$0xff] }
 0x79e   :  { %v860_v56 = vmul.f32 0.5, %v859_v55 }
 0x7a0   :  { %v861_v57 = vsub.f32 1.5, %v860_v56 }
 0x7a2   :  { %v862_v38 = vmul.f32 %v1811_v20, %v861_v57 }
 0x7a4   :  { %v2133_v46 = vsel %vm865_vm10, %v1811_v20, %v862_v38 }
 0x7a5   :  { %v875_v60 = vmul.f32 %v874_v58, %v2133_v46 }
 0x7a7   :  { %v878_v61 = vsel %vm877_vm1, %v875_v60, 0.0  ;;  %vm968_vm1 = vcmask 121968  }
 0x7a8   :  { %v879_v5 = vadd.f32 %v878_v61, %v819_v33 }
 0x7aa   :  { %881 = vst [vmem:[#allocation1 + $0x8] sm:$0xff] %v879_v5 }
 0x7b1   :  { %v2136_v62 = vld [vmem:[#allocation1 + $0xd] ss:$0 sm:$0xff] }
 0x7b2   :  { %v931_v0 = vmul.f32 %v2136_v62, %v879_v5  ;;  %v913_v63 = vmul.f32 %v2136_v62, %v2136_v62 }
 0x7b4   :  { %932 = vadd.xlane.f32.xlu0 %v931_v0  ;;  %914 = vadd.xlane.f32.xlu2 %v913_v63 }
 0x7c2   :  { %v828_v11 = vpop.xlane.xlu1 %827 }
 0x7c3   :  { %v829_v2 = vsub.f32 %v1926_v15, %v828_v11  ;;  %v912_v15 = vld [vmem:[#allocation0 + $0xd] ss:$0 sm:$0xff] }
 0x7c5   :  { %v830_v7 = vmul.f32 %v829_v2, %v2114_v3 }
 0x7c7   :  { %v831_v6 = vsel %vm788_vm14, %v830_v7, 0.0 }
 0x7c8   :  { %v832_v9 = vadd.f32 %v831_v6, %v772_v40 }
 0x7ca   :  { %v886_v10 = vmul.f32 %v2117_v34, %v832_v9 }
 0x7cc   :  { %887 = vadd.xlane.f32.xlu1 %v886_v10 }
 0x7da   :  { %v721_v14 = vpop.xlane.xlu0 %720 }
 0x7db   :  { %v722_v12 = vsub.f32 %v1971_v23, %v721_v14 }
 0x7dd   :  { %v723_v13 = vmul.f32 %v722_v12, %v2070_v19 }
 0x7df   :  { %v724_v16 = vsel %vm668_vm3, %v723_v13, 0.0  ;;  %vm937_vm3 = vmand %vm908_vm0, %vm426_vm8 }
 0x7e0   :  { %v725_v18 = vadd.f32 %v724_v16, %v665_v47 }
 0x7e2   :  { %v779_v21 = vmul.f32 %v2075_v39, %v725_v18 }
 0x7e4   :  { %780 = vadd.xlane.f32.xlu1 %v779_v21 }
 0x827   :  { %v915_v22 = vpop.xlane.xlu2 %914  ;;  %v933_v31 = vpop.xlane.xlu0 %932 }
 0x828   :  { %v916_v24 = vsub.f32 %v912_v15, %v915_v22  ;;  %v934_v32 = vsub.f32 %v2109_v27, %v933_v31 }
 0x82a   :  { %1812 = vrsqrt.f32 %v916_v24  ;;  %vm923_vm7 = vweird.f32 %v916_v24 }
 0x830   :  { %v1813_v25 = vpop.eup %1812 }
 0x831   :  { %v918_v26 = vmul.f32 %v1813_v25, %v916_v24  ;;  %vm924_vm11 = vweird.f32 %v1813_v25 }
 0x832   :  { %vm925_vm10 = vmor %vm923_vm7, %vm924_vm11 }
 0x833   :  { %v919_v28 = vmul.f32 %v1813_v25, %v918_v26 }
 0x835   :  { %v920_v30 = vmul.f32 0.5, %v919_v28 }
 0x837   :  { %v921_v8 = vsub.f32 1.5, %v920_v30  ;;  %v2192_v30 = vld [vmem:[#allocation0 + $0x18] sm:$0xff] }
 0x839   :  { %v922_v19 = vmul.f32 %v1813_v25, %v921_v8 }
 0x83b   :  { %v2150_v33 = vsel %vm925_vm10, %v1813_v25, %v922_v19  ;;  %vm997_vm10 = vmand %vm968_vm1, %vm496_vm4 }
 0x83c   :  { %v935_v39 = vmul.f32 %v934_v32, %v2150_v33 }
 0x83e   :  { %v938_v35 = vsel %vm937_vm3, %v935_v39, 0.0 }
 0x83f   :  { %v939_v36 = vadd.f32 %v938_v35, %v879_v5  ;;  %v888_v37 = vpop.xlane.xlu1 %887  ;;  %v1032_v35 = vld [vmem:[#allocation0 + $0xf] ss:$0 sm:$0xff] }
 0x840   :  { %v889_v29 = vsub.f32 %v2155_v49, %v888_v37 }
 0x841   :  { %941 = vst [vmem:[#allocation1 + $0x8] sm:$0xff] %v939_v36 }
 0x842   :  { %v890_v42 = vmul.f32 %v889_v29, %v2133_v46 }
 0x844   :  { %v891_v40 = vsel %vm848_vm5, %v890_v42, 0.0 }
 0x845   :  { %v892_v41 = vadd.f32 %v891_v40, %v832_v9 }
 0x847   :  { %v946_v43 = vmul.f32 %v2136_v62, %v892_v41 }
 0x848   :  { %v2161_v54 = vld [vmem:[#allocation1 + $0xe] ss:$0 sm:$0xff] }
 0x849   :  { %v973_v44 = vmul.f32 %v2161_v54, %v2161_v54  ;;  %947 = vadd.xlane.f32.xlu2 %v946_v43  ;;  %v991_v45 = vmul.f32 %v2161_v54, %v939_v36 }
 0x84b   :  { %974 = vadd.xlane.f32.xlu0 %v973_v44 }
 0x851   :  { %992 = vadd.xlane.f32.xlu2 %v991_v45 }
 0x857   :  { %v781_v47 = vpop.xlane.xlu1 %780 }
 0x858   :  { %v782_v17 = vsub.f32 %v1971_v23, %v781_v47 }
 0x85a   :  { %v783_v50 = vmul.f32 %v782_v17, %v2091_v48 }
 0x85c   :  { %v784_v51 = vsel %vm728_vm15, %v783_v50, 0.0 }
 0x85d   :  { %v785_v52 = vadd.f32 %v784_v51, %v725_v18 }
 0x85f   :  { %v839_v20 = vmul.f32 %v2096_v59, %v785_v52 }
 0x861   :  { %840 = vadd.xlane.f32.xlu1 %v839_v20 }
 0x8bc   :  { %v948_v55 = vpop.xlane.xlu2 %947 }
 0x8bd   :  { %v949_v56 = vsub.f32 %v2155_v49, %v948_v55 }
 0x8be   :  { %v975_v57 = vpop.xlane.xlu0 %974 }
 0x8bf   :  { %v976_v4 = vsub.f32 %v972_v53, %v975_v57  ;;  %v950_v38 = vmul.f32 %v949_v56, %v2150_v33 }
 0x8c1   :  { %1814 = vrsqrt.f32 %v976_v4  ;;  %v951_v58 = vsel %vm908_vm0, %v950_v38, 0.0  ;;  %vm983_vm11 = vweird.f32 %v976_v4 }
 0x8c2   :  { %v952_v60 = vadd.f32 %v951_v58, %v892_v41  ;;  %v1092_v58 = vld [vmem:[#allocation0 + $0x10] ss:$0 sm:$0xff] }
 0x8c4   :  { %v1006_v48 = vmul.f32 %v2161_v54, %v952_v60  ;;  %v993_v11 = vpop.xlane.xlu2 %992 }
 0x8c5   :  { %v994_v7 = vsub.f32 %v2109_v27, %v993_v11 }
 0x8c6   :  { %1007 = vadd.xlane.f32.xlu0 %v1006_v48 }
 0x8c7   :  { %v1815_v61 = vpop.eup %1814 }
 0x8c8   :  { %v978_v5 = vmul.f32 %v1815_v61, %v976_v4  ;;  %vm984_vm15 = vweird.f32 %v1815_v61 }
 0x8c9   :  { %vm985_vm7 = vmor %vm983_vm11, %vm984_vm15 }
 0x8ca   :  { %v979_v0 = vmul.f32 %v1815_v61, %v978_v5 }
 0x8cc   :  { %v980_v59 = vmul.f32 0.5, %v979_v0 }
 0x8ce   :  { %v981_v63 = vsub.f32 1.5, %v980_v59 }
 0x8d0   :  { %v982_v2 = vmul.f32 %v1815_v61, %v981_v63 }
 0x8d2   :  { %v2175_v6 = vsel %vm985_vm7, %v1815_v61, %v982_v2 }
 0x8d3   :  { %v995_v9 = vmul.f32 %v994_v7, %v2175_v6 }
 0x8d4   :  { %v841_v12 = vpop.xlane.xlu1 %840 }
 0x8d5   :  { %v998_v10 = vsel %vm997_vm10, %v995_v9, 0.0  ;;  %v842_v13 = vsub.f32 %v1971_v23, %v841_v12  ;;  %vm1088_vm10 = vcmask 138368  }
 0x8d6   :  { %v999_v14 = vadd.f32 %v998_v10, %v939_v36 }
 0x8d7   :  { %v843_v16 = vmul.f32 %v842_v13, %v2114_v3 }
 0x8d8   :  { %1001 = vst [vmem:[#allocation1 + $0x8] sm:$0xff] %v999_v14 }
 0x8d9   :  { %v844_v18 = vsel %vm788_vm14, %v843_v16, 0.0 }
 0x8da   :  { %v845_v21 = vadd.f32 %v844_v18, %v785_v52 }
 0x8dc   :  { %v899_v27 = vmul.f32 %v2117_v34, %v845_v21 }
 0x8de   :  { %900 = vadd.xlane.f32.xlu1 %v899_v27 }
 0x8df   :  { %v2184_v15 = vld [vmem:[#allocation1 + $0xf] ss:$0 sm:$0xff] }
 0x8e0   :  { %v1033_v22 = vmul.f32 %v2184_v15, %v2184_v15 }
 0x8e2   :  { %1034 = vadd.xlane.f32.xlu2 %v1033_v22 }
 0x939   :  { %v1008_v24 = vpop.xlane.xlu0 %1007 }
 0x93a   :  { %v1009_v25 = vsub.f32 %v2155_v49, %v1008_v24 }
 0x93c   :  { %v1010_v23 = vmul.f32 %v1009_v25, %v2175_v6 }
 0x93e   :  { %v1011_v26 = vsel %vm968_vm1, %v1010_v23, 0.0 }
 0x93f   :  { %v1012_v3 = vadd.f32 %v1011_v26, %v952_v60 }
 0x941   :  { %v1066_v28 = vmul.f32 %v2184_v15, %v1012_v3 }
 0x943   :  { %1067 = vadd.xlane.f32.xlu0 %v1066_v28 }
 0x951   :  { %v901_v34 = vpop.xlane.xlu1 %900 }
 0x952   :  { %v902_v8 = vsub.f32 %v2192_v30, %v901_v34 }
 0x954   :  { %v903_v31 = vmul.f32 %v902_v8, %v2133_v46 }
 0x955   :  { %v1035_v36 = vpop.xlane.xlu2 %1034 }
 0x956   :  { %v904_v19 = vsel %vm848_vm5, %v903_v31, 0.0  ;;  %v1036_v37 = vsub.f32 %v1032_v35, %v1035_v36  ;;  %vm1028_vm5 = vcmask 130168  }
 0x957   :  { %v905_v32 = vadd.f32 %v904_v19, %v845_v21 }
 0x958   :  { %1816 = vrsqrt.f32 %v1036_v37  ;;  %vm1043_vm3 = vweird.f32 %v1036_v37 }
 0x959   :  { %v959_v39 = vmul.f32 %v2136_v62, %v905_v32 }
 0x95b   :  { %960 = vadd.xlane.f32.xlu1 %v959_v39 }
 0x95e   :  { %v1817_v29 = vpop.eup %1816 }
 0x95f   :  { %v1038_v42 = vmul.f32 %v1817_v29, %v1036_v37  ;;  %vm1044_vm14 = vweird.f32 %v1817_v29 }
 0x960   :  { %vm1045_vm15 = vmor %vm1043_vm3, %vm1044_vm14  ;;  %vm1133_vm14 = vcmask 146568  }
 0x961   :  { %v1039_v40 = vmul.f32 %v1817_v29, %v1038_v42 }
 0x963   :  { %v1040_v41 = vmul.f32 0.5, %v1039_v40 }
 0x965   :  { %v1041_v43 = vsub.f32 1.5, %v1040_v41 }
 0x967   :  { %v1042_v44 = vmul.f32 %v1817_v29, %v1041_v43 }
 0x969   :  { %v2199_v47 = vsel %vm1045_vm15, %v1817_v29, %v1042_v44 }
 0x9b6   :  { %v1068_v45 = vpop.xlane.xlu0 %1067 }
 0x9b7   :  { %v1069_v46 = vsub.f32 %v2155_v49, %v1068_v45 }
 0x9b9   :  { %v1070_v62 = vmul.f32 %v1069_v46, %v2199_v47 }
 0x9bb   :  { %v1071_v17 = vsel %vm1028_vm5, %v1070_v62, 0.0 }
 0x9bc   :  { %v1072_v50 = vadd.f32 %v1071_v17, %v1012_v3  ;;  %v1137_v3 = vld [vmem:[#allocation0 + $0x11] ss:$0 sm:$0xff] }
 0x9be   :  { %1074 = vst [vmem:[#allocation1 + $0x10] sm:$0xff] %v1072_v50 }
 0x9c5   :  { %v1090_v51 = vld [vmem:[#allocation1 + $0x10] ss:$0 sm:$0xff] }
 0x9c6   :  { %v1111_v52 = vmul.f32 %v1090_v51, %v1072_v50  ;;  %v1093_v20 = vmul.f32 %v1090_v51, %v1090_v51 }
 0x9c8   :  { %1112 = vadd.xlane.f32.xlu0 %v1111_v52  ;;  %1094 = vadd.xlane.f32.xlu2 %v1093_v20 }
 0x9ce   :  { %v961_v53 = vpop.xlane.xlu1 %960 }
 0x9cf   :  { %v962_v55 = vsub.f32 %v2192_v30, %v961_v53 }
 0x9d1   :  { %v963_v56 = vmul.f32 %v962_v55, %v2150_v33  ;;  %v1184_v55 = vld [vmem:[#allocation0 + $0x12] ss:$0 sm:$0xff] }
 0x9d3   :  { %v964_v57 = vsel %vm908_vm0, %v963_v56, 0.0 }
 0x9d4   :  { %v965_v4 = vadd.f32 %v964_v57, %v905_v32 }
 0x9d6   :  { %v1019_v38 = vmul.f32 %v2161_v54, %v965_v4 }
 0x9d8   :  { %1020 = vadd.xlane.f32.xlu1 %v1019_v38 }
 0xa3b   :  { %v1095_v60 = vpop.xlane.xlu2 %1094  ;;  %v1113_v63 = vpop.xlane.xlu0 %1112 }
 0xa3c   :  { %v1096_v48 = vsub.f32 %v1092_v58, %v1095_v60  ;;  %v1114_v7 = vsub.f32 %v2155_v49, %v1113_v63 }
 0xa3e   :  { %1818 = vrsqrt.f32 %v1096_v48  ;;  %vm1103_vm7 = vweird.f32 %v1096_v48 }
 0xa44   :  { %v1819_v61 = vpop.eup %1818 }
 0xa45   :  { %v1098_v5 = vmul.f32 %v1819_v61, %v1096_v48  ;;  %vm1104_vm11 = vweird.f32 %v1819_v61 }
 0xa46   :  { %vm1105_vm0 = vmor %vm1103_vm7, %vm1104_vm11 }
 0xa47   :  { %v1099_v0 = vmul.f32 %v1819_v61, %v1098_v5  ;;  %vm1162_vm11 = vmand %vm1133_vm14, %vm146_vm6 }
 0xa49   :  { %v1100_v59 = vmul.f32 0.5, %v1099_v0 }
 0xa4b   :  { %v1101_v11 = vsub.f32 1.5, %v1100_v59  ;;  %v1021_v33 = vpop.xlane.xlu1 %1020 }
 0xa4c   :  { %v1022_v54 = vsub.f32 %v2192_v30, %v1021_v33 }
 0xa4d   :  { %v1102_v2 = vmul.f32 %v1819_v61, %v1101_v11 }
 0xa4e   :  { %v1023_v14 = vmul.f32 %v1022_v54, %v2175_v6 }
 0xa4f   :  { %v1106_v9 = vsel %vm1105_vm0, %v1819_v61, %v1102_v2  ;;  %vm1180_vm0 = vcmask 154768  }
 0xa50   :  { %v1115_v10 = vmul.f32 %v1114_v7, %v1106_v9  ;;  %v1024_v13 = vsel %vm968_vm1, %v1023_v14, 0.0 }
 0xa51   :  { %v1025_v18 = vadd.f32 %v1024_v13, %v965_v4 }
 0xa52   :  { %v1116_v12 = vsel %vm1088_vm10, %v1115_v10, 0.0 }
 0xa53   :  { %v1117_v16 = vadd.f32 %v1116_v12, %v1072_v50  ;;  %v1079_v21 = vmul.f32 %v2184_v15, %v1025_v18 }
 0xa55   :  { %1119 = vst [vmem:[#allocation1 + $0x10] sm:$0xff] %v1117_v16  ;;  %1080 = vadd.xlane.f32.xlu0 %v1079_v21 }
 0xa5c   :  { %v1135_v27 = vld [vmem:[#allocation1 + $0x11] ss:$0 sm:$0xff] }
 0xa5d   :  { %v1138_v22 = vmul.f32 %v1135_v27, %v1135_v27  ;;  %v1156_v24 = vmul.f32 %v1135_v27, %v1117_v16 }
 0xa5f   :  { %1139 = vadd.xlane.f32.xlu2 %v1138_v22  ;;  %1157 = vadd.xlane.f32.xlu1 %v1156_v24 }
 0xac8   :  { %v1081_v25 = vpop.xlane.xlu0 %1080 }
 0xac9   :  { %v1082_v23 = vsub.f32 %v2192_v30, %v1081_v25 }
 0xacb   :  { %v1083_v6 = vmul.f32 %v1082_v23, %v2199_v47 }
 0xacd   :  { %v1084_v26 = vsel %vm1028_vm5, %v1083_v6, 0.0 }
 0xace   :  { %v1085_v28 = vadd.f32 %v1084_v26, %v1025_v18  ;;  %v1231_v18 = vld [vmem:[#allocation0 + $0x13] ss:$0 sm:$0xff] }
 0xad0   :  { %v1124_v8 = vmul.f32 %v1090_v51, %v1085_v28 }
 0xad2   :  { %v1140_v34 = vpop.xlane.xlu2 %1139  ;;  %1125 = vadd.xlane.f32.xlu2 %v1124_v8  ;;  %v1158_v37 = vpop.xlane.xlu1 %1157 }
 0xad3   :  { %v1141_v31 = vsub.f32 %v1137_v3, %v1140_v34  ;;  %v1159_v42 = vsub.f32 %v2155_v49, %v1158_v37 }
 0xad5   :  { %1820 = vrsqrt.f32 %v1141_v31  ;;  %vm1148_vm3 = vweird.f32 %v1141_v31 }
 0xadb   :  { %v1821_v19 = vpop.eup %1820 }
 0xadc   :  { %v1143_v32 = vmul.f32 %v1821_v19, %v1141_v31  ;;  %vm1149_vm1 = vweird.f32 %v1821_v19 }
 0xadd   :  { %vm1150_vm15 = vmor %vm1148_vm3, %vm1149_vm1 }
 0xade   :  { %v1144_v39 = vmul.f32 %v1821_v19, %v1143_v32  ;;  %vm1209_vm3 = vmand %vm1180_vm0, %vm216_vm12 }
 0xae0   :  { %v1145_v35 = vmul.f32 0.5, %v1144_v39 }
 0xae2   :  { %v1146_v36 = vsub.f32 1.5, %v1145_v35 }
 0xae4   :  { %v1147_v29 = vmul.f32 %v1821_v19, %v1146_v36 }
 0xae6   :  { %v1151_v40 = vsel %vm1150_vm15, %v1821_v19, %v1147_v29 }
 0xae7   :  { %v1160_v41 = vmul.f32 %v1159_v42, %v1151_v40 }
 0xae9   :  { %v1163_v43 = vsel %vm1162_vm11, %v1160_v41, 0.0  ;;  %vm1227_vm11 = vcmask 162968  }
 0xaea   :  { %v1164_v44 = vadd.f32 %v1163_v43, %v1117_v16  ;;  %v1278_v43 = vld [vmem:[#allocation0 + $0x14] ss:$0 sm:$0xff] }
 0xaec   :  { %1166 = vst [vmem:[#allocation1 + $0x10] sm:$0xff] %v1164_v44 }
 0xaf3   :  { %v1182_v45 = vld [vmem:[#allocation1 + $0x12] ss:$0 sm:$0xff] }
 0xaf4   :  { %v1203_v46 = vmul.f32 %v1182_v45, %v1164_v44  ;;  %v1185_v62 = vmul.f32 %v1182_v45, %v1182_v45 }
 0xaf6   :  { %1204 = vadd.xlane.f32.xlu1 %v1203_v46  ;;  %1186 = vadd.xlane.f32.xlu0 %v1185_v62 }
 0xb45   :  { %v1126_v17 = vpop.xlane.xlu2 %1125 }
 0xb46   :  { %v1127_v50 = vsub.f32 %v2192_v30, %v1126_v17 }
 0xb48   :  { %v1128_v51 = vmul.f32 %v1127_v50, %v1106_v9 }
 0xb4a   :  { %v1129_v52 = vsel %vm1088_vm10, %v1128_v51, 0.0 }
 0xb4b   :  { %v1130_v20 = vadd.f32 %v1129_v52, %v1085_v28 }
 0xb4d   :  { %v1171_v53 = vmul.f32 %v1135_v27, %v1130_v20 }
 0xb4f   :  { %1172 = vadd.xlane.f32.xlu2 %v1171_v53 }
 0xb69   :  { %v1187_v56 = vpop.xlane.xlu0 %1186  ;;  %v1205_v48 = vpop.xlane.xlu1 %1204 }
 0xb6a   :  { %v1188_v57 = vsub.f32 %v1184_v55, %v1187_v56  ;;  %v1206_v0 = vsub.f32 %v2155_v49, %v1205_v48 }
 0xb6c   :  { %1822 = vrsqrt.f32 %v1188_v57  ;;  %vm1195_vm1 = vweird.f32 %v1188_v57 }
 0xb72   :  { %v1823_v4 = vpop.eup %1822 }
 0xb73   :  { %v1190_v38 = vmul.f32 %v1823_v4, %v1188_v57  ;;  %vm1196_vm7 = vweird.f32 %v1823_v4 }
 0xb74   :  { %vm1197_vm10 = vmor %vm1195_vm1, %vm1196_vm7 }
 0xb75   :  { %v1191_v58 = vmul.f32 %v1823_v4, %v1190_v38  ;;  %vm1256_vm1 = vmand %vm1227_vm11, %vm286_vm2 }
 0xb77   :  { %v1192_v60 = vmul.f32 0.5, %v1191_v58 }
 0xb79   :  { %v1193_v61 = vsub.f32 1.5, %v1192_v60 }
 0xb7b   :  { %v1194_v5 = vmul.f32 %v1823_v4, %v1193_v61 }
 0xb7d   :  { %v1198_v59 = vsel %vm1197_vm10, %v1823_v4, %v1194_v5 }
 0xb7e   :  { %v1207_v63 = vmul.f32 %v1206_v0, %v1198_v59 }
 0xb80   :  { %v1210_v11 = vsel %vm1209_vm3, %v1207_v63, 0.0  ;;  %vm1274_vm3 = vcmask 171168  }
 0xb81   :  { %v1211_v2 = vadd.f32 %v1210_v11, %v1164_v44  ;;  %v1325_v11 = vld [vmem:[#allocation0 + $0x15] ss:$0 sm:$0xff] }
 0xb83   :  { %1213 = vst [vmem:[#allocation1 + $0x10] sm:$0xff] %v1211_v2 }
 0xb8a   :  { %v1229_v33 = vld [vmem:[#allocation1 + $0x13] ss:$0 sm:$0xff] }
 0xb8b   :  { %v1250_v7 = vmul.f32 %v1229_v33, %v1211_v2  ;;  %v1232_v54 = vmul.f32 %v1229_v33, %v1229_v33 }
 0xb8d   :  { %1251 = vadd.xlane.f32.xlu1 %v1250_v7  ;;  %1233 = vadd.xlane.f32.xlu0 %v1232_v54 }
 0xbc2   :  { %v1173_v9 = vpop.xlane.xlu2 %1172 }
 0xbc3   :  { %v1174_v10 = vsub.f32 %v2192_v30, %v1173_v9 }
 0xbc5   :  { %v1175_v14 = vmul.f32 %v1174_v10, %v1151_v40 }
 0xbc7   :  { %v1176_v12 = vsel %vm1133_vm14, %v1175_v14, 0.0 }
 0xbc8   :  { %v1177_v13 = vadd.f32 %v1176_v12, %v1130_v20 }
 0xbca   :  { %v1218_v16 = vmul.f32 %v1182_v45, %v1177_v13 }
 0xbcc   :  { %1219 = vadd.xlane.f32.xlu2 %v1218_v16 }
 0xc00   :  { %v1234_v21 = vpop.xlane.xlu0 %1233  ;;  %v1252_v6 = vpop.xlane.xlu1 %1251 }
 0xc01   :  { %v1235_v27 = vsub.f32 %v1231_v18, %v1234_v21  ;;  %v1253_v28 = vsub.f32 %v2155_v49, %v1252_v6 }
 0xc03   :  { %1824 = vrsqrt.f32 %v1235_v27  ;;  %vm1242_vm7 = vweird.f32 %v1235_v27 }
 0xc09   :  { %v1825_v22 = vpop.eup %1824 }
 0xc0a   :  { %v1237_v24 = vmul.f32 %v1825_v22, %v1235_v27  ;;  %vm1243_vm15 = vweird.f32 %v1825_v22 }
 0xc0b   :  { %vm1244_vm14 = vmor %vm1242_vm7, %vm1243_vm15 }
 0xc0c   :  { %v1238_v25 = vmul.f32 %v1825_v22, %v1237_v24  ;;  %vm1303_vm7 = vmand %vm1274_vm3, %vm356_vm13 }
 0xc0e   :  { %v1239_v23 = vmul.f32 0.5, %v1238_v25 }
 0xc10   :  { %v1240_v26 = vsub.f32 1.5, %v1239_v23 }
 0xc12   :  { %v1241_v3 = vmul.f32 %v1825_v22, %v1240_v26 }
 0xc14   :  { %v1245_v34 = vsel %vm1244_vm14, %v1825_v22, %v1241_v3 }
 0xc15   :  { %v1254_v8 = vmul.f32 %v1253_v28, %v1245_v34 }
 0xc17   :  { %v1257_v31 = vsel %vm1256_vm1, %v1254_v8, 0.0  ;;  %vm1321_vm1 = vcmask 179368  }
 0xc18   :  { %v1258_v19 = vadd.f32 %v1257_v31, %v1211_v2 }
 0xc1a   :  { %1260 = vst [vmem:[#allocation1 + $0x10] sm:$0xff] %v1258_v19 }
 0xc21   :  { %v1276_v32 = vld [vmem:[#allocation1 + $0x14] ss:$0 sm:$0xff] }
 0xc22   :  { %v1297_v39 = vmul.f32 %v1276_v32, %v1258_v19  ;;  %v1279_v35 = vmul.f32 %v1276_v32, %v1276_v32 }
 0xc24   :  { %1298 = vadd.xlane.f32.xlu2 %v1297_v39  ;;  %1280 = vadd.xlane.f32.xlu0 %v1279_v35 }
 0xc3f   :  { %v1220_v36 = vpop.xlane.xlu2 %1219 }
 0xc40   :  { %v1221_v37 = vsub.f32 %v2192_v30, %v1220_v36 }
 0xc42   :  { %v1222_v29 = vmul.f32 %v1221_v37, %v1198_v59  ;;  %v1372_v37 = vld [vmem:[#allocation0 + $0x16] ss:$0 sm:$0xff] }
 0xc44   :  { %v1223_v42 = vsel %vm1180_vm0, %v1222_v29, 0.0 }
 0xc45   :  { %v1224_v40 = vadd.f32 %v1223_v42, %v1177_v13 }
 0xc47   :  { %v1265_v41 = vmul.f32 %v1229_v33, %v1224_v40 }
 0xc49   :  { %1266 = vadd.xlane.f32.xlu1 %v1265_v41 }
 0xc97   :  { %v1281_v44 = vpop.xlane.xlu0 %1280  ;;  %v1299_v51 = vpop.xlane.xlu2 %1298 }
 0xc98   :  { %v1282_v45 = vsub.f32 %v1278_v43, %v1281_v44  ;;  %v1300_v53 = vsub.f32 %v2155_v49, %v1299_v51 }
 0xc9a   :  { %1826 = vrsqrt.f32 %v1282_v45  ;;  %vm1289_vm15 = vweird.f32 %v1282_v45 }
 0xca0   :  { %v1827_v46 = vpop.eup %1826 }
 0xca1   :  { %v1284_v62 = vmul.f32 %v1827_v46, %v1282_v45  ;;  %vm1290_vm10 = vweird.f32 %v1827_v46 }
 0xca2   :  { %vm1291_vm0 = vmor %vm1289_vm15, %vm1290_vm10 }
 0xca3   :  { %v1285_v17 = vmul.f32 %v1827_v46, %v1284_v62  ;;  %vm1350_vm15 = vmand %vm1321_vm1, %vm426_vm8 }
 0xca5   :  { %v1286_v50 = vmul.f32 0.5, %v1285_v17 }
 0xca7   :  { %v1287_v52 = vsub.f32 1.5, %v1286_v50 }
 0xca9   :  { %v1288_v20 = vmul.f32 %v1827_v46, %v1287_v52 }
 0xcab   :  { %v1292_v55 = vsel %vm1291_vm0, %v1827_v46, %v1288_v20  ;;  %vm1368_vm0 = vcmask 187568  }
 0xcac   :  { %v1301_v56 = vmul.f32 %v1300_v53, %v1292_v55 }
 0xcae   :  { %v1304_v57 = vsel %vm1303_vm7, %v1301_v56, 0.0 }
 0xcaf   :  { %v1305_v4 = vadd.f32 %v1304_v57, %v1258_v19 }
 0xcb1   :  { %1307 = vst [vmem:[#allocation1 + $0x10] sm:$0xff] %v1305_v4 }
 0xcb8   :  { %v1323_v38 = vld [vmem:[#allocation1 + $0x15] ss:$0 sm:$0xff] }
 0xcb9   :  { %v1344_v58 = vmul.f32 %v1323_v38, %v1305_v4  ;;  %v1326_v60 = vmul.f32 %v1323_v38, %v1323_v38 }
 0xcbb   :  { %1345 = vadd.xlane.f32.xlu2 %v1344_v58  ;;  %1327 = vadd.xlane.f32.xlu1 %v1326_v60  ;;  %v1419_v60 = vld [vmem:[#allocation0 + $0x17] ss:$0 sm:$0xff] }
 0xcbc   :  { %v1267_v48 = vpop.xlane.xlu1 %1266 }
 0xcbd   :  { %v1268_v61 = vsub.f32 %v2192_v30, %v1267_v48 }
 0xcbf   :  { %v1269_v5 = vmul.f32 %v1268_v61, %v1245_v34 }
 0xcc1   :  { %v1270_v0 = vsel %vm1227_vm11, %v1269_v5, 0.0 }
 0xcc2   :  { %v1271_v59 = vadd.f32 %v1270_v0, %v1224_v40 }
 0xcc4   :  { %v1312_v63 = vmul.f32 %v1276_v32, %v1271_v59 }
 0xcc6   :  { %1313 = vadd.xlane.f32.xlu0 %v1312_v63 }
 0xd2e   :  { %v1328_v2 = vpop.xlane.xlu1 %1327  ;;  %v1346_v13 = vpop.xlane.xlu2 %1345 }
 0xd2f   :  { %v1329_v33 = vsub.f32 %v1325_v11, %v1328_v2  ;;  %v1347_v22 = vsub.f32 %v2155_v49, %v1346_v13 }
 0xd31   :  { %1828 = vrsqrt.f32 %v1329_v33  ;;  %vm1336_vm11 = vweird.f32 %v1329_v33 }
 0xd37   :  { %v1829_v7 = vpop.eup %1828 }
 0xd38   :  { %v1331_v54 = vmul.f32 %v1829_v7, %v1329_v33  ;;  %vm1337_vm14 = vweird.f32 %v1829_v7 }
 0xd39   :  { %v1314_v10 = vpop.xlane.xlu0 %1313  ;;  %vm1338_vm10 = vmor %vm1336_vm11, %vm1337_vm14 }
 0xd3a   :  { %v1332_v9 = vmul.f32 %v1829_v7, %v1331_v54  ;;  %v1315_v12 = vsub.f32 %v2192_v30, %v1314_v10 }
 0xd3c   :  { %v1333_v14 = vmul.f32 0.5, %v1332_v9  ;;  %v1316_v18 = vmul.f32 %v1315_v12, %v1292_v55 }
 0xd3e   :  { %v1334_v16 = vsub.f32 1.5, %v1333_v14  ;;  %v1317_v27 = vsel %vm1274_vm3, %v1316_v18, 0.0  ;;  %v1466_v18 = vld [vmem:[#allocation0 + $0x18] ss:$0 sm:$0xff] }
 0xd3f   :  { %v1318_v24 = vadd.f32 %v1317_v27, %v1271_v59 }
 0xd40   :  { %v1335_v21 = vmul.f32 %v1829_v7, %v1334_v16 }
 0xd41   :  { %v1359_v6 = vmul.f32 %v1323_v38, %v1318_v24 }
 0xd42   :  { %v1339_v25 = vsel %vm1338_vm10, %v1829_v7, %v1335_v21 }
 0xd43   :  { %v1348_v23 = vmul.f32 %v1347_v22, %v1339_v25  ;;  %1360 = vadd.xlane.f32.xlu0 %v1359_v6 }
 0xd45   :  { %v1351_v26 = vsel %vm1350_vm15, %v1348_v23, 0.0 }
 0xd46   :  { %v1352_v3 = vadd.f32 %v1351_v26, %v1305_v4 }
 0xd48   :  { %1354 = vst [vmem:[#allocation1 + $0x10] sm:$0xff] %v1352_v3 }
 0xd4f   :  { %v1370_v28 = vld [vmem:[#allocation1 + $0x16] ss:$0 sm:$0xff] }
 0xd50   :  { %v1391_v34 = vmul.f32 %v1370_v28, %v1352_v3  ;;  %v1373_v8 = vmul.f32 %v1370_v28, %v1370_v28 }
 0xd52   :  { %1392 = vadd.xlane.f32.xlu2 %v1391_v34  ;;  %1374 = vadd.xlane.f32.xlu1 %v1373_v8 }
 0xdb6   :  { %v1361_v31 = vpop.xlane.xlu0 %1360 }
 0xdb7   :  { %v1362_v19 = vsub.f32 %v2192_v30, %v1361_v31 }
 0xdb9   :  { %v1363_v32 = vmul.f32 %v1362_v19, %v1339_v25 }
 0xdbb   :  { %v1364_v39 = vsel %vm1321_vm1, %v1363_v32, 0.0  ;;  %vm1397_vm1 = vmand %vm1368_vm0, %vm496_vm4 }
 0xdbc   :  { %v1365_v35 = vadd.f32 %v1364_v39, %v1318_v24 }
 0xdbe   :  { %v1406_v36 = vmul.f32 %v1370_v28, %v1365_v35 }
 0xdc0   :  { %1407 = vadd.xlane.f32.xlu0 %v1406_v36  ;;  %v1498_v36 = vld [vmem:[#allocation0 + $0x19] ss:$0 sm:$0xff] }
 0xdc5   :  { %v1375_v29 = vpop.xlane.xlu1 %1374  ;;  %v1393_v45 = vpop.xlane.xlu2 %1392 }
 0xdc6   :  { %v1376_v42 = vsub.f32 %v1372_v37, %v1375_v29  ;;  %v1394_v17 = vsub.f32 %v2155_v49, %v1393_v45 }
 0xdc8   :  { %1830 = vrsqrt.f32 %v1376_v42  ;;  %vm1383_vm7 = vweird.f32 %v1376_v42 }
 0xdce   :  { %v1831_v40 = vpop.eup %1830 }
 0xdcf   :  { %v1378_v41 = vmul.f32 %v1831_v40, %v1376_v42  ;;  %vm1384_vm3 = vweird.f32 %v1831_v40 }
 0xdd0   :  { %vm1385_vm14 = vmor %vm1383_vm7, %vm1384_vm3  ;;  %vm1415_vm3 = vcmask 195768  }
 0xdd1   :  { %v1379_v43 = vmul.f32 %v1831_v40, %v1378_v41 }
 0xdd3   :  { %v1380_v44 = vmul.f32 0.5, %v1379_v43 }
 0xdd5   :  { %v1381_v46 = vsub.f32 1.5, %v1380_v44 }
 0xdd7   :  { %v1382_v62 = vmul.f32 %v1831_v40, %v1381_v46 }
 0xdd9   :  { %v1386_v50 = vsel %vm1385_vm14, %v1831_v40, %v1382_v62 }
 0xdda   :  { %v1395_v51 = vmul.f32 %v1394_v17, %v1386_v50 }
 0xddc   :  { %v1398_v52 = vsel %vm1397_vm1, %v1395_v51, 0.0  ;;  %vm1462_vm1 = vcmask 203968  }
 0xddd   :  { %v2246_v20 = vadd.f32 %v1398_v52, %v1352_v3 }
 0xddf   :  { %1401 = vst [vmem:[#allocation1 + $0x10] sm:$0xff] %v2246_v20 }
 0xde6   :  { %v2249_v53 = vld [vmem:[#allocation1 + $0x17] ss:$0 sm:$0xff] }
 0xde7   :  { %v1420_v55 = vmul.f32 %v2249_v53, %v2249_v53 }
 0xde9   :  { %1421 = vadd.xlane.f32.xlu1 %v1420_v55 }
 0xe33   :  { %v1408_v56 = vpop.xlane.xlu0 %1407 }
 0xe34   :  { %v1409_v49 = vsub.f32 %v2192_v30, %v1408_v56 }
 0xe36   :  { %v1410_v57 = vmul.f32 %v1409_v49, %v1386_v50 }
 0xe38   :  { %v1411_v4 = vsel %vm1368_vm0, %v1410_v57, 0.0  ;;  %v1532_v57 = vld [vmem:[#allocation0 + $0x1a] ss:$0 sm:$0xff] }
 0xe39   :  { %v1412_v38 = vadd.f32 %v1411_v4, %v1365_v35 }
 0xe3b   :  { %v1453_v58 = vmul.f32 %v2249_v53, %v1412_v38 }
 0xe3d   :  { %1454 = vadd.xlane.f32.xlu2 %v1453_v58 }
 0xe5c   :  { %v1422_v48 = vpop.xlane.xlu1 %1421 }
 0xe5d   :  { %v1423_v61 = vsub.f32 %v1419_v60, %v1422_v48 }
 0xe5f   :  { %1832 = vrsqrt.f32 %v1423_v61  ;;  %vm1430_vm10 = vweird.f32 %v1423_v61 }
 0xe65   :  { %v1833_v5 = vpop.eup %1832 }
 0xe66   :  { %v1425_v0 = vmul.f32 %v1833_v5, %v1423_v61  ;;  %vm1431_vm11 = vweird.f32 %v1833_v5 }
 0xe67   :  { %vm1432_vm15 = vmor %vm1430_vm10, %vm1431_vm11  ;;  %vm1494_vm10 = vcmask 212168  }
 0xe68   :  { %v1426_v59 = vmul.f32 %v1833_v5, %v1425_v0 }
 0xe6a   :  { %v1427_v63 = vmul.f32 0.5, %v1426_v59 }
 0xe6c   :  { %v1428_v11 = vsub.f32 1.5, %v1427_v63 }
 0xe6e   :  { %v1429_v2 = vmul.f32 %v1833_v5, %v1428_v11 }
 0xe70   :  { %v2257_v54 = vsel %vm1432_vm15, %v1833_v5, %v1429_v2 }
 0xeb0   :  { %v1455_v33 = vpop.xlane.xlu2 %1454 }
 0xeb1   :  { %v1456_v7 = vsub.f32 %v2192_v30, %v1455_v33 }
 0xeb3   :  { %v1457_v9 = vmul.f32 %v1456_v7, %v2257_v54 }
 0xeb5   :  { %v1458_v10 = vsel %vm1415_vm3, %v1457_v9, 0.0 }
 0xeb6   :  { %v1459_v14 = vadd.f32 %v1458_v10, %v1412_v38 }
 0xeb8   :  { %1461 = vst [vmem:[#allocation1 + $0x18] sm:$0xff] %v1459_v14 }
 0xebf   :  { %v1464_v12 = vld [vmem:[#allocation1 + $0x18] ss:$0 sm:$0xff] }
 0xec0   :  { %v1485_v13 = vmul.f32 %v1464_v12, %v1459_v14  ;;  %v1467_v16 = vmul.f32 %v1464_v12, %v1464_v12  ;;  %v1566_v12 = vld [vmem:[#allocation0 + $0x1b] ss:$0 sm:$0xff] }
 0xec2   :  { %1486 = vadd.xlane.f32.xlu1 %v1485_v13  ;;  %1468 = vadd.xlane.f32.xlu0 %v1467_v16 }
 0xf35   :  { %v1469_v21 = vpop.xlane.xlu0 %1468  ;;  %v1487_v6 = vpop.xlane.xlu1 %1486 }
 0xf36   :  { %v1470_v27 = vsub.f32 %v1466_v18, %v1469_v21  ;;  %v1488_v28 = vsub.f32 %v2192_v30, %v1487_v6 }
 0xf38   :  { %1834 = vrsqrt.f32 %v1470_v27  ;;  %vm1477_vm7 = vweird.f32 %v1470_v27 }
 0xf3e   :  { %v1835_v22 = vpop.eup %1834 }
 0xf3f   :  { %v1472_v24 = vmul.f32 %v1835_v22, %v1470_v27  ;;  %vm1478_vm0 = vweird.f32 %v1835_v22 }
 0xf40   :  { %vm1479_vm14 = vmor %vm1477_vm7, %vm1478_vm0 }
 0xf41   :  { %v1473_v25 = vmul.f32 %v1835_v22, %v1472_v24  ;;  %vm1523_vm7 = vmand %vm1494_vm10, %vm146_vm6 }
 0xf43   :  { %v1474_v23 = vmul.f32 0.5, %v1473_v25 }
 0xf45   :  { %v1475_v26 = vsub.f32 1.5, %v1474_v23 }
 0xf47   :  { %v1476_v3 = vmul.f32 %v1835_v22, %v1475_v26 }
 0xf49   :  { %v1480_v34 = vsel %vm1479_vm14, %v1835_v22, %v1476_v3  ;;  %vm1528_vm14 = vcmask 220368  }
 0xf4a   :  { %v1489_v8 = vmul.f32 %v1488_v28, %v1480_v34  ;;  %vm1557_vm10 = vmand %vm1528_vm14, %vm216_vm12  ;;  %vm1596_vm14 = vcmask 236768  }
 0xf4c   :  { %v1490_v31 = vsel %vm1462_vm1, %v1489_v8, 0.0 }
 0xf4d   :  { %v1491_v19 = vadd.f32 %v1490_v31, %v1459_v14 }
 0xf4f   :  { %1493 = vst [vmem:[#allocation1 + $0x18] sm:$0xff] %v1491_v19 }
 0xf56   :  { %v1496_v32 = vld [vmem:[#allocation1 + $0x19] ss:$0 sm:$0xff] }
 0xf57   :  { %v1517_v39 = vmul.f32 %v1496_v32, %v1491_v19  ;;  %v1499_v35 = vmul.f32 %v1496_v32, %v1496_v32  ;;  %v1600_v32 = vld [vmem:[#allocation0 + $0x1c] ss:$0 sm:$0xff] }
 0xf59   :  { %1518 = vadd.xlane.f32.xlu0 %v1517_v39  ;;  %1500 = vadd.xlane.f32.xlu2 %v1499_v35 }
 0xfcc   :  { %v1501_v37 = vpop.xlane.xlu2 %1500  ;;  %v1519_v44 = vpop.xlane.xlu0 %1518 }
 0xfcd   :  { %v1502_v29 = vsub.f32 %v1498_v36, %v1501_v37  ;;  %v1520_v62 = vsub.f32 %v2192_v30, %v1519_v44 }
 0xfcf   :  { %1836 = vrsqrt.f32 %v1502_v29  ;;  %vm1509_vm15 = vweird.f32 %v1502_v29 }
 0xfd5   :  { %v1837_v42 = vpop.eup %1836 }
 0xfd6   :  { %v1504_v40 = vmul.f32 %v1837_v42, %v1502_v29  ;;  %vm1510_vm11 = vweird.f32 %v1837_v42 }
 0xfd7   :  { %vm1511_vm0 = vmor %vm1509_vm15, %vm1510_vm11  ;;  %vm1562_vm15 = vcmask 228568  }
 0xfd8   :  { %v1505_v41 = vmul.f32 %v1837_v42, %v1504_v40 }
 0xfda   :  { %v1506_v43 = vmul.f32 0.5, %v1505_v41 }
 0xfdc   :  { %v1507_v45 = vsub.f32 1.5, %v1506_v43 }
 0xfde   :  { %v1508_v46 = vmul.f32 %v1837_v42, %v1507_v45 }
 0xfe0   :  { %v1512_v17 = vsel %vm1511_vm0, %v1837_v42, %v1508_v46 }
 0xfe1   :  { %v1521_v50 = vmul.f32 %v1520_v62, %v1512_v17 }
 0xfe3   :  { %v1524_v51 = vsel %vm1523_vm7, %v1521_v50, 0.0 }
 0xfe4   :  { %v1525_v52 = vadd.f32 %v1524_v51, %v1491_v19 }
 0xfe6   :  { %1527 = vst [vmem:[#allocation1 + $0x18] sm:$0xff] %v1525_v52 }
 0xfed   :  { %v1530_v55 = vld [vmem:[#allocation1 + $0x1a] ss:$0 sm:$0xff] }
 0xfee   :  { %v1551_v56 = vmul.f32 %v1530_v55, %v1525_v52  ;;  %v1533_v49 = vmul.f32 %v1530_v55, %v1530_v55  ;;  %v1634_v55 = vld [vmem:[#allocation0 + $0x1d] ss:$0 sm:$0xff] }
 0xff0   :  { %1552 = vadd.xlane.f32.xlu2 %v1551_v56  ;;  %1534 = vadd.xlane.f32.xlu1 %v1533_v49 }
0x1063   :  { %v1535_v4 = vpop.xlane.xlu1 %1534  ;;  %v1553_v5 = vpop.xlane.xlu2 %1552 }
0x1064   :  { %v1536_v38 = vsub.f32 %v1532_v57, %v1535_v4  ;;  %v1554_v63 = vsub.f32 %v2192_v30, %v1553_v5 }
0x1066   :  { %1838 = vrsqrt.f32 %v1536_v38  ;;  %vm1543_vm1 = vweird.f32 %v1536_v38 }
0x106c   :  { %v1839_v58 = vpop.eup %1838 }
0x106d   :  { %v1538_v60 = vmul.f32 %v1839_v58, %v1536_v38  ;;  %vm1544_vm6 = vweird.f32 %v1839_v58 }
0x106e   :  { %vm1545_vm11 = vmor %vm1543_vm1, %vm1544_vm6 }
0x106f   :  { %v1539_v48 = vmul.f32 %v1839_v58, %v1538_v60  ;;  %vm1591_vm6 = vmand %vm1562_vm15, %vm286_vm2 }
0x1071   :  { %v1540_v61 = vmul.f32 0.5, %v1539_v48 }
0x1073   :  { %v1541_v0 = vsub.f32 1.5, %v1540_v61 }
0x1075   :  { %v1542_v59 = vmul.f32 %v1839_v58, %v1541_v0 }
0x1077   :  { %v1546_v11 = vsel %vm1545_vm11, %v1839_v58, %v1542_v59 }
0x1078   :  { %v1555_v2 = vmul.f32 %v1554_v63, %v1546_v11 }
0x107a   :  { %v1558_v33 = vsel %vm1557_vm10, %v1555_v2, 0.0  ;;  %vm1625_vm10 = vmand %vm1596_vm14, %vm356_vm13 }
0x107b   :  { %v1559_v7 = vadd.f32 %v1558_v33, %v1525_v52 }
0x107d   :  { %1561 = vst [vmem:[#allocation1 + $0x18] sm:$0xff] %v1559_v7 }
0x1084   :  { %v1564_v9 = vld [vmem:[#allocation1 + $0x1b] ss:$0 sm:$0xff] }
0x1085   :  { %v1585_v10 = vmul.f32 %v1564_v9, %v1559_v7  ;;  %v1567_v14 = vmul.f32 %v1564_v9, %v1564_v9  ;;  %v1050_v9 = vld [vmem:[#allocation1 + $0x8] sm:$0xff] }
0x1087   :  { %1586 = vadd.xlane.f32.xlu1 %v1585_v10  ;;  %1568 = vadd.xlane.f32.xlu0 %v1567_v14  ;;  %v560_v10 = vld [vmem:[#allocation1] sm:$0xff]  ;;  %v1051_v14 = vmul.f32 %v1050_v9, %v2184_v15 }
0x10fa   :  { %v1569_v13 = vpop.xlane.xlu0 %1568  ;;  %v1587_v24 = vpop.xlane.xlu1 %1586 }
0x10fb   :  { %v1570_v16 = vsub.f32 %v1566_v12, %v1569_v13  ;;  %v1588_v6 = vsub.f32 %v2192_v30, %v1587_v24  ;;  %v1850_v12 = vld [vmem:[#allocation1 + $0x7] ss:$0 sm:$0xff] }
0x10fc   :  { %v561_v13 = vmul.f32 %v1850_v12, %v560_v10 }
0x10fd   :  { %1840 = vrsqrt.f32 %v1570_v16  ;;  %vm1577_vm0 = vweird.f32 %v1570_v16 }
0x1103   :  { %v1841_v18 = vpop.eup %1840 }
0x1104   :  { %v1572_v21 = vmul.f32 %v1841_v18, %v1570_v16  ;;  %vm1578_vm12 = vweird.f32 %v1841_v18 }
0x1105   :  { %vm1579_vm7 = vmor %vm1577_vm0, %vm1578_vm12  ;;  %vm1630_vm12 = vcmask 244968  }
0x1106   :  { %v1573_v27 = vmul.f32 %v1841_v18, %v1572_v21 }
0x1108   :  { %v1574_v22 = vmul.f32 0.5, %v1573_v27  ;;  %v1048_v27 = vld [vmem:[#allocation0 + $0x8] sm:$0xff] }
0x110a   :  { %v1575_v25 = vsub.f32 1.5, %v1574_v22  ;;  %v559_v22 = vld [vmem:[#allocation0] sm:$0xff] }
0x110c   :  { %v1576_v23 = vmul.f32 %v1841_v18, %v1575_v25 }
0x110e   :  { %v1580_v26 = vsel %vm1579_vm7, %v1841_v18, %v1576_v23  ;;  %vm1659_vm7 = vmand %vm1630_vm12, %vm426_vm8  ;;  %vm566_vm8 = vcmask 1047559  }
0x110f   :  { %v1589_v3 = vmul.f32 %v1588_v6, %v1580_v26 }
0x1111   :  { %v1592_v28 = vsel %vm1591_vm6, %v1589_v3, 0.0  ;;  %vm1057_vm6 = vmand %vm1028_vm5, %vm566_vm8  ;;  %vm1664_vm5 = vcmask 253168  }
0x1112   :  { %v1593_v34 = vadd.f32 %v1592_v28, %v1559_v7 }
0x1114   :  { %1595 = vst [vmem:[#allocation1 + $0x18] sm:$0xff] %v1593_v34 }
0x111b   :  { %v1598_v8 = vld [vmem:[#allocation1 + $0x1c] ss:$0 sm:$0xff] }
0x111c   :  { %v1619_v31 = vmul.f32 %v1598_v8, %v1593_v34  ;;  %v1601_v19 = vmul.f32 %v1598_v8, %v1598_v8 }
0x111e   :  { %1620 = vadd.xlane.f32.xlu0 %v1619_v31  ;;  %1602 = vadd.xlane.f32.xlu2 %v1601_v19 }
0x1191   :  { %v1603_v39 = vpop.xlane.xlu2 %1602  ;;  %v1621_v40 = vpop.xlane.xlu0 %1620 }
0x1192   :  { %v1604_v35 = vsub.f32 %v1600_v32, %v1603_v39  ;;  %v1622_v44 = vsub.f32 %v2192_v30, %v1621_v40 }
0x1194   :  { %1842 = vrsqrt.f32 %v1604_v35  ;;  %vm1611_vm1 = vweird.f32 %v1604_v35 }
0x119a   :  { %v1843_v36 = vpop.eup %1842 }
0x119b   :  { %v1606_v37 = vmul.f32 %v1843_v36, %v1604_v35  ;;  %vm1612_vm2 = vweird.f32 %v1843_v36  ;;  %v1684_v35 = vld [vmem:[#allocation0 + $0x18] sm:$0xff] }
0x119c   :  { %vm1613_vm11 = vmor %vm1611_vm1, %vm1612_vm2 }
0x119d   :  { %v1607_v29 = vmul.f32 %v1843_v36, %v1606_v37  ;;  %vm567_vm2 = vmand %vm540_vm9, %vm566_vm8 }
0x119f   :  { %v1608_v42 = vmul.f32 0.5, %v1607_v29 }
0x11a1   :  { %v1609_v41 = vsub.f32 1.5, %v1608_v42 }
0x11a3   :  { %v1610_v43 = vmul.f32 %v1843_v36, %v1609_v41 }
0x11a5   :  { %v1614_v45 = vsel %vm1613_vm11, %v1843_v36, %v1610_v43  ;;  %vm1693_vm11 = vmand %vm1664_vm5, %vm496_vm4 }
0x11a6   :  { %v1623_v46 = vmul.f32 %v1622_v44, %v1614_v45  ;;  %v1438_v45 = vmul.f32 %v2249_v53, %v2246_v20  ;;  %vm1444_vm4 = vmand %vm1415_vm3, %vm566_vm8 }
0x11a8   :  { %v1626_v62 = vsel %vm1625_vm10, %v1623_v46, 0.0  ;;  %v1702_v46 = vld [vmem:[#allocation0 + $0x1f] ss:$0 sm:$0xff] }
0x11a9   :  { %v1627_v17 = vadd.f32 %v1626_v62, %v1593_v34 }
0x11ab   :  { %1629 = vst [vmem:[#allocation1 + $0x18] sm:$0xff] %v1627_v17 }
0x11b2   :  { %v1632_v50 = vld [vmem:[#allocation1 + $0x1d] ss:$0 sm:$0xff] }
0x11b3   :  { %v1653_v51 = vmul.f32 %v1632_v50, %v1627_v17  ;;  %v1635_v52 = vmul.f32 %v1632_v50, %v1632_v50  ;;  %v1435_v50 = vld [vmem:[#allocation0 + $0x10] sm:$0xff] }
0x11b5   :  { %1654 = vadd.xlane.f32.xlu2 %v1653_v51  ;;  %1636 = vadd.xlane.f32.xlu1 %v1635_v52 }
0x1228   :  { %v1637_v56 = vpop.xlane.xlu1 %1636  ;;  %v1655_v60 = vpop.xlane.xlu2 %1654 }
0x1229   :  { %v1638_v49 = vsub.f32 %v1634_v55, %v1637_v56  ;;  %v1656_v5 = vsub.f32 %v2192_v30, %v1655_v60  ;;  %v1668_v30 = vld [vmem:[#allocation0 + $0x1e] ss:$0 sm:$0xff] }
0x122b   :  { %1844 = vrsqrt.f32 %v1638_v49  ;;  %vm1645_vm15 = vweird.f32 %v1638_v49 }
0x1231   :  { %v1845_v57 = vpop.eup %1844 }
0x1232   :  { %v1640_v4 = vmul.f32 %v1845_v57, %v1638_v49  ;;  %vm1646_vm13 = vweird.f32 %v1845_v57 }
0x1233   :  { %vm1647_vm0 = vmor %vm1645_vm15, %vm1646_vm13  ;;  %vm1698_vm13 = vcmask 261368  }
0x1234   :  { %v1641_v38 = vmul.f32 %v1845_v57, %v1640_v4  ;;  %vm1727_vm3 = vmand %vm1698_vm13, %vm566_vm8 }
0x1236   :  { %v1642_v58 = vmul.f32 0.5, %v1641_v38 }
0x1238   :  { %v1643_v48 = vsub.f32 1.5, %v1642_v58 }
0x123a   :  { %v1644_v61 = vmul.f32 %v1845_v57, %v1643_v48 }
0x123c   :  { %v1648_v0 = vsel %vm1647_vm0, %v1845_v57, %v1644_v61 }
0x123d   :  { %v1657_v59 = vmul.f32 %v1656_v5, %v1648_v0 }
0x123f   :  { %v1660_v63 = vsel %vm1659_vm7, %v1657_v59, 0.0 }
0x1240   :  { %v1661_v11 = vadd.f32 %v1660_v63, %v1627_v17 }
0x1242   :  { %1663 = vst [vmem:[#allocation1 + $0x18] sm:$0xff] %v1661_v11 }
0x1249   :  { %v1666_v2 = vld [vmem:[#allocation1 + $0x1e] ss:$0 sm:$0xff] }
0x124a   :  { %v1687_v33 = vmul.f32 %v1666_v2, %v1661_v11  ;;  %v1669_v7 = vmul.f32 %v1666_v2, %v1666_v2 }
0x124c   :  { %1688 = vadd.xlane.f32.xlu1 %v1687_v33  ;;  %1670 = vadd.xlane.f32.xlu0 %v1669_v7 }
0x1254   :  { %1052 = vadd.xlane.f32.xlu1 %v1051_v14  ;;  %562 = vadd.xlane.f32.xlu0 %v561_v13 }
0x12bf   :  { %v1689_v16 = vpop.xlane.xlu1 %1688  ;;  %v1671_v18 = vpop.xlane.xlu0 %1670 }
0x12c0   :  { %v1672_v21 = vsub.f32 %v1668_v30, %v1671_v18 }
0x12c2   :  { %1846 = vrsqrt.f32 %v1672_v21  ;;  %vm1679_vm9 = vweird.f32 %v1672_v21 }
0x12c7   :  { %v1053_v24 = vpop.xlane.xlu1 %1052  ;;  %v563_v25 = vpop.xlane.xlu0 %562 }
0x12c8   :  { %v1847_v23 = vpop.eup %1846  ;;  %v1054_v6 = vsub.f32 %v1048_v27, %v1053_v24  ;;  %v564_v15 = vsub.f32 %v559_v22, %v563_v25 }
0x12c9   :  { %v1674_v26 = vmul.f32 %v1847_v23, %v1672_v21  ;;  %vm1680_vm14 = vweird.f32 %v1847_v23 }
0x12ca   :  { %v1055_v3 = vmul.f32 %v1054_v6, %v2199_v47  ;;  %v565_v28 = vmul.f32 %v564_v15, %v2028_v1  ;;  %v1690_v47 = vsub.f32 %v1684_v35, %v1689_v16  ;;  %vm1681_vm1 = vmor %vm1679_vm9, %vm1680_vm14 }
0x12cb   :  { %v1675_v34 = vmul.f32 %v1847_v23, %v1674_v26 }
0x12cc   :  { %v1058_v8 = vsel %vm1057_vm6, %v1055_v3, 0.0  ;;  %v568_v31 = vsel %vm567_vm2, %v565_v28, 0.0 }
0x12cd   :  { %v1676_v19 = vmul.f32 0.5, %v1675_v34  ;;  %v1059_v32 = vadd.f32 %v1058_v8, %v1050_v9  ;;  %v569_v39 = vadd.f32 %v568_v31, %v560_v10 }
0x12cf   :  { %v1677_v36 = vsub.f32 1.5, %v1676_v19  ;;  %1061 = vst [vmem:[#allocation1 + $0x8] sm:$0xff] %v1059_v32 }
0x12d0   :  { %1769 = vst [vmem:[%s2300_s1 + $0x8] sm:$0xff] %v1059_v32 }
0x12d1   :  { %v1678_v37 = vmul.f32 %v1847_v23, %v1677_v36  ;;  %570 = vst [vmem:[#allocation1] sm:$0xff] %v569_v39 }
0x12d2   :  { %1767 = vst [vmem:[%s2300_s1] sm:$0xff] %v569_v39 }
0x12d3   :  { %v1682_v1 = vsel %vm1681_vm1, %v1847_v23, %v1678_v37 }
0x12d4   :  { %v1691_v29 = vmul.f32 %v1690_v47, %v1682_v1 }
0x12d6   :  { %v1694_v42 = vsel %vm1693_vm11, %v1691_v29, 0.0 }
0x12d7   :  { %v1695_v40 = vadd.f32 %v1694_v42, %v1661_v11 }
0x12d9   :  { %1697 = vst [vmem:[#allocation1 + $0x18] sm:$0xff] %v1695_v40 }
0x12e0   :  { %v1700_v41 = vld [vmem:[#allocation1 + $0x1f] ss:$0 sm:$0xff] }
0x12e1   :  { %v1721_v43 = vmul.f32 %v1700_v41, %v1695_v40  ;;  %v1703_v44 = vmul.f32 %v1700_v41, %v1700_v41 }
0x12e3   :  { %1722 = vadd.xlane.f32.xlu0 %v1721_v43  ;;  %1704 = vadd.xlane.f32.xlu2 %v1703_v44 }
0x12eb   :  { %1439 = vadd.xlane.f32.xlu2 %v1438_v45 }
0x1356   :  { %v1705_v62 = vpop.xlane.xlu2 %1704  ;;  %v1723_v60 = vpop.xlane.xlu0 %1722 }
0x1357   :  { %v1706_v17 = vsub.f32 %v1702_v46, %v1705_v62  ;;  %v1724_v61 = vsub.f32 %v1684_v35, %v1723_v60 }
0x1359   :  { %1848 = vrsqrt.f32 %v1706_v17  ;;  %vm1713_vm12 = vweird.f32 %v1706_v17 }
0x135e   :  { %v1440_v51 = vpop.xlane.xlu2 %1439 }
0x135f   :  { %v1849_v52 = vpop.eup %1848  ;;  %v1441_v55 = vsub.f32 %v1435_v50, %v1440_v51 }
0x1360   :  { %v1708_v56 = vmul.f32 %v1849_v52, %v1706_v17  ;;  %vm1714_vm10 = vweird.f32 %v1849_v52 }
0x1361   :  { %v1442_v49 = vmul.f32 %v1441_v55, %v2257_v54  ;;  %vm1715_vm15 = vmor %vm1713_vm12, %vm1714_vm10 }
0x1362   :  { %v1709_v57 = vmul.f32 %v1849_v52, %v1708_v56 }
0x1363   :  { %v1445_v4 = vsel %vm1444_vm4, %v1442_v49, 0.0 }
0x1364   :  { %v1710_v38 = vmul.f32 0.5, %v1709_v57  ;;  %v1446_v53 = vadd.f32 %v1445_v4, %v2246_v20 }
0x1366   :  { %v1711_v58 = vsub.f32 1.5, %v1710_v38  ;;  %1448 = vst [vmem:[#allocation1 + $0x10] sm:$0xff] %v1446_v53 }
0x1367   :  { %1771 = vst [vmem:[%s2300_s1 + $0x10] sm:$0xff] %v1446_v53 }
0x1368   :  { %v1712_v48 = vmul.f32 %v1849_v52, %v1711_v58 }
0x136a   :  { %v1716_v5 = vsel %vm1715_vm15, %v1849_v52, %v1712_v48 }
0x136b   :  { %v1725_v54 = vmul.f32 %v1724_v61, %v1716_v5 }
0x136d   :  { %v1728_v0 = vsel %vm1727_vm3, %v1725_v54, 0.0 }
0x136e   :  { %v1729_v59 = vadd.f32 %v1728_v0, %v1695_v40 }
0x1370   :  { %1731 = vst [vmem:[#allocation1 + $0x18] sm:$0xff] %v1729_v59 }
0x1371   :  { %1773 = vst [vmem:[%s2300_s1 + $0x18] sm:$0xff] %v1729_v59 }

// kernel: custom-call.11
= control target key start
LH: loop header
LB: loop body
LE: loop exit
PB: predicated region body
PF: predicated region fallthrough
CT: control target
= control target key end

     0   :  { %v47_v0 = vlaneseq  ;;  %v835_v19 = vmov -1.0   ;;  %s1141_s0 = inlined_call_operand.vmem [shape: f32[1,32,32], index: 0, kind: input, shape index: {}]   ;;  %s1142_s1 = inlined_call_operand.vmem [shape: f32[1,32,32], index: 1, kind: output, shape index: {}]  }
   0x1   :  { %v42_v3 = vld [vmem:[%s1141_s0 + $0x18] sm:$0xff]  ;;  %v40_v35 = vld [vmem:[%s1141_s0 + $0x10] sm:$0xff] }
   0x2   :  { %v847_v1 = vand.u32 127, %v47_v0  ;;  %v849_v2 = vshrl.u32 %v47_v0, 7 }
   0x4   :  { %v139_v4 = vadd.s32 24, %v849_v2  ;;  %vm49_vm1 = vcmp.lt.s32.totalorder %v847_v1, 32  ;;  %vm193_vm8 = vcmp.eq.s32.totalorder %v847_v1, 31  ;;  %vm201_vm10 = vcmp.eq.s32.totalorder %v847_v1, 30 }
   0x5   :  { %v194_v20 = vsel %vm193_vm8, 1.0, %v835_v19  ;;  %vm211_vm11 = vcmp.eq.s32.totalorder %v847_v1, 29  ;;  %v110_v36 = vadd.s32 16, %v849_v2  ;;  %vm221_vm13 = vcmp.eq.s32.totalorder %v847_v1, 28 }
   0x6   :  { %vm140_vm0 = vcmp.eq.s32.totalorder %v139_v4, %v847_v1  ;;  %vm145_vm2 = vcmp.le.s32.totalorder %v139_v4, %v847_v1  ;;  %vm190_vm9 = vcmp.eq.s32.totalorder %v847_v1, %v139_v4 }
   0x7   :  { %v142_v5 = vsel %vm140_vm0, %v42_v3, 0.0  ;;  %vm146_vm3 = vmand %vm145_vm2, %vm49_vm1  ;;  %v195_v21 = vsel %vm190_vm9, %v194_v20, 0.0  ;;  %vm111_vm12 = vcmp.eq.s32.totalorder %v110_v36, %v847_v1  ;;  %vm116_vm14 = vcmp.le.s32.totalorder %v110_v36, %v847_v1 }
   0x8   :  { %143 = vadd.xlane.f32.xlu0 %v142_v5  ;;  %v147_v14 = vsel %vm146_vm3, %v42_v3, 0.0  ;;  %v113_v37 = vsel %vm111_vm12, %v40_v35, 0.0  ;;  %vm117_vm2 = vmand %vm116_vm14, %vm49_vm1  ;;  %vm183_vm8 = vcmp.eq.s32.totalorder %v847_v1, %v110_v36  ;;  %vm251_vm9 = vcmp.eq.s32.totalorder %v847_v1, 25 }
   0x9   :  { %v118_v52 = vsel %vm117_vm2, %v40_v35, 0.0  ;;  %vm285_vm12 = vcmp.eq.s32.totalorder %v847_v1, 22  ;;  %vm313_vm14 = vcmp.eq.s32.totalorder %v847_v1, 20  ;;  %vm341_vm2 = vcmp.eq.s32.totalorder %v847_v1, 18 }
  0x7b   :  { %v856_v6 = vpop.xlane.xlu0 %143 }
  0x7c   :  { %827 = vrcp.f32 %v856_v6  ;;  %v159_v10 = vand.u32 2147483648, %v856_v6  ;;  %v157_v12 = vand.u32 2147483647, %v856_v6  ;;  %vm153_vm5 = vweird.f32 %v856_v6 }
  0x7e   :  { %v160_v15 = vor.u32 1.1754944e-38, %v159_v10  ;;  %vm158_vm7 = vcmp.eq.f32.partialorder %v157_v12, 8.507059e+37 }
  0x82   :  { %v828_v7 = vpop.eup %827 }
  0x83   :  { %v149_v8 = vmul.f32 %v828_v7, %v856_v6  ;;  %vm154_vm4 = vweird.f32 %v828_v7 }
  0x84   :  { %vm155_vm6 = vmor %vm153_vm5, %vm154_vm4 }
  0x85   :  { %v150_v9 = vsub.f32 1.0, %v149_v8 }
  0x87   :  { %v151_v11 = vmul.f32 %v828_v7, %v150_v9 }
  0x89   :  { %v152_v13 = vadd.f32 %v828_v7, %v151_v11 }
  0x8b   :  { %v156_v16 = vsel %vm155_vm6, %v828_v7, %v152_v13  ;;  %vm231_vm6 = vcmp.eq.s32.totalorder %v847_v1, 27  ;;  %v836_v7 = vmov 0.0  }
  0x8c   :  { %v869_v17 = vsel %vm158_vm7, %v160_v15, %v156_v16  ;;  %vm241_vm7 = vcmp.eq.s32.totalorder %v847_v1, 26  ;;  %v184_v8 = vsel %vm183_vm8, -1.0, %v836_v7 }
  0x8d   :  { %v162_v18 = vmul.f32 %v869_v17, %v147_v14 }
  0x8f   :  { %163 = vst [vmem:[#allocation2 + $0x18] sm:$0xff] %v162_v18 }
  0x96   :  { %v197_v22 = vld [vmem:[#allocation2 + $0x1e] ss:$0 sm:$0xff]  ;;  %v207_v25 = vld [vmem:[#allocation2 + $0x1d] ss:$0 sm:$0xff]  ;;  %v217_v30 = vld [vmem:[#allocation2 + $0x1c] ss:$0 sm:$0xff] }
  0x97   :  { %v198_v23 = vxor.u32 2147483648, %v197_v22  ;;  %v208_v27 = vxor.u32 2147483648, %v207_v25  ;;  %v218_v32 = vxor.u32 2147483648, %v217_v30  ;;  %v227_v38 = vld [vmem:[#allocation2 + $0x1b] ss:$0 sm:$0xff] }
  0x98   :  { %v228_v40 = vxor.u32 2147483648, %v227_v38  ;;  %v237_v56 = vld [vmem:[#allocation2 + $0x1a] ss:$0 sm:$0xff]  ;;  %v247_v61 = vld [vmem:[#allocation2 + $0x19] ss:$0 sm:$0xff] }
  0x99   :  { %v202_v24 = vmul.f32 %v198_v23, %v195_v21  ;;  %v238_v58 = vxor.u32 2147483648, %v237_v56  ;;  %v248_v63 = vxor.u32 2147483648, %v247_v61  ;;  %v257_v10 = vld [vmem:[#allocation2 + $0x18] ss:$0 sm:$0xff] }
  0x9a   :  { %v258_v12 = vxor.u32 2147483648, %v257_v10 }
  0x9b   :  { %203 = vadd.xlane.f32.xlu0 %v202_v24 }
 0x10e   :  { %v204_v26 = vpop.xlane.xlu0 %203 }
 0x10f   :  { %v205_v28 = vsel %vm201_vm10, %v204_v26, %v195_v21  ;;  %vm271_vm10 = vcmp.eq.s32.totalorder %v847_v1, 23 }
 0x110   :  { %v212_v29 = vmul.f32 %v208_v27, %v205_v28 }
 0x112   :  { %213 = vadd.xlane.f32.xlu1 %v212_v29 }
 0x185   :  { %v214_v31 = vpop.xlane.xlu1 %213 }
 0x186   :  { %v215_v33 = vsel %vm211_vm11, %v214_v31, %v205_v28  ;;  %vm261_vm11 = vcmp.eq.s32.totalorder %v847_v1, 24 }
 0x187   :  { %v222_v34 = vmul.f32 %v218_v32, %v215_v33 }
 0x189   :  { %223 = vadd.xlane.f32.xlu1 %v222_v34 }
 0x191   :  { %114 = vadd.xlane.f32.xlu1 %v113_v37 }
 0x1fc   :  { %v224_v39 = vpop.xlane.xlu1 %223 }
 0x1fd   :  { %v225_v41 = vsel %vm221_vm13, %v224_v39, %v215_v33  ;;  %vm299_vm13 = vcmp.eq.s32.totalorder %v847_v1, 21 }
 0x1fe   :  { %v232_v42 = vmul.f32 %v228_v40, %v225_v41 }
 0x200   :  { %233 = vadd.xlane.f32.xlu2 %v232_v42 }
 0x204   :  { %v882_v43 = vpop.xlane.xlu1 %114 }
 0x205   :  { %829 = vrcp.f32 %v882_v43  ;;  %v130_v46 = vand.u32 2147483648, %v882_v43  ;;  %vm124_vm15 = vweird.f32 %v882_v43  ;;  %v128_v48 = vand.u32 2147483647, %v882_v43 }
 0x207   :  { %v131_v50 = vor.u32 1.1754944e-38, %v130_v46  ;;  %vm129_vm4 = vcmp.eq.f32.partialorder %v128_v48, 8.507059e+37 }
 0x20b   :  { %v830_v44 = vpop.eup %829 }
 0x20c   :  { %v120_v45 = vmul.f32 %v830_v44, %v882_v43  ;;  %vm125_vm0 = vweird.f32 %v830_v44 }
 0x20d   :  { %vm126_vm3 = vmor %vm124_vm15, %vm125_vm0  ;;  %vm327_vm0 = vcmp.eq.s32.totalorder %v847_v1, 19 }
 0x20e   :  { %v121_v47 = vsub.f32 1.0, %v120_v45 }
 0x210   :  { %v122_v49 = vmul.f32 %v830_v44, %v121_v47 }
 0x212   :  { %v123_v51 = vadd.f32 %v830_v44, %v122_v49 }
 0x214   :  { %v127_v53 = vsel %vm126_vm3, %v830_v44, %v123_v51  ;;  %vm355_vm3 = vcmp.eq.s32.totalorder %v847_v1, 17 }
 0x215   :  { %v894_v54 = vsel %vm129_vm4, %v131_v50, %v127_v53 }
 0x216   :  { %v133_v55 = vmul.f32 %v894_v54, %v118_v52 }
 0x218   :  { %134 = vst [vmem:[#allocation2 + $0x10] sm:$0xff] %v133_v55 }
 0x21f   :  { %v267_v3 = vld [vmem:[#allocation2 + $0x17] ss:$0 sm:$0xff]  ;;  %v281_v15 = vld [vmem:[#allocation2 + $0x16] ss:$0 sm:$0xff]  ;;  %v295_v24 = vld [vmem:[#allocation2 + $0x15] ss:$0 sm:$0xff] }
 0x220   :  { %v268_v5 = vxor.u32 2147483648, %v267_v3  ;;  %v282_v16 = vxor.u32 2147483648, %v281_v15  ;;  %v296_v26 = vxor.u32 2147483648, %v295_v24  ;;  %v309_v32 = vld [vmem:[#allocation2 + $0x14] ss:$0 sm:$0xff] }
 0x221   :  { %v310_v34 = vxor.u32 2147483648, %v309_v32  ;;  %v323_v40 = vld [vmem:[#allocation2 + $0x13] ss:$0 sm:$0xff]  ;;  %v337_v49 = vld [vmem:[#allocation2 + $0x12] ss:$0 sm:$0xff] }
 0x222   :  { %v272_v9 = vmul.f32 %v268_v5, %v184_v8  ;;  %v324_v42 = vxor.u32 2147483648, %v323_v40  ;;  %v338_v51 = vxor.u32 2147483648, %v337_v49 }
 0x273   :  { %v234_v57 = vpop.xlane.xlu2 %233 }
 0x274   :  { %v235_v59 = vsel %vm231_vm6, %v234_v57, %v225_v41 }
 0x275   :  { %v242_v60 = vmul.f32 %v238_v58, %v235_v59  ;;  %v351_v58 = vld [vmem:[#allocation2 + $0x11] ss:$0 sm:$0xff] }
 0x277   :  { %243 = vadd.xlane.f32.xlu2 %v242_v60  ;;  %v352_v60 = vxor.u32 2147483648, %v351_v58 }
 0x2ea   :  { %v244_v62 = vpop.xlane.xlu2 %243 }
 0x2eb   :  { %v245_v0 = vsel %vm241_vm7, %v244_v62, %v235_v59 }
 0x2ec   :  { %v252_v4 = vmul.f32 %v248_v63, %v245_v0 }
 0x2ee   :  { %253 = vadd.xlane.f32.xlu0 %v252_v4  ;;  %v81_v4 = vadd.s32 8, %v849_v2 }
 0x2f0   :  { %vm82_vm4 = vcmp.eq.s32.totalorder %v81_v4, %v847_v1  ;;  %vm87_vm6 = vcmp.le.s32.totalorder %v81_v4, %v847_v1 }
 0x2f6   :  { %273 = vadd.xlane.f32.xlu0 %v272_v9 }
 0x361   :  { %v254_v11 = vpop.xlane.xlu0 %253 }
 0x362   :  { %v255_v13 = vsel %vm251_vm9, %v254_v11, %v245_v0  ;;  %vm88_vm9 = vmand %vm87_vm6, %vm49_vm1  ;;  %vm473_vm6 = vcmp.eq.s32.totalorder %v847_v1, 10 }
 0x363   :  { %v262_v14 = vmul.f32 %v258_v12, %v255_v13 }
 0x365   :  { %263 = vadd.xlane.f32.xlu2 %v262_v14 }
 0x369   :  { %v274_v18 = vpop.xlane.xlu0 %273 }
 0x36a   :  { %v275_v19 = vsel %vm271_vm10, %v274_v18, %v184_v8  ;;  %v38_v8 = vld [vmem:[%s1141_s0 + $0x8] sm:$0xff] }
 0x36b   :  { %v286_v20 = vmul.f32 %v282_v16, %v275_v19  ;;  %v84_v12 = vsel %vm82_vm4, %v38_v8, 0.0  ;;  %vm455_vm4 = vcmp.eq.s32.totalorder %v847_v1, 11 }
 0x36d   :  { %287 = vadd.xlane.f32.xlu2 %v286_v20 }
 0x3d8   :  { %v264_v21 = vpop.xlane.xlu2 %263 }
 0x3d9   :  { %v265_v22 = vsel %vm261_vm11, %v264_v21, %v255_v13 }
 0x3da   :  { %v276_v23 = vmul.f32 %v268_v5, %v265_v22  ;;  %v365_v5 = vld [vmem:[#allocation2 + $0x10] ss:$0 sm:$0xff] }
 0x3db   :  { %v366_v10 = vxor.u32 2147483648, %v365_v5 }
 0x3dc   :  { %277 = vadd.xlane.f32.xlu1 %v276_v23 }
 0x3e0   :  { %v288_v25 = vpop.xlane.xlu2 %287 }
 0x3e1   :  { %v289_v27 = vsel %vm285_vm12, %v288_v25, %v275_v19 }
 0x3e2   :  { %v300_v28 = vmul.f32 %v296_v26, %v289_v27 }
 0x3e4   :  { %301 = vadd.xlane.f32.xlu1 %v300_v28 }
 0x44f   :  { %v278_v29 = vpop.xlane.xlu1 %277 }
 0x450   :  { %v279_v30 = vsel %vm271_vm10, %v278_v29, %v265_v22 }
 0x451   :  { %v290_v31 = vmul.f32 %v282_v16, %v279_v30 }
 0x453   :  { %291 = vadd.xlane.f32.xlu0 %v290_v31 }
 0x457   :  { %v302_v33 = vpop.xlane.xlu1 %301 }
 0x458   :  { %v303_v35 = vsel %vm299_vm13, %v302_v33, %v289_v27  ;;  %v89_v27 = vsel %vm88_vm9, %v38_v8, 0.0  ;;  %vm491_vm9 = vcmp.eq.s32.totalorder %v847_v1, 9 }
 0x459   :  { %v314_v36 = vmul.f32 %v310_v34, %v303_v35 }
 0x45b   :  { %315 = vadd.xlane.f32.xlu0 %v314_v36 }
 0x4c6   :  { %v292_v37 = vpop.xlane.xlu0 %291 }
 0x4c7   :  { %v293_v38 = vsel %vm285_vm12, %v292_v37, %v279_v30  ;;  %vm176_vm12 = vcmp.eq.s32.totalorder %v847_v1, %v81_v4 }
 0x4c8   :  { %v304_v39 = vmul.f32 %v296_v26, %v293_v38  ;;  %v177_v33 = vsel %vm176_vm12, -1.0, %v836_v7 }
 0x4ca   :  { %305 = vadd.xlane.f32.xlu2 %v304_v39 }
 0x4ce   :  { %v316_v41 = vpop.xlane.xlu0 %315 }
 0x4cf   :  { %v317_v44 = vsel %vm313_vm14, %v316_v41, %v303_v35 }
 0x4d0   :  { %v328_v45 = vmul.f32 %v324_v42, %v317_v44 }
 0x4d2   :  { %329 = vadd.xlane.f32.xlu2 %v328_v45 }
 0x53d   :  { %v306_v46 = vpop.xlane.xlu2 %305 }
 0x53e   :  { %v307_v47 = vsel %vm299_vm13, %v306_v46, %v293_v38  ;;  %vm369_vm13 = vcmp.eq.s32.totalorder %v847_v1, 16 }
 0x53f   :  { %v318_v48 = vmul.f32 %v310_v34, %v307_v47 }
 0x541   :  { %319 = vadd.xlane.f32.xlu1 %v318_v48 }
 0x545   :  { %v330_v50 = vpop.xlane.xlu2 %329 }
 0x546   :  { %v331_v52 = vsel %vm327_vm0, %v330_v50, %v317_v44 }
 0x547   :  { %v342_v53 = vmul.f32 %v338_v51, %v331_v52 }
 0x549   :  { %343 = vadd.xlane.f32.xlu1 %v342_v53 }
 0x5b4   :  { %v320_v55 = vpop.xlane.xlu1 %319 }
 0x5b5   :  { %v321_v56 = vsel %vm313_vm14, %v320_v55, %v307_v47  ;;  %vm383_vm14 = vcmp.eq.s32.totalorder %v847_v1, 15 }
 0x5b6   :  { %v332_v57 = vmul.f32 %v324_v42, %v321_v56 }
 0x5b8   :  { %333 = vadd.xlane.f32.xlu0 %v332_v57 }
 0x5bc   :  { %v344_v59 = vpop.xlane.xlu1 %343 }
 0x5bd   :  { %v345_v61 = vsel %vm341_vm2, %v344_v59, %v331_v52 }
 0x5be   :  { %v356_v62 = vmul.f32 %v352_v60, %v345_v61 }
 0x5c0   :  { %357 = vadd.xlane.f32.xlu0 %v356_v62 }
 0x62b   :  { %v334_v63 = vpop.xlane.xlu0 %333 }
 0x62c   :  { %v335_v0 = vsel %vm327_vm0, %v334_v63, %v321_v56  ;;  %vm401_vm0 = vcmp.eq.s32.totalorder %v847_v1, 14 }
 0x62d   :  { %v346_v3 = vmul.f32 %v338_v51, %v335_v0 }
 0x62f   :  { %347 = vadd.xlane.f32.xlu2 %v346_v3 }
 0x633   :  { %v358_v9 = vpop.xlane.xlu0 %357 }
 0x634   :  { %v359_v11 = vsel %vm355_vm3, %v358_v9, %v345_v61 }
 0x635   :  { %v370_v13 = vmul.f32 %v366_v10, %v359_v11 }
 0x637   :  { %371 = vadd.xlane.f32.xlu0 %v370_v13  ;;  %85 = vadd.xlane.f32.xlu2 %v84_v12 }
 0x6a2   :  { %v348_v14 = vpop.xlane.xlu2 %347 }
 0x6a3   :  { %v349_v15 = vsel %vm341_vm2, %v348_v14, %v335_v0  ;;  %vm419_vm2 = vcmp.eq.s32.totalorder %v847_v1, 13 }
 0x6a4   :  { %v360_v16 = vmul.f32 %v352_v60, %v349_v15 }
 0x6a6   :  { %361 = vadd.xlane.f32.xlu1 %v360_v16 }
 0x6aa   :  { %v941_v18 = vpop.xlane.xlu2 %85  ;;  %v372_v31 = vpop.xlane.xlu0 %371 }
 0x6ab   :  { %831 = vrcp.f32 %v941_v18  ;;  %v101_v21 = vand.u32 2147483648, %v941_v18  ;;  %vm95_vm7 = vweird.f32 %v941_v18  ;;  %v99_v23 = vand.u32 2147483647, %v941_v18 }
 0x6ac   :  { %v373_v35 = vsel %vm369_vm13, %v372_v31, %v359_v11 }
 0x6ad   :  { %v102_v25 = vor.u32 1.1754944e-38, %v101_v21  ;;  %vm100_vm11 = vcmp.eq.f32.partialorder %v99_v23, 8.507059e+37 }
 0x6b1   :  { %v832_v19 = vpop.eup %831 }
 0x6b2   :  { %v91_v20 = vmul.f32 %v832_v19, %v941_v18  ;;  %vm96_vm8 = vweird.f32 %v832_v19 }
 0x6b3   :  { %vm97_vm10 = vmor %vm95_vm7, %vm96_vm8  ;;  %vm53_vm8 = vcmp.eq.s32.totalorder %v849_v2, %v847_v1 }
 0x6b4   :  { %v92_v22 = vsub.f32 1.0, %v91_v20 }
 0x6b6   :  { %v93_v24 = vmul.f32 %v832_v19, %v92_v22 }
 0x6b8   :  { %v94_v26 = vadd.f32 %v832_v19, %v93_v24 }
 0x6ba   :  { %v98_v28 = vsel %vm97_vm10, %v832_v19, %v94_v26  ;;  %vm58_vm10 = vcmp.le.s32.totalorder %v849_v2, %v847_v1 }
 0x6bb   :  { %v953_v29 = vsel %vm100_vm11, %v102_v25, %v98_v28 }
 0x6bc   :  { %v104_v30 = vmul.f32 %v953_v29, %v89_v27 }
 0x6be   :  { %105 = vst [vmem:[#allocation2 + $0x8] sm:$0xff] %v104_v30 }
 0x6c5   :  { %v379_v32 = vld [vmem:[#allocation2 + $0xf] ss:$0 sm:$0xff]  ;;  %v397_v41 = vld [vmem:[#allocation2 + $0xe] ss:$0 sm:$0xff]  ;;  %v415_v53 = vld [vmem:[#allocation2 + $0xd] ss:$0 sm:$0xff] }
 0x6c6   :  { %v380_v34 = vxor.u32 2147483648, %v379_v32  ;;  %v398_v42 = vxor.u32 2147483648, %v397_v41  ;;  %v416_v57 = vxor.u32 2147483648, %v415_v53  ;;  %v433_v3 = vld [vmem:[#allocation2 + $0xc] ss:$0 sm:$0xff] }
 0x6c7   :  { %v434_v8 = vxor.u32 2147483648, %v433_v3  ;;  %v451_v16 = vld [vmem:[#allocation2 + $0xb] ss:$0 sm:$0xff]  ;;  %v469_v30 = vld [vmem:[#allocation2 + $0xa] ss:$0 sm:$0xff] }
 0x6c8   :  { %v388_v36 = vmul.f32 %v380_v34, %v373_v35  ;;  %v384_v37 = vmul.f32 %v380_v34, %v177_v33  ;;  %v452_v21 = vxor.u32 2147483648, %v451_v16  ;;  %v487_v41 = vld [vmem:[#allocation2 + $0x9] ss:$0 sm:$0xff] }
 0x6ca   :  { %389 = vadd.xlane.f32.xlu0 %v388_v36  ;;  %385 = vadd.xlane.f32.xlu2 %v384_v37 }
 0x719   :  { %v362_v38 = vpop.xlane.xlu1 %361 }
 0x71a   :  { %v363_v39 = vsel %vm355_vm3, %v362_v38, %v349_v15  ;;  %vm437_vm3 = vcmp.eq.s32.totalorder %v847_v1, 12 }
 0x71b   :  { %v374_v40 = vmul.f32 %v366_v10, %v363_v39 }
 0x71d   :  { %375 = vadd.xlane.f32.xlu1 %v374_v40 }
 0x73d   :  { %v390_v44 = vpop.xlane.xlu0 %389  ;;  %v386_v45 = vpop.xlane.xlu2 %385 }
 0x73e   :  { %v391_v46 = vsel %vm383_vm14, %v390_v44, %v373_v35  ;;  %v387_v47 = vsel %vm383_vm14, %v386_v45, %v177_v33  ;;  %v470_v33 = vxor.u32 2147483648, %v469_v30  ;;  %v488_v45 = vxor.u32 2147483648, %v487_v41 }
 0x73f   :  { %v406_v48 = vmul.f32 %v398_v42, %v391_v46  ;;  %v402_v49 = vmul.f32 %v398_v42, %v387_v47 }
 0x741   :  { %407 = vadd.xlane.f32.xlu0 %v406_v48  ;;  %403 = vadd.xlane.f32.xlu2 %v402_v49 }
 0x790   :  { %v376_v50 = vpop.xlane.xlu1 %375 }
 0x791   :  { %v377_v51 = vsel %vm369_vm13, %v376_v50, %v363_v39  ;;  %v36_v50 = vld [vmem:[%s1141_s0] sm:$0xff]  ;;  %vm59_vm13 = vmand %vm58_vm10, %vm49_vm1  ;;  %vm509_vm1 = vcmp.eq.s32.totalorder %v847_v1, 8  ;;  %vm637_vm10 = vcmp.eq.s32.totalorder %v847_v1, 2 }
 0x792   :  { %v392_v52 = vmul.f32 %v380_v34, %v377_v51 }
 0x794   :  { %393 = vadd.xlane.f32.xlu1 %v392_v52 }
 0x7b4   :  { %v408_v55 = vpop.xlane.xlu0 %407  ;;  %v404_v56 = vpop.xlane.xlu2 %403 }
 0x7b5   :  { %v409_v58 = vsel %vm401_vm0, %v408_v55, %v391_v46  ;;  %v405_v59 = vsel %vm401_vm0, %v404_v56, %v387_v47  ;;  %v505_v56 = vld [vmem:[#allocation2 + $0x8] ss:$0 sm:$0xff] }
 0x7b6   :  { %v424_v60 = vmul.f32 %v416_v57, %v409_v58  ;;  %v420_v61 = vmul.f32 %v416_v57, %v405_v59 }
 0x7b8   :  { %425 = vadd.xlane.f32.xlu0 %v424_v60  ;;  %421 = vadd.xlane.f32.xlu2 %v420_v61 }
 0x807   :  { %v394_v62 = vpop.xlane.xlu1 %393 }
 0x808   :  { %v395_v63 = vsel %vm383_vm14, %v394_v62, %v377_v51  ;;  %v55_v51 = vsel %vm53_vm8, %v36_v50, 0.0  ;;  %vm593_vm8 = vcmp.eq.s32.totalorder %v847_v1, 4 }
 0x809   :  { %v410_v0 = vmul.f32 %v398_v42, %v395_v63 }
 0x80b   :  { %411 = vadd.xlane.f32.xlu1 %v410_v0 }
 0x82b   :  { %v426_v4 = vpop.xlane.xlu0 %425  ;;  %v422_v5 = vpop.xlane.xlu2 %421 }
 0x82c   :  { %v427_v9 = vsel %vm419_vm2, %v426_v4, %v409_v58  ;;  %v423_v10 = vsel %vm419_vm2, %v422_v5, %v405_v59  ;;  %v506_v58 = vxor.u32 2147483648, %v505_v56 }
 0x82d   :  { %v442_v11 = vmul.f32 %v434_v8, %v427_v9  ;;  %v438_v12 = vmul.f32 %v434_v8, %v423_v10 }
 0x82f   :  { %443 = vadd.xlane.f32.xlu0 %v442_v11  ;;  %439 = vadd.xlane.f32.xlu2 %v438_v12 }
 0x87e   :  { %v412_v13 = vpop.xlane.xlu1 %411 }
 0x87f   :  { %v413_v14 = vsel %vm401_vm0, %v412_v13, %v395_v63 }
 0x880   :  { %v428_v15 = vmul.f32 %v416_v57, %v413_v14 }
 0x882   :  { %429 = vadd.xlane.f32.xlu1 %v428_v15 }
 0x8a2   :  { %v444_v19 = vpop.xlane.xlu0 %443  ;;  %v440_v20 = vpop.xlane.xlu2 %439 }
 0x8a3   :  { %v445_v22 = vsel %vm437_vm3, %v444_v19, %v427_v9  ;;  %v441_v23 = vsel %vm437_vm3, %v440_v20, %v423_v10  ;;  %v60_v10 = vsel %vm59_vm13, %v36_v50, 0.0  ;;  %vm680_vm13 = vcmp.eq.s32.totalorder %v847_v1, 0 }
 0x8a4   :  { %v460_v24 = vmul.f32 %v452_v21, %v445_v22  ;;  %v456_v25 = vmul.f32 %v452_v21, %v441_v23 }
 0x8a6   :  { %461 = vadd.xlane.f32.xlu0 %v460_v24  ;;  %457 = vadd.xlane.f32.xlu2 %v456_v25 }
 0x8f5   :  { %v430_v26 = vpop.xlane.xlu1 %429 }
 0x8f6   :  { %v431_v27 = vsel %vm419_vm2, %v430_v26, %v413_v14  ;;  %vm169_vm2 = vcmp.eq.s32.totalorder %v847_v1, %v849_v2 }
 0x8f7   :  { %v446_v28 = vmul.f32 %v434_v8, %v431_v27  ;;  %v170_v14 = vsel %vm169_vm2, -1.0, %v836_v7 }
 0x8f9   :  { %447 = vadd.xlane.f32.xlu1 %v446_v28 }
 0x919   :  { %v462_v31 = vpop.xlane.xlu0 %461  ;;  %v458_v32 = vpop.xlane.xlu2 %457 }
 0x91a   :  { %v463_v34 = vsel %vm455_vm4, %v462_v31, %v445_v22  ;;  %v459_v35 = vsel %vm455_vm4, %v458_v32, %v441_v23 }
 0x91b   :  { %v478_v36 = vmul.f32 %v470_v33, %v463_v34  ;;  %v474_v37 = vmul.f32 %v470_v33, %v459_v35 }
 0x91d   :  { %479 = vadd.xlane.f32.xlu0 %v478_v36  ;;  %475 = vadd.xlane.f32.xlu2 %v474_v37 }
 0x96c   :  { %v448_v38 = vpop.xlane.xlu1 %447 }
 0x96d   :  { %v449_v39 = vsel %vm437_vm3, %v448_v38, %v431_v27  ;;  %vm527_vm3 = vcmp.eq.s32.totalorder %v847_v1, 7 }
 0x96e   :  { %v464_v40 = vmul.f32 %v452_v21, %v449_v39 }
 0x970   :  { %465 = vadd.xlane.f32.xlu1 %v464_v40 }
 0x990   :  { %v480_v42 = vpop.xlane.xlu0 %479  ;;  %v476_v44 = vpop.xlane.xlu2 %475 }
 0x991   :  { %v481_v46 = vsel %vm473_vm6, %v480_v42, %v463_v34  ;;  %v477_v47 = vsel %vm473_vm6, %v476_v44, %v459_v35 }
 0x992   :  { %v496_v48 = vmul.f32 %v488_v45, %v481_v46  ;;  %v492_v49 = vmul.f32 %v488_v45, %v477_v47 }
 0x994   :  { %497 = vadd.xlane.f32.xlu0 %v496_v48  ;;  %493 = vadd.xlane.f32.xlu2 %v492_v49 }
 0x99c   :  { %56 = vadd.xlane.f32.xlu2 %v55_v51 }
 0x9e3   :  { %v466_v52 = vpop.xlane.xlu1 %465 }
 0x9e4   :  { %v467_v53 = vsel %vm455_vm4, %v466_v52, %v449_v39  ;;  %vm549_vm4 = vcmp.eq.s32.totalorder %v847_v1, 6 }
 0x9e5   :  { %v482_v55 = vmul.f32 %v470_v33, %v467_v53 }
 0x9e7   :  { %483 = vadd.xlane.f32.xlu1 %v482_v55 }
 0xa07   :  { %v494_v57 = vpop.xlane.xlu2 %493  ;;  %v498_v23 = vpop.xlane.xlu0 %497 }
 0xa08   :  { %v495_v59 = vsel %vm491_vm9, %v494_v57, %v477_v47  ;;  %v499_v24 = vsel %vm491_vm9, %v498_v23, %v481_v46 }
 0xa09   :  { %v510_v60 = vmul.f32 %v506_v58, %v495_v59  ;;  %v514_v25 = vmul.f32 %v506_v58, %v499_v24 }
 0xa0b   :  { %511 = vadd.xlane.f32.xlu0 %v510_v60 }
 0xa0f   :  { %v1013_v61 = vpop.xlane.xlu2 %56 }
 0xa10   :  { %833 = vrcp.f32 %v1013_v61  ;;  %v72_v0 = vand.u32 2147483648, %v1013_v61  ;;  %vm66_vm11 = vweird.f32 %v1013_v61  ;;  %v70_v4 = vand.u32 2147483647, %v1013_v61 }
 0xa12   :  { %v73_v8 = vor.u32 1.1754944e-38, %v72_v0  ;;  %vm71_vm0 = vcmp.eq.f32.partialorder %v70_v4, 8.507059e+37 }
 0xa16   :  { %v834_v62 = vpop.eup %833 }
 0xa17   :  { %v62_v63 = vmul.f32 %v834_v62, %v1013_v61  ;;  %vm67_vm12 = vweird.f32 %v834_v62 }
 0xa18   :  { %vm68_vm14 = vmor %vm66_vm11, %vm67_vm12  ;;  %vm659_vm12 = vcmp.eq.s32.totalorder %v847_v1, 1 }
 0xa19   :  { %v63_v3 = vsub.f32 1.0, %v62_v63 }
 0xa1b   :  { %v64_v5 = vmul.f32 %v834_v62, %v63_v3 }
 0xa1d   :  { %v65_v9 = vadd.f32 %v834_v62, %v64_v5 }
 0xa1f   :  { %v69_v11 = vsel %vm68_vm14, %v834_v62, %v65_v9 }
 0xa20   :  { %v1026_v12 = vsel %vm71_vm0, %v73_v8, %v69_v11 }
 0xa21   :  { %v75_v13 = vmul.f32 %v1026_v12, %v60_v10 }
 0xa23   :  { %76 = vst [vmem:[#allocation2] sm:$0xff] %v75_v13 }
 0xa2a   :  { %v523_v15 = vld [vmem:[#allocation2 + $0x7] ss:$0 sm:$0xff]  ;;  %v545_v27 = vld [vmem:[#allocation2 + $0x6] ss:$0 sm:$0xff]  ;;  %v567_v42 = vld [vmem:[#allocation2 + $0x5] ss:$0 sm:$0xff] }
 0xa2b   :  { %v524_v16 = vxor.u32 2147483648, %v523_v15  ;;  %v546_v28 = vxor.u32 2147483648, %v545_v27  ;;  %v568_v44 = vxor.u32 2147483648, %v567_v42 }
 0xa2d   :  { %v528_v19 = vmul.f32 %v524_v16, %v170_v14 }
 0xa2f   :  { %529 = vadd.xlane.f32.xlu0 %v528_v19 }
 0xa5a   :  { %v484_v20 = vpop.xlane.xlu1 %483 }
 0xa5b   :  { %v485_v21 = vsel %vm473_vm6, %v484_v20, %v467_v53  ;;  %vm571_vm6 = vcmp.eq.s32.totalorder %v847_v1, 5 }
 0xa5c   :  { %v500_v22 = vmul.f32 %v488_v45, %v485_v21 }
 0xa5e   :  { %501 = vadd.xlane.f32.xlu1 %v500_v22 }
 0xa66   :  { %515 = vadd.xlane.f32.xlu1 %v514_v25 }
 0xa7e   :  { %v512_v2 = vpop.xlane.xlu0 %511 }
 0xa7f   :  { %v513_v7 = vsel %vm509_vm1, %v512_v2, %v495_v59 }
 0xa80   :  { %v532_v26 = vmul.f32 %v524_v16, %v513_v7 }
 0xa82   :  { %533 = vadd.xlane.f32.xlu1 %v532_v26 }
 0xaa2   :  { %v530_v30 = vpop.xlane.xlu0 %529 }
 0xaa3   :  { %v531_v31 = vsel %vm527_vm3, %v530_v30, %v170_v14  ;;  %v611_v14 = vld [vmem:[#allocation2 + $0x3] ss:$0 sm:$0xff] }
 0xaa4   :  { %v550_v32 = vmul.f32 %v546_v28, %v531_v31 }
 0xaa6   :  { %551 = vadd.xlane.f32.xlu1 %v550_v32 }
 0xad1   :  { %v502_v33 = vpop.xlane.xlu1 %501 }
 0xad2   :  { %v503_v34 = vsel %vm491_vm9, %v502_v33, %v485_v21  ;;  %vm615_vm9 = vcmp.eq.s32.totalorder %v847_v1, 3 }
 0xad3   :  { %v518_v35 = vmul.f32 %v506_v58, %v503_v34  ;;  %v589_v58 = vld [vmem:[#allocation2 + $0x4] ss:$0 sm:$0xff] }
 0xad4   :  { %v590_v60 = vxor.u32 2147483648, %v589_v58 }
 0xad5   :  { %519 = vadd.xlane.f32.xlu2 %v518_v35 }
 0xad9   :  { %v516_v36 = vpop.xlane.xlu1 %515 }
 0xada   :  { %v517_v37 = vsel %vm509_vm1, %v516_v36, %v499_v24 }
 0xadb   :  { %v536_v38 = vmul.f32 %v524_v16, %v517_v37 }
 0xadd   :  { %537 = vadd.xlane.f32.xlu2 %v536_v38 }
 0xaf5   :  { %v534_v39 = vpop.xlane.xlu1 %533 }
 0xaf6   :  { %v535_v40 = vsel %vm527_vm3, %v534_v39, %v513_v7 }
 0xaf7   :  { %v554_v41 = vmul.f32 %v546_v28, %v535_v40 }
 0xaf9   :  { %555 = vadd.xlane.f32.xlu2 %v554_v41 }
 0xb19   :  { %v552_v45 = vpop.xlane.xlu1 %551 }
 0xb1a   :  { %v553_v46 = vsel %vm549_vm4, %v552_v45, %v531_v31 }
 0xb1b   :  { %v572_v47 = vmul.f32 %v568_v44, %v553_v46 }
 0xb1d   :  { %573 = vadd.xlane.f32.xlu2 %v572_v47 }
 0xb48   :  { %v520_v48 = vpop.xlane.xlu2 %519 }
 0xb49   :  { %v521_v49 = vsel %vm509_vm1, %v520_v48, %v503_v34 }
 0xb4a   :  { %v540_v50 = vmul.f32 %v524_v16, %v521_v49  ;;  %v612_v16 = vxor.u32 2147483648, %v611_v14 }
 0xb4c   :  { %541 = vadd.xlane.f32.xlu0 %v540_v50 }
 0xb50   :  { %v538_v51 = vpop.xlane.xlu2 %537 }
 0xb51   :  { %v539_v52 = vsel %vm527_vm3, %v538_v51, %v517_v37 }
 0xb52   :  { %v558_v53 = vmul.f32 %v546_v28, %v539_v52 }
 0xb54   :  { %559 = vadd.xlane.f32.xlu0 %v558_v53 }
 0xb6c   :  { %v556_v55 = vpop.xlane.xlu2 %555 }
 0xb6d   :  { %v557_v56 = vsel %vm549_vm4, %v556_v55, %v535_v40 }
 0xb6e   :  { %v576_v57 = vmul.f32 %v568_v44, %v557_v56 }
 0xb70   :  { %577 = vadd.xlane.f32.xlu0 %v576_v57 }
 0xb90   :  { %v574_v59 = vpop.xlane.xlu2 %573 }
 0xb91   :  { %v575_v62 = vsel %vm571_vm6, %v574_v59, %v553_v46  ;;  %v676_v59 = vld [vmem:[#allocation2] ss:$0 sm:$0xff] }
 0xb92   :  { %v594_v63 = vmul.f32 %v590_v60, %v575_v62 }
 0xb94   :  { %595 = vadd.xlane.f32.xlu0 %v594_v63 }
 0xbbf   :  { %v542_v0 = vpop.xlane.xlu0 %541 }
 0xbc0   :  { %v543_v3 = vsel %vm527_vm3, %v542_v0, %v521_v49 }
 0xbc1   :  { %v562_v4 = vmul.f32 %v546_v28, %v543_v3  ;;  %v633_v28 = vld [vmem:[#allocation2 + $0x2] ss:$0 sm:$0xff] }
 0xbc2   :  { %v634_v31 = vxor.u32 2147483648, %v633_v28 }
 0xbc3   :  { %563 = vadd.xlane.f32.xlu1 %v562_v4 }
 0xbc7   :  { %v560_v5 = vpop.xlane.xlu0 %559 }
 0xbc8   :  { %v561_v8 = vsel %vm549_vm4, %v560_v5, %v539_v52 }
 0xbc9   :  { %v580_v9 = vmul.f32 %v568_v44, %v561_v8 }
 0xbcb   :  { %581 = vadd.xlane.f32.xlu1 %v580_v9 }
 0xbe3   :  { %v578_v10 = vpop.xlane.xlu0 %577 }
 0xbe4   :  { %v579_v11 = vsel %vm571_vm6, %v578_v10, %v557_v56 }
 0xbe5   :  { %v598_v13 = vmul.f32 %v590_v60, %v579_v11 }
 0xbe7   :  { %599 = vadd.xlane.f32.xlu1 %v598_v13 }
 0xc07   :  { %v596_v15 = vpop.xlane.xlu0 %595 }
 0xc08   :  { %v597_v19 = vsel %vm593_vm8, %v596_v15, %v575_v62  ;;  %v677_v62 = vxor.u32 2147483648, %v676_v59 }
 0xc09   :  { %v616_v20 = vmul.f32 %v612_v16, %v597_v19 }
 0xc0b   :  { %617 = vadd.xlane.f32.xlu1 %v616_v20 }
 0xc36   :  { %v564_v21 = vpop.xlane.xlu1 %563 }
 0xc37   :  { %v565_v22 = vsel %vm549_vm4, %v564_v21, %v543_v3 }
 0xc38   :  { %v584_v23 = vmul.f32 %v568_v44, %v565_v22  ;;  %v655_v44 = vld [vmem:[#allocation2 + $0x1] ss:$0 sm:$0xff] }
 0xc39   :  { %v656_v46 = vxor.u32 2147483648, %v655_v44 }
 0xc3a   :  { %585 = vadd.xlane.f32.xlu2 %v584_v23 }
 0xc3e   :  { %v582_v24 = vpop.xlane.xlu1 %581 }
 0xc3f   :  { %v583_v25 = vsel %vm571_vm6, %v582_v24, %v561_v8 }
 0xc40   :  { %v602_v2 = vmul.f32 %v590_v60, %v583_v25 }
 0xc42   :  { %603 = vadd.xlane.f32.xlu2 %v602_v2 }
 0xc5a   :  { %v600_v7 = vpop.xlane.xlu1 %599 }
 0xc5b   :  { %v601_v26 = vsel %vm593_vm8, %v600_v7, %v579_v11 }
 0xc5c   :  { %v620_v27 = vmul.f32 %v612_v16, %v601_v26 }
 0xc5e   :  { %621 = vadd.xlane.f32.xlu2 %v620_v27 }
 0xc7e   :  { %v618_v30 = vpop.xlane.xlu1 %617 }
 0xc7f   :  { %v619_v32 = vsel %vm615_vm9, %v618_v30, %v597_v19 }
 0xc80   :  { %v638_v33 = vmul.f32 %v634_v31, %v619_v32 }
 0xc82   :  { %639 = vadd.xlane.f32.xlu2 %v638_v33 }
 0xcad   :  { %v586_v34 = vpop.xlane.xlu2 %585 }
 0xcae   :  { %v587_v35 = vsel %vm571_vm6, %v586_v34, %v565_v22 }
 0xcaf   :  { %v606_v36 = vmul.f32 %v590_v60, %v587_v35 }
 0xcb1   :  { %607 = vadd.xlane.f32.xlu0 %v606_v36 }
 0xcb5   :  { %v604_v37 = vpop.xlane.xlu2 %603 }
 0xcb6   :  { %v605_v38 = vsel %vm593_vm8, %v604_v37, %v583_v25 }
 0xcb7   :  { %v624_v39 = vmul.f32 %v612_v16, %v605_v38 }
 0xcb9   :  { %625 = vadd.xlane.f32.xlu0 %v624_v39 }
 0xcd1   :  { %v622_v40 = vpop.xlane.xlu2 %621 }
 0xcd2   :  { %v623_v41 = vsel %vm615_vm9, %v622_v40, %v601_v26 }
 0xcd3   :  { %v642_v42 = vmul.f32 %v634_v31, %v623_v41 }
 0xcd5   :  { %643 = vadd.xlane.f32.xlu0 %v642_v42 }
 0xcf5   :  { %v640_v45 = vpop.xlane.xlu2 %639 }
 0xcf6   :  { %v641_v47 = vsel %vm637_vm10, %v640_v45, %v619_v32 }
 0xcf7   :  { %v660_v48 = vmul.f32 %v656_v46, %v641_v47 }
 0xcf9   :  { %661 = vadd.xlane.f32.xlu0 %v660_v48 }
 0xd24   :  { %v608_v49 = vpop.xlane.xlu0 %607 }
 0xd25   :  { %v609_v50 = vsel %vm593_vm8, %v608_v49, %v587_v35 }
 0xd26   :  { %v628_v51 = vmul.f32 %v612_v16, %v609_v50 }
 0xd28   :  { %629 = vadd.xlane.f32.xlu1 %v628_v51 }
 0xd2c   :  { %v626_v52 = vpop.xlane.xlu0 %625 }
 0xd2d   :  { %v627_v53 = vsel %vm615_vm9, %v626_v52, %v605_v38 }
 0xd2e   :  { %v646_v55 = vmul.f32 %v634_v31, %v627_v53 }
 0xd30   :  { %647 = vadd.xlane.f32.xlu1 %v646_v55 }
 0xd48   :  { %v644_v56 = vpop.xlane.xlu0 %643 }
 0xd49   :  { %v645_v57 = vsel %vm637_vm10, %v644_v56, %v623_v41 }
 0xd4a   :  { %v664_v58 = vmul.f32 %v656_v46, %v645_v57 }
 0xd4c   :  { %665 = vadd.xlane.f32.xlu1 %v664_v58 }
 0xd6c   :  { %v662_v60 = vpop.xlane.xlu0 %661 }
 0xd6d   :  { %v663_v63 = vsel %vm659_vm12, %v662_v60, %v641_v47 }
 0xd6e   :  { %v681_v0 = vmul.f32 %v677_v62, %v663_v63 }
 0xd70   :  { %682 = vadd.xlane.f32.xlu1 %v681_v0 }
 0xd9b   :  { %v630_v3 = vpop.xlane.xlu1 %629 }
 0xd9c   :  { %v631_v4 = vsel %vm615_vm9, %v630_v3, %v609_v50 }
 0xd9d   :  { %v650_v5 = vmul.f32 %v634_v31, %v631_v4 }
 0xd9f   :  { %651 = vadd.xlane.f32.xlu2 %v650_v5 }
 0xda3   :  { %v648_v8 = vpop.xlane.xlu1 %647 }
 0xda4   :  { %v649_v9 = vsel %vm637_vm10, %v648_v8, %v627_v53 }
 0xda5   :  { %v668_v10 = vmul.f32 %v656_v46, %v649_v9 }
 0xda7   :  { %669 = vadd.xlane.f32.xlu2 %v668_v10 }
 0xdbf   :  { %v666_v11 = vpop.xlane.xlu1 %665 }
 0xdc0   :  { %v667_v13 = vsel %vm659_vm12, %v666_v11, %v645_v57 }
 0xdc1   :  { %v685_v14 = vmul.f32 %v677_v62, %v667_v13 }
 0xdc3   :  { %686 = vadd.xlane.f32.xlu2 %v685_v14 }
 0xde3   :  { %v683_v15 = vpop.xlane.xlu1 %682 }
 0xde4   :  { %v684_v16 = vsel %vm680_vm13, %v683_v15, %v663_v63 }
 0xde5   :  { %v711_v19 = vmul.f32 %v684_v16, %v1026_v12 }
 0xde7   :  { %v713_v20 = vsel %vm66_vm11, %v684_v16, %v711_v19 }
 0xde8   :  { %807 = vst [vmem:[%s1142_s1] sm:$0xff] %v713_v20 }
 0xe12   :  { %v652_v21 = vpop.xlane.xlu2 %651 }
 0xe13   :  { %v653_v22 = vsel %vm637_vm10, %v652_v21, %v631_v4 }
 0xe14   :  { %v672_v23 = vmul.f32 %v656_v46, %v653_v22 }
 0xe16   :  { %673 = vadd.xlane.f32.xlu0 %v672_v23 }
 0xe1a   :  { %v670_v24 = vpop.xlane.xlu2 %669 }
 0xe1b   :  { %v671_v25 = vsel %vm659_vm12, %v670_v24, %v649_v9 }
 0xe1c   :  { %v689_v2 = vmul.f32 %v677_v62, %v671_v25 }
 0xe1e   :  { %690 = vadd.xlane.f32.xlu0 %v689_v2 }
 0xe36   :  { %v687_v12 = vpop.xlane.xlu2 %686 }
 0xe37   :  { %v688_v61 = vsel %vm680_vm13, %v687_v12, %v667_v13 }
 0xe38   :  { %v729_v7 = vmul.f32 %v688_v61, %v953_v29 }
 0xe3a   :  { %v731_v26 = vsel %vm95_vm7, %v688_v61, %v729_v7 }
 0xe3b   :  { %809 = vst [vmem:[%s1142_s1 + $0x8] sm:$0xff] %v731_v26 }
 0xe89   :  { %v674_v27 = vpop.xlane.xlu0 %673 }
 0xe8a   :  { %v675_v28 = vsel %vm659_vm12, %v674_v27, %v653_v22 }
 0xe8b   :  { %v693_v30 = vmul.f32 %v677_v62, %v675_v28 }
 0xe8d   :  { %694 = vadd.xlane.f32.xlu1 %v693_v30 }
 0xe91   :  { %v691_v31 = vpop.xlane.xlu0 %690 }
 0xe92   :  { %v692_v32 = vsel %vm680_vm13, %v691_v31, %v671_v25 }
 0xe93   :  { %v748_v33 = vmul.f32 %v692_v32, %v894_v54 }
 0xe95   :  { %v750_v18 = vsel %vm124_vm15, %v692_v32, %v748_v33 }
 0xe96   :  { %811 = vst [vmem:[%s1142_s1 + $0x10] sm:$0xff] %v750_v18 }
 0xf00   :  { %v695_v29 = vpop.xlane.xlu1 %694 }
 0xf01   :  { %v696_v34 = vsel %vm680_vm13, %v695_v29, %v675_v28 }
 0xf02   :  { %v767_v35 = vmul.f32 %v696_v34, %v869_v17 }
 0xf04   :  { %v769_v36 = vsel %vm153_vm5, %v696_v34, %v767_v35 }
 0xf05   :  { %813 = vst [vmem:[%s1142_s1 + $0x18] sm:$0xff] %v769_v36 }

// kernel: _gp_regression_impl.2
= control target key start
LH: loop header
LB: loop body
LE: loop exit
PB: predicated region body
PF: predicated region fallthrough
CT: control target
= control target key end

     0   :  { %vm25_vm0 = vcmask 64512   ;;  %v123_v0 = vmov 0   ;;  %vm99_vm1 = vcmask 130048   ;;  %s198_s3 = inlined_call_operand.vmem [shape: f32[16,1], index: 3, kind: input, shape index: {}]   ;;  %s199_s1 = inlined_call_operand.vmem [shape: f32[8,8], index: 1, kind: input, shape index: {}, may-alias: {1,2}]   ;;  %s200_s0 = inlined_call_operand.vmem [shape: f32[8,8], index: 0, kind: input, shape index: {}]   ;;  %s201_s2 = inlined_call_operand.vmem [shape: f32[8,8], index: 2, kind: input, shape index: {}, may-alias: {1,2}]   ;;  %s202_s4 = inlined_call_operand.vmem [shape: f32[1,16], index: 4, kind: input, shape index: {}]   ;;  %s203_s6 = inlined_call_operand.vmem [shape: f32[8,8], index: 6, kind: output, shape index: {1}]   ;;  %s204_s5 = inlined_call_operand.vmem [shape: f32[8,8], index: 5, kind: output, shape index: {0}]   ;;  %s205_s7 = inlined_call_operand.vmem [shape: f32[16,16], index: 7, kind: output, shape index: {2}]  }
   0x1   :  { %117 = vset.pattern.permute.xlu0 %v123_v0  ;;  %v73_v1 = vld [vmem:[%s198_s3] sm:$0xff]  ;;  %v74_v5 = vld [vmem:[%s198_s3 + $0x8] sm:$0xff] }
   0x2   :  { %v24_v2 = vld [vmem:[%s199_s1] sm:$0xff]  ;;  %78 = vperm.xlu0 %117, %v73_v1  }
   0x3   :  { %44 = vmatpush.msra.mxu0 %v24_v2  ;;  %v23_v3 = vld [vmem:[%s200_s0] sm:$0xff] }
   0x4   :  { %v51_v4 = vld [vmem:[%s201_s2] sm:$0xff]  ;;  %114 = vmatmul.msk.f32.vlgmr.msra.gmra.mxu0 %vm25_vm0, %v23_v3 }
   0x5   :  { %67 = vmatpush.msra.mxu1 %v51_v4  ;;  %v118_v6 = vld [vmem:[%s202_s4] ss:$0 sm:$0xff] }
   0x6   :  { %115 = vmatmul.msk.f32.vlgmr.msra.gmra.mxu1 %vm25_vm0, %v23_v3 }
   0xa   :  { %83 = vperm.xlu0 %117, %v74_v5  }
  0x74   :  { %v79_v7 = vpop.permute.xlu0 %78 }
  0x75   :  { %v89_v8 = vsub.f32 %v79_v7, %v118_v6 }
  0x77   :  { %v91_v9 = vand.u32 2147483647, %v89_v8 }
  0x79   :  { %v93_v10 = vsub.f32 0.0, %v91_v9 }
  0x7b   :  { %v95_v11 = vmul.f32 1.442695, %v93_v10 }
  0x7c   :  { %v84_v12 = vpop.permute.xlu0 %83 }
  0x7d   :  { %119 = vpow2.f32 %v95_v11  ;;  %v90_v13 = vsub.f32 %v84_v12, %v118_v6 }
  0x7f   :  { %v92_v14 = vand.u32 2147483647, %v90_v13 }
  0x81   :  { %v46_v15 = vpop.f32.mrf.mxu0  ;;  %v94_v16 = vsub.f32 0.0, %v92_v14 }
  0x82   :  { %v49_v17 = vsub.f32 %v23_v3, %v46_v15 }
  0x83   :  { %v69_v18 = vpop.f32.mrf.mxu1  ;;  %v120_v19 = vpop.eup %119  ;;  %v97_v20 = vmul.f32 1.442695, %v94_v16 }
  0x84   :  { %72 = vst.msk [vmem:[%s203_s6] sm:$0xff] %vm25_vm0, %v69_v18 }
  0x85   :  { %50 = vst.msk [vmem:[%s204_s5] sm:$0xff] %vm25_vm0, %v49_v17  ;;  %121 = vpow2.f32 %v97_v20 }
  0x86   :  { %100 = vst.msk [vmem:[%s205_s7] sm:$0xff] %vm99_vm1, %v120_v19 }
  0x8b   :  { %v122_v21 = vpop.eup %121 }
  0x8c   :  { %101 = vst.msk [vmem:[%s205_s7 + $0x8] sm:$0xff] %vm99_vm1, %v122_v21 }

// kernel: _gp_regression_impl.3
= control target key start
LH: loop header
LB: loop body
LE: loop exit
PB: predicated region body
PF: predicated region fallthrough
CT: control target
= control target key end

     0   :  { %vm29_vm0 = vcmask 261120   ;;  %s275_s0 = inlined_call_operand.vmem [shape: f32[2,32], index: 0, kind: input, shape index: {}]   ;;  %s276_s1 = inlined_call_operand.vmem [shape: f32[32,32], index: 1, kind: input, shape index: {}]   ;;  %s277_s2 = inlined_call_operand.vmem [shape: f32[32,32], index: 2, kind: input, shape index: {}]   ;;  %s278_s3 = inlined_call_operand.vmem [shape: f32[32,32], index: 3, kind: input, shape index: {}]   ;;  %s279_s4 = inlined_call_operand.vmem [shape: f32[2,32], index: 4, kind: input, shape index: {}]   ;;  %s280_s5 = inlined_call_operand.vmem [shape: f32[2,32], index: 5, kind: output, shape index: {0}]   ;;  %s281_s6 = inlined_call_operand.hbm [shape: f32[32,32], index: 6, kind: output, shape index: {1}]  }
   0x1   :  { %v74_v0 = vld [vmem:[%s277_s2 + $0x18] sm:$0xff]  ;;  %v73_v1 = vld [vmem:[%s277_s2 + $0x10] sm:$0xff]  ;;  %v72_v3 = vld [vmem:[%s277_s2 + $0x8] sm:$0xff] }
   0x2   :  { %143 = vmatpush.msra.mxu2 %v74_v0  ;;  %87 = vmatpush.msra.mxu1 %v74_v0  ;;  %v26_v2 = vld [vmem:[%s276_s1 + $0x18] sm:$0xff] }
   0x3   :  { %134 = vmatpush.xpose.msk.msra.mxu0 %vm29_vm0, %v26_v2 }
   0x4   :  { %144 = vmatpush.msra.mxu2 %v73_v1  ;;  %88 = vmatpush.msra.mxu1 %v73_v1 }
   0x5   :  { %12 = vsyncpa [#allocation3], 0  ;;  %v71_v4 = vld [vmem:[%s277_s2] sm:$0xff]  ;;  %v25_v5 = vld [vmem:[%s276_s1 + $0x10] sm:$0xff]  ;;  %vm65_vm1 = vcmask 254976   ;;  %s176_s20 = smov [#allocation2]  }
   0x6   :  { %145 = vmatpush.msra.mxu2 %v72_v3  ;;  %89 = vmatpush.msra.mxu1 %v72_v3  ;;  %v23_v6 = vld [vmem:[%s276_s1] sm:$0xff]  ;;  %v24_v7 = vld [vmem:[%s276_s1 + $0x8] sm:$0xff]  ;;  %v69_v12 = vld [vmem:[%s278_s3 + $0x10] sm:$0xff]  ;;  %s118_s21 = sshll.u32 %s176_s20, 4  ;;  %s120_s24 = sshll.u32 %s281_s6, 4  ;;  %s119_s21 = int_to_ptr.vmem [resolvable:$true] %s118_s21  ;;  %s121_s24 = int_to_ptr.hbm [resolvable:$true] %s120_s24 }
   0x7   :  { %135 = vmatpush.xpose.msk.msra.mxu0 %vm29_vm0, %v25_v5  ;;  %v27_v8 = vld [vmem:[%s275_s0] sm:$0x3]  ;;  %v68_v14 = vld [vmem:[%s278_s3 + $0x8] sm:$0xff]  ;;  %v70_v21 = vld [vmem:[%s278_s3 + $0x18] sm:$0xff]  ;;  %s177_s28 = smov 128   ;;  %s178_s29 = smov 8  }
   0x8   :  { %146 = vmatpush.msra.mxu2 %v71_v4  ;;  %90 = vmatpush.msra.mxu1 %v71_v4  ;;  %v67_v9 = vld [vmem:[%s278_s3] sm:$0xff] }
   0x9   :  { %141 = vmatmul.msk.f32.vlgmr.msra.gmra.mxu2 %vm29_vm0, %v25_v5  ;;  %139 = vmatmul.msk.f32.vlgmr.msra.gmra.mxu1 %vm29_vm0, %v23_v6  ;;  %v28_v16 = vld [vmem:[%s279_s4] sm:$0x3] }
   0xb   :  { %136 = vmatpush.xpose.msk.msra.mxu0 %vm29_vm0, %v24_v7 }
   0xf   :  { %137 = vmatpush.xpose.msk.msra.mxu0 %vm29_vm0, %v23_v6 }
  0x11   :  { %142 = vmatmul.msk.f32.gmra.mxu2 %vm29_vm0, %v26_v2  ;;  %140 = vmatmul.msk.f32.gmra.mxu1 %vm29_vm0, %v24_v7 }
  0x12   :  { %138 = vmatmul.msk.f32.vlgmr.msra.gmra.mxu0 %vm29_vm0, %v27_v8 }
  0x86   :  { %v92_v10 = vpop.f32.mrf.mxu1 }
  0x87   :  { %v104_v11 = vsub.f32 %v67_v9, %v92_v10 }
  0x89   :  { %108 = vst.msk [vmem:[#allocation2] sm:$0xff] %vm29_vm0, %v104_v11 }
  0x8c   :  { %v98_v13 = vpop.f32.mrf.mxu2 }
  0x8d   :  { %v106_v15 = vsub.f32 %v69_v12, %v98_v13 }
  0x8e   :  { %v95_v17 = vpop.f32.mrf.mxu1 }
  0x8f   :  { %110 = vst.msk [vmem:[#allocation2 + $0x10] sm:$0xff] %vm29_vm0, %v106_v15  ;;  %v105_v18 = vsub.f32 %v68_v14, %v95_v17  ;;  %v62_v19 = vpop.f32.mrf.mxu0 }
  0x90   :  { %v63_v20 = vadd.f32 %v62_v19, %v28_v16 }
  0x91   :  { %109 = vst.msk [vmem:[#allocation2 + $0x8] sm:$0xff] %vm29_vm0, %v105_v18 }
  0x92   :  { %66 = vst.msk [vmem:[%s280_s5] sm:$0x3] %vm65_vm1, %v63_v20 }
  0x94   :  { %v101_v22 = vpop.f32.mrf.mxu2 }
  0x95   :  { %v107_v23 = vsub.f32 %v70_v21, %v101_v22 }
  0x97   :  { %111 = vst.msk [vmem:[#allocation2 + $0x18] sm:$0xff] %vm29_vm0, %v107_v23 }
  0x98   :  { %126 = dma.vmem_to_hbm [thread:$0]  %s119_s21, 512, %s121_s24, [#allocation3], %s177_s28, %s177_s28, %s178_s29  }
  0x99   :  { %174 = dma.done.wait [#allocation3], 512  }
  0x9a   :  { %175 = vsyncadd [#allocation3], 4294966784 }
  0x9b   :  { %133 = vsyncpa [#allocation3], 1 }

</bundles_post_ra>
